<compile_context>
chip_gen: v6e
topology: v6e:2x2x1
jax: 0.10.0
libtpu: 0.0.40
codegen_flags: <defaults>
</compile_context>

<pallas_src>
import functools

import jax
import jax.numpy as jnp
from jax import lax
from jax.experimental import pallas as pl
from jax.experimental.pallas import tpu as pltpu

GAMMA = 1.5
ALPHA = 0.25
LANES = 128
SUBLANES = 8


def _focal_loss_partial_kernel(pred_ref, true_ref, out_ref, *, chunk_rows,
                               use_approx_recip):
    tile_rows = pred_ref.shape[0]
    num_chunks = tile_rows // chunk_rows

    def chunk_body(c, acc):
        start = pl.multiple_of(c * chunk_rows, chunk_rows)
        x = pred_ref[pl.ds(start, chunk_rows), :].astype(jnp.float32)
        y = true_ref[pl.ds(start, chunk_rows), :].astype(jnp.float32)

        # One exp per element, reused for both the BCE log-term and sigmoid.
        e = jnp.exp(-jnp.abs(x))                      # exp(-|x|)   (EUP)
        denom = 1.0 + e
        if use_approx_recip:
            inv = pl.reciprocal(denom, approx=True)   # single EUP push
        else:
            inv = 1.0 / denom                         # rcp + Newton (VPU, non-critical)

        # BCEWithLogitsLoss(reduction='none'), numerically stable form:
        #   max(x, 0) - x*y + log(1 + exp(-|x|))
        bce = jnp.maximum(x, 0.0) - x * y + jnp.log1p(e)

        # sigmoid(x) derived from the same e (no second exp).
        pred_prob = jnp.where(x >= 0.0, inv, e * inv)

        p_t = y * pred_prob + (1.0 - y) * (1.0 - pred_prob)
        alpha_factor = y * ALPHA + (1.0 - y) * (1.0 - ALPHA)
        t = 1.0 - p_t
        modulating_factor = t * jnp.sqrt(t)           # t ** 1.5 (gamma = 1.5)
        loss = bce * alpha_factor * modulating_factor

        # Fold rows only (VPU adds); no cross-lane/cross-sublane reduce in-kernel.
        partial = loss.reshape(chunk_rows // SUBLANES, SUBLANES, LANES).sum(axis=0)
        return acc + partial

    acc = jnp.zeros((SUBLANES, LANES), jnp.float32)
    acc = lax.fori_loop(0, num_chunks, chunk_body, acc, unroll=True)
    out_ref[...] = acc


def _pad_flat(x, n_total, fill):
    flat = x.reshape(-1)
    pad = n_total - flat.shape[0]
    if pad:
        flat = jnp.pad(flat, (0, pad), constant_values=fill)
    return flat


def focal_loss(pred, true, *, max_tile_rows=4096, chunk_rows=256,
               use_approx_recip=False):
    """pred, true: same-shape float arrays (logits / targets, any dtype).

    Returns the scalar mean focal loss (float32). Inputs are NOT upcast in the
    wrapper; the kernel computes in float32 internally.
    """
    assert pred.shape == true.shape
    assert max_tile_rows % chunk_rows == 0
    assert chunk_rows % (2 * SUBLANES) == 0   # multiple of 16: bf16 sublane packing

    total_n = 1
    for d in pred.shape:
        total_n *= d

    m = pl.cdiv(total_n, LANES)                       # 128-lane rows needed
    # Smallest multiple of chunk_rows covering the input, capped at max_tile_rows.
    tile_rows = min(max_tile_rows, pl.cdiv(m, chunk_rows) * chunk_rows)
    grid = pl.cdiv(m, tile_rows)
    m_pad = grid * tile_rows
    n_pad = m_pad * LANES

    # Pad with (pred=100, true=1): bce == 0 and modulating_factor == 0 there, so
    # padded elements contribute exactly 0 to the sum (zero-padding would bias).
    pred2d = _pad_flat(pred, n_pad, 100.0).reshape(m_pad, LANES)
    true2d = _pad_flat(true, n_pad, 1.0).reshape(m_pad, LANES)

    kernel = functools.partial(
        _focal_loss_partial_kernel,
        chunk_rows=chunk_rows,
        use_approx_recip=use_approx_recip,
    )

    bytes_in = n_pad * (pred2d.dtype.itemsize + true2d.dtype.itemsize)
    bytes_out = grid * SUBLANES * LANES * 4
    cost = pl.CostEstimate(
        flops=15 * n_pad,
        transcendentals=4 * n_pad,
        bytes_accessed=bytes_in + bytes_out,
    )

    partials = pl.pallas_call(
        kernel,
        out_shape=jax.ShapeDtypeStruct((grid * SUBLANES, LANES), jnp.float32),
        grid_spec=pltpu.PrefetchScalarGridSpec(
            num_scalar_prefetch=0,
            grid=(grid,),
            in_specs=[
                pl.BlockSpec((tile_rows, LANES), lambda i: (i, 0)),
                pl.BlockSpec((tile_rows, LANES), lambda i: (i, 0)),
            ],
            out_specs=pl.BlockSpec((SUBLANES, LANES), lambda i: (i, 0)),
        ),
        compiler_params=pltpu.CompilerParams(
            dimension_semantics=("parallel",),
            vmem_limit_bytes=32 * 1024 * 1024,
        ),
        cost_estimate=cost,
    )(pred2d, true2d)

    # Tiny cross-lane reduce + 'mean' divide (by the UNPADDED element count) in JAX.
    return jnp.sum(partials) / jnp.float32(total_n)


def _focal_loss_ref(pred, true):
    x = pred.astype(jnp.float32)
    y = true.astype(jnp.float32)
    bce = jnp.maximum(x, 0.0) - x * y + jnp.log1p(jnp.exp(-jnp.abs(x)))
    p = jax.nn.sigmoid(x)
    p_t = y * p + (1 - y) * (1 - p)
    alpha_factor = y * ALPHA + (1 - y) * (1 - ALPHA)
    mod = (1.0 - p_t) ** GAMMA
    return jnp.mean(bce * alpha_factor * mod)


if __name__ == "__main__":
    key = jax.random.PRNGKey(0)
    k1, k2 = jax.random.split(key)

    B, C, H, W = 2, 4, 16, 16
    pred = jax.random.normal(k1, (B, C, H, W), dtype=jnp.float32) * 2.0
    true = jax.random.bernoulli(k2, 0.3, (B, C, H, W)).astype(jnp.float32)

    ref = _focal_loss_ref(pred, true)

    # 1) f32 inputs, exact reciprocal (default): full-precision validation.
    out = jax.block_until_ready(focal_loss(pred, true))
    assert jnp.allclose(out, ref, rtol=1e-5, atol=1e-6), (out, ref)

    # 2) f32 inputs, EUP approx reciprocal (perf-review option): ~2^-12
    #    per-element error, so validated at a correspondingly looser tolerance.
    out_approx = jax.block_until_ready(focal_loss(pred, true, use_approx_recip=True))
    assert jnp.allclose(out_approx, ref, rtol=2e-3, atol=1e-5), (out_approx, ref)

    # 3) bf16 inputs + element count NOT divisible by 1024: exercises the
    #    pad/mask path and the no-upcast wrapper path (kernel math stays f32).
    k3, k4 = jax.random.split(k2)
    shape2 = (2, 3, 15, 17)
    pred_bf = (jax.random.normal(k3, shape2, dtype=jnp.float32) * 2.0).astype(jnp.bfloat16)
    true_bf = jax.random.bernoulli(k4, 0.3, shape2).astype(jnp.bfloat16)
    out_bf = jax.block_until_ready(focal_loss(pred_bf, true_bf))
    ref_bf = _focal_loss_ref(pred_bf.astype(jnp.float32), true_bf.astype(jnp.float32))
    assert jnp.allclose(out_bf, ref_bf, rtol=1e-5, atol=1e-6), (out_bf, ref_bf)

    print("KERNEL_OK")
</pallas_src>

<mosaic_0001>
module attributes {stable_mosaic.version = 11 : i64} {
  func.func @_focal_loss_partial_kernel(%arg0: i32, %arg1: memref<256x128xf32, #tpu.memory_space<vmem>>, %arg2: memref<256x128xf32, #tpu.memory_space<vmem>>, %arg3: memref<8x128xf32, #tpu.memory_space<vmem>>) attributes {dimension_semantics = [#tpu.dimension_semantics<parallel>], iteration_bounds = array<i64: 1>, scalar_prefetch = 0 : i64, scratch_operands = 0 : i64, tpu.core_type = #tpu.core_type<tc>, window_params = [{transform_indices = @transform_0, window_bounds = array<i64: 256, 128>}, {transform_indices = @transform_1, window_bounds = array<i64: 256, 128>}, {transform_indices = @transform_2, window_bounds = array<i64: 8, 128>}]} {
    %cst = arith.constant 0.000000e+00 : f32
    %0 = vector.broadcast %cst : f32 to vector<8x128xf32>
    %c0_i32 = arith.constant 0 : i32
    %c256_i32 = arith.constant 256 : i32
    %1 = arith.muli %c0_i32, %c256_i32 : i32
    %2 = tpu.assume_multiple %1, 256 : i32
    %3 = arith.index_cast %2 : i32 to index
    %c0 = arith.constant 0 : index
    %4 = vector.load %arg1[%3, %c0] : memref<256x128xf32, #tpu.memory_space<vmem>>, vector<256x128xf32>
    %5 = arith.index_cast %2 : i32 to index
    %c0_0 = arith.constant 0 : index
    %6 = vector.load %arg2[%5, %c0_0] : memref<256x128xf32, #tpu.memory_space<vmem>>, vector<256x128xf32>
    %7 = math.absf %4 : vector<256x128xf32>
    %cst_1 = arith.constant 0.000000e+00 : f32
    %8 = vector.broadcast %cst_1 : f32 to vector<256x128xf32>
    %9 = arith.subf %8, %7 : vector<256x128xf32>
    %10 = math.exp %9 : vector<256x128xf32>
    %cst_2 = arith.constant 1.000000e+00 : f32
    %11 = vector.broadcast %cst_2 : f32 to vector<256x128xf32>
    %12 = arith.addf %11, %10 : vector<256x128xf32>
    %cst_3 = arith.constant 1.000000e+00 : f32
    %13 = vector.broadcast %cst_3 : f32 to vector<256x128xf32>
    %14 = arith.divf %13, %12 : vector<256x128xf32>
    %cst_4 = arith.constant 0.000000e+00 : f32
    %15 = vector.broadcast %cst_4 : f32 to vector<256x128xf32>
    %16 = arith.maximumf %4, %15 : vector<256x128xf32>
    %17 = arith.mulf %4, %6 : vector<256x128xf32>
    %18 = arith.subf %16, %17 : vector<256x128xf32>
    %19 = math.log1p %10 : vector<256x128xf32>
    %20 = arith.addf %18, %19 : vector<256x128xf32>
    %cst_5 = arith.constant 0.000000e+00 : f32
    %21 = vector.broadcast %cst_5 : f32 to vector<256x128xf32>
    %22 = arith.cmpf oge, %4, %21 : vector<256x128xf32>
    %23 = arith.mulf %10, %14 : vector<256x128xf32>
    %24 = arith.select %22, %14, %23 : vector<256x128xi1>, vector<256x128xf32>
    %25 = arith.mulf %6, %24 : vector<256x128xf32>
    %cst_6 = arith.constant 1.000000e+00 : f32
    %26 = vector.broadcast %cst_6 : f32 to vector<256x128xf32>
    %27 = arith.subf %26, %6 : vector<256x128xf32>
    %cst_7 = arith.constant 1.000000e+00 : f32
    %28 = vector.broadcast %cst_7 : f32 to vector<256x128xf32>
    %29 = arith.subf %28, %24 : vector<256x128xf32>
    %30 = arith.mulf %27, %29 : vector<256x128xf32>
    %31 = arith.addf %25, %30 : vector<256x128xf32>
    %cst_8 = arith.constant 2.500000e-01 : f32
    %32 = vector.broadcast %cst_8 : f32 to vector<256x128xf32>
    %33 = arith.mulf %6, %32 : vector<256x128xf32>
    %cst_9 = arith.constant 1.000000e+00 : f32
    %34 = vector.broadcast %cst_9 : f32 to vector<256x128xf32>
    %35 = arith.subf %34, %6 : vector<256x128xf32>
    %cst_10 = arith.constant 7.500000e-01 : f32
    %36 = vector.broadcast %cst_10 : f32 to vector<256x128xf32>
    %37 = arith.mulf %35, %36 : vector<256x128xf32>
    %38 = arith.addf %33, %37 : vector<256x128xf32>
    %cst_11 = arith.constant 1.000000e+00 : f32
    %39 = vector.broadcast %cst_11 : f32 to vector<256x128xf32>
    %40 = arith.subf %39, %31 : vector<256x128xf32>
    %41 = math.sqrt %40 : vector<256x128xf32>
    %42 = arith.mulf %40, %41 : vector<256x128xf32>
    %43 = arith.mulf %20, %38 : vector<256x128xf32>
    %44 = arith.mulf %43, %42 : vector<256x128xf32>
    %45 = vector.shape_cast %44 : vector<256x128xf32> to vector<32x8x128xf32>
    %cst_12 = arith.constant dense<0.000000e+00> : vector<8x128xf32>
    %46 = vector.multi_reduction <add>, %45, %cst_12 [0] : vector<32x8x128xf32> to vector<8x128xf32>
    %47 = arith.addf %0, %46 : vector<8x128xf32>
    %c1_i32 = arith.constant 1 : i32
    %c0_13 = arith.constant 0 : index
    %c0_14 = arith.constant 0 : index
    %48 = vector.load %arg3[%c0_13, %c0_14] : memref<8x128xf32, #tpu.memory_space<vmem>>, vector<8x128xf32>
    tpu.vector_store %arg3[%c0_13, %c0_14], %47 {strides = array<i32>} : memref<8x128xf32, #tpu.memory_space<vmem>>, vector<8x128xf32>,
    return
  }
  func.func @transform_0(%arg0: i32) -> (i32, i32) {
    %c0_i32 = arith.constant 0 : i32
    %c0_i32_0 = arith.constant 0 : i32
    return %arg0, %c0_i32 : i32, i32
  }
  func.func @transform_1(%arg0: i32) -> (i32, i32) {
    %c0_i32 = arith.constant 0 : i32
    %c0_i32_0 = arith.constant 0 : i32
    return %arg0, %c0_i32 : i32, i32
  }
  func.func @transform_2(%arg0: i32) -> (i32, i32) {
    %c0_i32 = arith.constant 0 : i32
    %c0_i32_0 = arith.constant 0 : i32
    return %arg0, %c0_i32 : i32, i32
  }
}

</mosaic_0001>

<bundles_post_ra>
// kernel: tpu_custom_call.1
= control target key start
LH: loop header
LB: loop body
LE: loop exit
PB: predicated region body
PF: predicated region fallthrough
CT: control target
= control target key end

     0   :  { %7 = vsyncpa [#allocation3], 0  ;;  %s4847_s0 = inlined_call_operand.hbm [shape: f32[256,128], index: 0, kind: input, shape index: {}]   ;;  %s4848_s1 = inlined_call_operand.hbm [shape: f32[256,128], index: 1, kind: input, shape index: {}]   ;;  %s4849_s2 = inlined_call_operand.hbm [shape: f32[8,128], index: 2, kind: output, shape index: {}]  }
   0x1   :  { %8 = vsyncpa [#allocation6], 0 }
   0x2   :  { %9 = vsyncpa [#allocation4], 0  ;;  %s1888_s9 = smov [#allocation2]  }
   0x3   :  { %s15_s10 = sshll.u32 %s1888_s9, 4  ;;  %s16_s10 = int_to_ptr.vmem [resolvable:$true] %s15_s10 }
   0x4   :  { %s1830_s11 = scalar_lea.vmem %s16_s10, 4096  ;;  %p1835_p1 = scmp.lt.s32.totalorder %s16_s10, %s16_s10 }
   0x5   :  { %p1831_p0 = scmp.ne.s32.totalorder %s16_s10, %s1830_s11  ;;  %p1836_p2 = scmp.lt.s32.totalorder %s1830_s11, %s1830_s11 }
   0x7   :  { %p1837_p3 = por %p1836_p2, %p1835_p1 }
   0x9   :  { %p1838_p4 = pnand %p1837_p3, %p1831_p0 }
   0xb   :  { %1841 = shalt.err (!%p1838_p4)
}
   0xc   :  { %s1889_s12 = smov 128   ;;  %s1890_s13 = smov 8  }
   0xd   :  { %21 = dma.hbm_to_vmem [thread:$0]  %s4847_s0, 4096, %s16_s10, [#allocation3], %s1889_s12, %s1889_s12, %s1890_s13  }
   0xe   :  { %s1891_s16 = smov [#allocation5]  }
   0xf   :  { %s27_s17 = sshll.u32 %s1891_s16, 4  ;;  %s28_s17 = int_to_ptr.vmem [resolvable:$true] %s27_s17 }
  0x10   :  { %s1850_s18 = scalar_lea.vmem %s28_s17, 4096  ;;  %p1855_p6 = scmp.lt.s32.totalorder %s28_s17, %s28_s17 }
  0x11   :  { %p1851_p5 = scmp.ne.s32.totalorder %s28_s17, %s1850_s18  ;;  %p1856_p7 = scmp.lt.s32.totalorder %s1850_s18, %s1850_s18 }
  0x13   :  { %p1857_p8 = por %p1856_p7, %p1855_p6 }
  0x15   :  { %p1858_p9 = pnand %p1857_p8, %p1851_p5 }
  0x17   :  { %1861 = shalt.err (!%p1858_p9)
}
  0x18   :  { %33 = dma.hbm_to_vmem [thread:$0]  %s4848_s1, 4096, %s28_s17, [#allocation6], %s1889_s12, %s1889_s12, %s1890_s13  }
  0x19   :  { %1882 = dma.done.wait [#allocation3], 4096  }
  0x1a   :  { %1883 = vsyncadd [#allocation3], 4294963200 }
  0x1b   :  { %1884 = dma.done.wait [#allocation6], 4096  }
  0x1c   :  { %1885 = vsyncadd [#allocation6], 4294963200  ;;  %v1914_v0 = vld [vmem:[#allocation2] sm:$0xff]  ;;  %v1916_v1 = vld [vmem:[#allocation2 + $0x8] sm:$0xff]  ;;  %s1892_s0 = smov [#allocation7]  }
  0x1d   :  { %5103 = vst [vmem:[#allocation11_spill] sm:$0xff] %v1914_v0  ;;  %5104 = vst [vmem:[#allocation12_spill] sm:$0xff] %v1916_v1  ;;  %v1918_v2 = vld [vmem:[#allocation2 + $0x10] sm:$0xff]  ;;  %v1920_v3 = vld [vmem:[#allocation2 + $0x18] sm:$0xff]  ;;  %v104_v9 = vand.u32 2147483647, %v1914_v0 }
  0x1e   :  { %v1922_v4 = vld [vmem:[#allocation2 + $0x20] sm:$0xff]  ;;  %v1924_v5 = vld [vmem:[#allocation2 + $0x28] sm:$0xff]  ;;  %v1926_v6 = vld [vmem:[#allocation2 + $0x30] sm:$0xff]  ;;  %v105_v10 = vand.u32 2147483647, %v1916_v1  ;;  %s1487_s1 = sshll.u32 %s1892_s0, 4  ;;  %s1488_s1 = int_to_ptr.vmem [resolvable:$true] %s1487_s1 }
  0x1f   :  { %v1928_v7 = vld [vmem:[#allocation2 + $0x38] sm:$0xff]  ;;  %v1930_v8 = vld [vmem:[#allocation2 + $0x40] sm:$0xff]  ;;  %v1934_v11 = vld [vmem:[#allocation2 + $0x48] sm:$0xff]  ;;  %v106_v13 = vand.u32 2147483647, %v1918_v2  ;;  %v136_v25 = vsub.f32 0.0, %v104_v9  ;;  %p1867_p11 = scmp.lt.s32.totalorder %s1488_s1, %s1488_s1 }
  0x20   :  { %v1936_v12 = vld [vmem:[#allocation2 + $0x50] sm:$0xff]  ;;  %v107_v14 = vand.u32 2147483647, %v1920_v3  ;;  %v108_v15 = vand.u32 2147483647, %v1922_v4  ;;  %v1943_v18 = vld [vmem:[#allocation2 + $0x58] sm:$0xff] }
  0x21   :  { %v109_v16 = vand.u32 2147483647, %v1924_v5  ;;  %v110_v17 = vand.u32 2147483647, %v1926_v6  ;;  %v111_v19 = vand.u32 2147483647, %v1928_v7 }
  0x22   :  { %v112_v20 = vand.u32 2147483647, %v1930_v8  ;;  %v1948_v22 = vld [vmem:[#allocation2 + $0x60] sm:$0xff]  ;;  %v1950_v23 = vld [vmem:[#allocation2 + $0x68] sm:$0xff]  ;;  %v113_v24 = vand.u32 2147483647, %v1934_v11 }
  0x23   :  { %v1954_v27 = vld [vmem:[#allocation2 + $0x70] sm:$0xff]  ;;  %v114_v28 = vand.u32 2147483647, %v1936_v12  ;;  %v137_v29 = vsub.f32 0.0, %v105_v10  ;;  %v138_v30 = vsub.f32 0.0, %v106_v13  ;;  %v139_v31 = vsub.f32 0.0, %v107_v14 }
  0x24   :  { %v1957_v32 = vld [vmem:[#allocation2 + $0x78] sm:$0xff]  ;;  %v115_v33 = vand.u32 2147483647, %v1943_v18  ;;  %v1960_v34 = vsub.f32 0.0, %v108_v15  ;;  %v1962_v35 = vsub.f32 0.0, %v109_v16  ;;  %v1964_v36 = vsub.f32 0.0, %v110_v17 }
  0x25   :  { %v72_v37 = vld [vmem:[#allocation5] sm:$0xff]  ;;  %v73_v38 = vld [vmem:[#allocation5 + $0x8] sm:$0xff]  ;;  %v116_v39 = vand.u32 2147483647, %v1948_v22  ;;  %v1967_v40 = vsub.f32 0.0, %v111_v19  ;;  %v1969_v41 = vsub.f32 0.0, %v112_v20 }
  0x26   :  { %v1971_v42 = vld [vmem:[#allocation2 + $0x80] sm:$0xff]  ;;  %v74_v43 = vld [vmem:[#allocation5 + $0x10] sm:$0xff]  ;;  %v75_v44 = vld [vmem:[#allocation5 + $0x18] sm:$0xff]  ;;  %v117_v45 = vand.u32 2147483647, %v1950_v23  ;;  %v1974_v46 = vsub.f32 0.0, %v113_v24  ;;  %v1977_v47 = vmul.f32 %v72_v37, %v1914_v0  ;;  %v1980_v48 = vmul.f32 %v73_v38, %v1916_v1 }
  0x27   :  { %v1982_v49 = vld [vmem:[#allocation2 + $0x88] sm:$0xff]  ;;  %v76_v50 = vld [vmem:[#allocation5 + $0x20] sm:$0xff]  ;;  %v118_v52 = vand.u32 2147483647, %v1954_v27  ;;  %v1985_v53 = vsub.f32 0.0, %v114_v28  ;;  %v1988_v54 = vmul.f32 %v74_v43, %v1918_v2  ;;  %v1991_v55 = vmul.f32 %v75_v44, %v1920_v3  ;;  %v78_v56 = vld [vmem:[#allocation5 + $0x30] sm:$0xff] }
  0x28   :  { %5105 = vst [vmem:[#allocation13_spill] sm:$0xff] %v1977_v47  ;;  %5106 = vst [vmem:[#allocation14_spill] sm:$0xff] %v1980_v48  ;;  %v77_v51 = vld [vmem:[#allocation5 + $0x28] sm:$0xff]  ;;  %v79_v57 = vld [vmem:[#allocation5 + $0x38] sm:$0xff]  ;;  %v119_v59 = vand.u32 2147483647, %v1957_v32  ;;  %v1997_v61 = vmul.f32 %v76_v50, %v1922_v4  ;;  %v2007_v14 = vmul.f32 %v78_v56, %v1926_v6 }
  0x29   :  { %5107 = vst [vmem:[#allocation15_spill] sm:$0xff] %v1988_v54  ;;  %5108 = vst [vmem:[#allocation16_spill] sm:$0xff] %v1991_v55  ;;  %v80_v58 = vld [vmem:[#allocation5 + $0x40] sm:$0xff]  ;;  %v1994_v60 = vsub.f32 0.0, %v115_v33  ;;  %v2000_v62 = vmul.f32 %v77_v51, %v1924_v5  ;;  %v2002_v63 = vld [vmem:[#allocation2 + $0x90] sm:$0xff]  ;;  %v2004_v13 = vsub.f32 0.0, %v116_v39  ;;  %v2010_v15 = vmul.f32 %v79_v57, %v1928_v7 }
  0x2a   :  { %5109 = vst [vmem:[#allocation17_spill] sm:$0xff] %v1997_v61  ;;  %v81_v9 = vld [vmem:[#allocation5 + $0x48] sm:$0xff]  ;;  %v82_v10 = vld [vmem:[#allocation5 + $0x50] sm:$0xff]  ;;  %5111 = vst [vmem:[#allocation19_spill] sm:$0xff] %v2007_v14  ;;  %v2013_v16 = vmul.f32 %v80_v58, %v1930_v8  ;;  %v120_v19 = vand.u32 2147483647, %v1971_v42 }
  0x2b   :  { %5110 = vst [vmem:[#allocation18_spill] sm:$0xff] %v2000_v62  ;;  %5112 = vst [vmem:[#allocation20_spill] sm:$0xff] %v2010_v15  ;;  %v83_v17 = vld [vmem:[#allocation5 + $0x58] sm:$0xff]  ;;  %v2016_v20 = vsub.f32 0.0, %v117_v45  ;;  %v168_v24 = vmul.f32 1.442695, %v136_v25  ;;  %v2019_v28 = vmul.f32 %v81_v9, %v1934_v11  ;;  %v2026_v44 = vmul.f32 %v82_v10, %v1936_v12 }
  0x2c   :  { %5113 = vst [vmem:[#allocation21_spill] sm:$0xff] %v2013_v16  ;;  %v2021_v33 = vld [vmem:[#allocation2 + $0x98] sm:$0xff]  ;;  %v84_v37 = vld [vmem:[#allocation5 + $0x60] sm:$0xff]  ;;  %v85_v38 = vld [vmem:[#allocation5 + $0x68] sm:$0xff]  ;;  %v2023_v39 = vsub.f32 0.0, %v118_v52  ;;  %v2029_v50 = vmul.f32 %v83_v17, %v1943_v18  ;;  %v2032_v25 = vsub.f32 0.0, %v119_v59 }
  0x2d   :  { %5114 = vst [vmem:[#allocation22_spill] sm:$0xff] %v2019_v28  ;;  %v170_v43 = vmul.f32 1.442695, %v137_v29  ;;  %5115 = vst [vmem:[#allocation23_spill] sm:$0xff] %v2026_v44  ;;  %v86_v51 = vld [vmem:[#allocation5 + $0x70] sm:$0xff]  ;;  %v2035_v57 = vmul.f32 %v84_v37, %v1948_v22  ;;  %v2037_v58 = vld [vmem:[#allocation2 + $0xa0] sm:$0xff]  ;;  %v2041_v10 = vmul.f32 %v85_v38, %v1950_v23  ;;  %1502 = vpow2.f32 %v168_v24 }
  0x2e   :  { %5116 = vst [vmem:[#allocation24_spill] sm:$0xff] %v2029_v50  ;;  %v121_v45 = vand.u32 2147483647, %v1982_v49  ;;  %v172_v56 = vmul.f32 1.442695, %v138_v30  ;;  %v87_v52 = vld [vmem:[#allocation5 + $0x78] sm:$0xff]  ;;  %v2044_v17 = vmul.f32 %v86_v51, %v1954_v27 }
  0x2f   :  { %5117 = vst [vmem:[#allocation25_spill] sm:$0xff] %v2035_v57  ;;  %v122_v29 = vand.u32 2147483647, %v2002_v63  ;;  %v174_v9 = vmul.f32 1.442695, %v139_v31  ;;  %5118 = vst [vmem:[#allocation26_spill] sm:$0xff] %v2041_v10  ;;  %v2054_v57 = vmul.f32 %v87_v52, %v1957_v32  ;;  %1504 = vpow2.f32 %v170_v43 }
  0x30   :  { %5119 = vst [vmem:[#allocation27_spill] sm:$0xff] %v2044_v17  ;;  %v2046_v26 = vld [vmem:[#allocation2 + $0xa8] sm:$0xff]  ;;  %v2048_v59 = vld [vmem:[#allocation2 + $0xb0] sm:$0xff]  ;;  %v88_v30 = vld [vmem:[#allocation5 + $0x80] sm:$0xff]  ;;  %v2050_v21 = vsub.f32 0.0, %v120_v19  ;;  %1506 = vpow2.f32 %v172_v56  ;;  %s1862_s21 = scalar_lea.vmem %s1488_s1, 128 }
  0x31   :  { %v176_v37 = vmul.f32 1.442695, %v1960_v34  ;;  %5120 = vst [vmem:[#allocation28_spill] sm:$0xff] %v2054_v57  ;;  %v2056_v31 = vld [vmem:[#allocation2 + $0xb8] sm:$0xff]  ;;  %v89_v38 = vld [vmem:[#allocation5 + $0x88] sm:$0xff]  ;;  %v2061_v17 = vmul.f32 %v88_v30, %v1971_v42  ;;  %v2063_v50 = vld [vmem:[#allocation2 + $0xc0] sm:$0xff]  ;;  %1508 = vpow2.f32 %v174_v9  ;;  %p1863_p10 = scmp.ne.s32.totalorder %s1488_s1, %s1862_s21  ;;  %p1868_p12 = scmp.lt.s32.totalorder %s1862_s21, %s1862_s21 }
  0x32   :  { %v123_v10 = vand.u32 2147483647, %v2021_v33  ;;  %v178_v51 = vmul.f32 1.442695, %v1962_v35  ;;  %v2065_v19 = vld [vmem:[#allocation2 + $0xc8] sm:$0xff]  ;;  %v90_v24 = vld [vmem:[#allocation5 + $0x90] sm:$0xff]  ;;  %v2069_v57 = vmul.f32 %v89_v38, %v1982_v49 }
  0x33   :  { %5121 = vst [vmem:[#allocation29_spill] sm:$0xff] %v2061_v17  ;;  %5122 = vst [vmem:[#allocation30_spill] sm:$0xff] %v2065_v19  ;;  %v153_v34 = vsub.f32 0.0, %v121_v45  ;;  %v180_v52 = vmul.f32 1.442695, %v1964_v36  ;;  %v2071_v44 = vld [vmem:[#allocation2 + $0xd0] sm:$0xff]  ;;  %v2078_v17 = vmul.f32 %v90_v24, %v2002_v63  ;;  %1510 = vpow2.f32 %v176_v37  ;;  %p1869_p13 = por %p1868_p12, %p1867_p11 }
  0x34   :  { %5123 = vst [vmem:[#allocation31_spill] sm:$0xff] %v2069_v57  ;;  %5124 = vst [vmem:[#allocation32_spill] sm:$0xff] %v2071_v44  ;;  %v2073_v43 = vld [vmem:[#allocation2 + $0xd8] sm:$0xff]  ;;  %v124_v35 = vand.u32 2147483647, %v2037_v58  ;;  %v2080_v28 = vld [vmem:[#allocation2 + $0xe0] sm:$0xff]  ;;  %1512 = vpow2.f32 %v178_v51 }
  0x35   :  { %v182_v30 = vmul.f32 1.442695, %v1967_v40  ;;  %5125 = vst [vmem:[#allocation33_spill] sm:$0xff] %v2078_v17  ;;  %5126 = vst [vmem:[#allocation34_spill] sm:$0xff] %v2080_v28  ;;  %v91_v45 = vld [vmem:[#allocation5 + $0x98] sm:$0xff]  ;;  %v154_v56 = vsub.f32 0.0, %v122_v29  ;;  %1514 = vpow2.f32 %v180_v52  ;;  %p1870_p0 = pnand %p1869_p13, %p1863_p10 }
  0x36   :  { %v125_v36 = vand.u32 2147483647, %v2046_v26  ;;  %v184_v38 = vmul.f32 1.442695, %v1969_v41  ;;  %v2084_v57 = vld [vmem:[#allocation2 + $0xe8] sm:$0xff]  ;;  %v2086_v16 = vld [vmem:[#allocation2 + $0xf0] sm:$0xff]  ;;  %v2091_v24 = vmul.f32 %v91_v45, %v2021_v33 }
  0x37   :  { %5127 = vst [vmem:[#allocation35_spill] sm:$0xff] %v2084_v57  ;;  %5128 = vst [vmem:[#allocation36_spill] sm:$0xff] %v2086_v16  ;;  %v92_v15 = vld [vmem:[#allocation5 + $0xa0] sm:$0xff]  ;;  %v126_v9 = vand.u32 2147483647, %v2048_v59  ;;  %v2096_v37 = vld [vmem:[#allocation2 + $0xf8] sm:$0xff]  ;;  %1516 = vpow2.f32 %v182_v30 }
  0x38   :  { %v186_v40 = vmul.f32 1.442695, %v1974_v46  ;;  %5129 = vst [vmem:[#allocation37_spill] sm:$0xff] %v2091_v24  ;;  %v127_v17 = vand.u32 2147483647, %v2056_v31  ;;  %5130 = vst [vmem:[#allocation38_spill] sm:$0xff] %v2096_v37  ;;  %v2101_v46 = vmul.f32 %v92_v15, %v2037_v58  ;;  %1518 = vpow2.f32 %v184_v38 }
  0x39   :  { %v128_v29 = vand.u32 2147483647, %v2063_v50  ;;  %v188_v41 = vmul.f32 1.442695, %v1985_v53  ;;  %v93_v14 = vld [vmem:[#allocation5 + $0xa8] sm:$0xff]  ;;  %v155_v38 = vsub.f32 0.0, %v123_v10 }
  0x3a   :  { %v129_v62 = vand.u32 2147483647, %v2065_v19  ;;  %v190_v51 = vmul.f32 1.442695, %v1994_v60  ;;  %5131 = vst [vmem:[#allocation39_spill] sm:$0xff] %v2101_v46  ;;  %1520 = vpow2.f32 %v186_v40  ;;  %v2109_v55 = vmul.f32 %v93_v14, %v2046_v26  ;;  %v2117_v14 = vpop.eup %1502 }
  0x3b   :  { %v130_v45 = vand.u32 2147483647, %v2071_v44  ;;  %v131_v24 = vand.u32 2147483647, %v2073_v43  ;;  %v192_v52 = vmul.f32 1.442695, %v2004_v13  ;;  %1522 = vpow2.f32 %v188_v41 }
  0x3c   :  { %v132_v53 = vand.u32 2147483647, %v2080_v28  ;;  %v194_v61 = vmul.f32 1.442695, %v2016_v20  ;;  %5132 = vst [vmem:[#allocation40_spill] sm:$0xff] %v2109_v55  ;;  %1524 = vpow2.f32 %v190_v51  ;;  %v156_v54 = vsub.f32 0.0, %v124_v35  ;;  %v2119_v41 = vpop.eup %1504 }
  0x3d   :  { %v133_v60 = vand.u32 2147483647, %v2084_v57  ;;  %v134_v15 = vand.u32 2147483647, %v2086_v16  ;;  %v196_v30 = vmul.f32 1.442695, %v2023_v39  ;;  %1526 = vpow2.f32 %v192_v52  ;;  %v2121_v51 = vpop.eup %1506 }
  0x3e   :  { %v135_v46 = vand.u32 2147483647, %v2096_v37  ;;  %v198_v13 = vmul.f32 1.442695, %v2032_v25  ;;  %v157_v40 = vsub.f32 0.0, %v125_v36  ;;  %5133 = vst [vmem:[#allocation41_spill] sm:$0xff] %v2117_v14  ;;  %1528 = vpow2.f32 %v194_v61  ;;  %v2123_v52 = vpop.eup %1508 }
  0x3f   :  { %v200_v20 = vmul.f32 1.442695, %v2050_v21  ;;  %v158_v55 = vsub.f32 0.0, %v126_v9  ;;  %v159_v1 = vsub.f32 0.0, %v127_v17  ;;  %v202_v48 = vmul.f32 1.442695, %v153_v34 }
  0x40   :  { %5134 = vst [vmem:[#allocation42_spill] sm:$0xff] %v2119_v41  ;;  %v160_v39 = vsub.f32 0.0, %v128_v29  ;;  %v161_v0 = vsub.f32 0.0, %v129_v62  ;;  %1530 = vpow2.f32 %v196_v30  ;;  %v204_v10 = vmul.f32 1.442695, %v154_v56  ;;  %5135 = vst [vmem:[#allocation43_spill] sm:$0xff] %v2121_v51  ;;  %v2125_v61 = vpop.eup %1510 }
  0x41   :  { %v162_v25 = vsub.f32 0.0, %v130_v45  ;;  %v163_v35 = vsub.f32 0.0, %v131_v24  ;;  %1532 = vpow2.f32 %v198_v13  ;;  %v206_v36 = vmul.f32 1.442695, %v155_v38  ;;  %5136 = vst [vmem:[#allocation44_spill] sm:$0xff] %v2123_v52  ;;  %5137 = vst [vmem:[#allocation45_spill] sm:$0xff] %v2125_v61  ;;  %v2127_v30 = vpop.eup %1512 }
  0x42   :  { %v164_v21 = vsub.f32 0.0, %v132_v53  ;;  %v165_v47 = vsub.f32 0.0, %v133_v60  ;;  %1534 = vpow2.f32 %v200_v20  ;;  %v208_v17 = vmul.f32 1.442695, %v156_v54  ;;  %v94_v34 = vld [vmem:[#allocation5 + $0xb0] sm:$0xff]  ;;  %v95_v9 = vld [vmem:[#allocation5 + $0xb8] sm:$0xff]  ;;  %v2135_v60 = vpop.eup %1514 }
  0x43   :  { %v166_v29 = vsub.f32 0.0, %v134_v15  ;;  %v167_v62 = vsub.f32 0.0, %v135_v46  ;;  %1536 = vpow2.f32 %v202_v48  ;;  %v210_v56 = vmul.f32 1.442695, %v157_v40  ;;  %5138 = vst [vmem:[#allocation46_spill] sm:$0xff] %v2127_v30  ;;  %5139 = vst [vmem:[#allocation47_spill] sm:$0xff] %v2135_v60 }
  0x44   :  { %1538 = vpow2.f32 %v204_v10  ;;  %v212_v24 = vmul.f32 1.442695, %v158_v55  ;;  %v2130_v45 = vmul.f32 %v94_v34, %v2048_v59  ;;  %v2133_v53 = vmul.f32 %v95_v9, %v2056_v31  ;;  %v2137_v15 = vpop.eup %1516 }
  0x45   :  { %1540 = vpow2.f32 %v206_v36  ;;  %v214_v54 = vmul.f32 1.442695, %v159_v1  ;;  %v216_v38 = vmul.f32 1.442695, %v160_v39  ;;  %v218_v13 = vmul.f32 1.442695, %v161_v0  ;;  %v2139_v20 = vpop.eup %1518 }
  0x46   :  { %5140 = vst [vmem:[#allocation48_spill] sm:$0xff] %v2137_v15  ;;  %1542 = vpow2.f32 %v208_v17  ;;  %v220_v48 = vmul.f32 1.442695, %v162_v25  ;;  %v222_v46 = vmul.f32 1.442695, %v163_v35  ;;  %5141 = vst [vmem:[#allocation49_spill] sm:$0xff] %v2139_v20 }
  0x47   :  { %v224_v40 = vmul.f32 1.442695, %v164_v21  ;;  %1544 = vpow2.f32 %v210_v56  ;;  %v226_v55 = vmul.f32 1.442695, %v165_v47  ;;  %v228_v10 = vmul.f32 1.442695, %v166_v29  ;;  %v2141_v9 = vpop.eup %1520 }
  0x48   :  { %v230_v34 = vmul.f32 1.442695, %v167_v62  ;;  %5142 = vst [vmem:[#allocation50_spill] sm:$0xff] %v2141_v9  ;;  %1546 = vpow2.f32 %v212_v24  ;;  %v2146_v39 = vpop.eup %1522  ;;  %v2220_v17 = vadd.f32 1.0, %v2137_v15  ;;  %v2230_v24 = vadd.f32 1.0, %v2139_v20  ;;  %v101_v29 = vld [vmem:[#allocation5 + $0xe8] sm:$0xff] }
  0x49   :  { %5143 = vst [vmem:[#allocation51_spill] sm:$0xff] %v2146_v39  ;;  %1548 = vpow2.f32 %v214_v54  ;;  %v2151_v21 = vpop.eup %1524  ;;  %v100_v54 = vld [vmem:[#allocation5 + $0xe0] sm:$0xff] }
  0x4a   :  { %5144 = vst [vmem:[#allocation52_spill] sm:$0xff] %v2151_v21  ;;  %1550 = vpow2.f32 %v216_v38  ;;  %v2156_v56 = vpop.eup %1526  ;;  %5162 = vst [vmem:[#allocation70_spill] sm:$0xff] %v2220_v17 }
  0x4b   :  { %5145 = vst [vmem:[#allocation53_spill] sm:$0xff] %v2156_v56  ;;  %1552 = vpow2.f32 %v218_v13  ;;  %v2161_v25 = vpop.eup %1528  ;;  %v2169_v13 = vadd.f32 1.0, %v2117_v14  ;;  %v2242_v14 = vadd.f32 1.0, %v2141_v9 }
  0x4c   :  { %5146 = vst [vmem:[#allocation54_spill] sm:$0xff] %v2161_v25  ;;  %1554 = vpow2.f32 %v220_v48  ;;  %v2176_v48 = vadd.f32 1.0, %v2119_v41 }
  0x4d   :  { %v2166_v47 = vpop.eup %1530  ;;  %1556 = vpow2.f32 %v222_v46  ;;  %5148 = vst [vmem:[#allocation56_spill] sm:$0xff] %v2169_v13  ;;  %v2183_v46 = vadd.f32 1.0, %v2121_v51 }
  0x4e   :  { %5147 = vst [vmem:[#allocation55_spill] sm:$0xff] %v2166_v47  ;;  %v2173_v35 = vpop.eup %1532  ;;  %1558 = vpow2.f32 %v224_v40  ;;  %5150 = vst [vmem:[#allocation58_spill] sm:$0xff] %v2176_v48  ;;  %v2190_v40 = vadd.f32 1.0, %v2123_v52  ;;  %v97_v52 = vld [vmem:[#allocation5 + $0xc8] sm:$0xff] }
  0x4f   :  { %5149 = vst [vmem:[#allocation57_spill] sm:$0xff] %v2173_v35  ;;  %v2180_v38 = vpop.eup %1534  ;;  %1560 = vpow2.f32 %v226_v55  ;;  %5152 = vst [vmem:[#allocation60_spill] sm:$0xff] %v2183_v46  ;;  %v2197_v55 = vadd.f32 1.0, %v2125_v61  ;;  %v2212_v61 = vadd.f32 1.0, %v2135_v60  ;;  %v2234_v41 = vmul.f32 %v97_v52, %v2065_v19  ;;  %v103_v19 = vld [vmem:[#allocation5 + $0xf8] sm:$0xff] }
  0x50   :  { %5151 = vst [vmem:[#allocation59_spill] sm:$0xff] %v2180_v38  ;;  %v2187_v62 = vpop.eup %1536  ;;  %1562 = vpow2.f32 %v228_v10  ;;  %5154 = vst [vmem:[#allocation62_spill] sm:$0xff] %v2190_v40  ;;  %v2204_v10 = vadd.f32 1.0, %v2127_v30 }
  0x51   :  { %5153 = vst [vmem:[#allocation61_spill] sm:$0xff] %v2187_v62  ;;  %v2194_v0 = vpop.eup %1538  ;;  %1564 = vpow2.f32 %v230_v34  ;;  %5156 = vst [vmem:[#allocation64_spill] sm:$0xff] %v2197_v55  ;;  %v96_v34 = vld [vmem:[#allocation5 + $0xc0] sm:$0xff] }
  0x52   :  { %5155 = vst [vmem:[#allocation63_spill] sm:$0xff] %v2194_v0  ;;  %v2201_v1 = vpop.eup %1540  ;;  %5158 = vst [vmem:[#allocation66_spill] sm:$0xff] %v2204_v10  ;;  %1566 = vrcp.f32 %v2169_v13  ;;  %v98_v13 = vld [vmem:[#allocation5 + $0xd0] sm:$0xff]  ;;  %v2225_v60 = vmul.f32 %v96_v34, %v2063_v50 }
  0x53   :  { %5157 = vst [vmem:[#allocation65_spill] sm:$0xff] %v2201_v1  ;;  %v2209_v36 = vpop.eup %1542  ;;  %5160 = vst [vmem:[#allocation68_spill] sm:$0xff] %v2212_v61  ;;  %1568 = vrcp.f32 %v2176_v48  ;;  %v99_v48 = vld [vmem:[#allocation5 + $0xd8] sm:$0xff]  ;;  %v2237_v15 = vmul.f32 %v98_v13, %v2071_v44  ;;  %v102_v34 = vld [vmem:[#allocation5 + $0xf0] sm:$0xff]  ;;  %v2254_v13 = vadd.f32 1.0, %v2146_v39  ;;  %v2258_v44 = vmul.f32 %v101_v29, %v2084_v57 }
  0x54   :  { %5159 = vst [vmem:[#allocation67_spill] sm:$0xff] %v2209_v36  ;;  %v2217_v30 = vpop.eup %1544  ;;  %1570 = vrcp.f32 %v2183_v46  ;;  %v2246_v20 = vmul.f32 %v99_v48, %v2073_v43  ;;  %v2261_v9 = vmul.f32 %v102_v34, %v2086_v16  ;;  %v2266_v48 = vadd.f32 1.0, %v2151_v21  ;;  %v5169_v39 = vld [vmem:[#allocation13_spill] sm:$0xff]  ;;  %v5174_v16 = vld [vmem:[#allocation14_spill] sm:$0xff]  ;;  %v5175_v21 = vld [vmem:[#allocation12_spill] sm:$0xff] }
  0x55   :  { %5161 = vst [vmem:[#allocation69_spill] sm:$0xff] %v2217_v30  ;;  %v2227_v51 = vpop.eup %1546  ;;  %1572 = vrcp.f32 %v2190_v40  ;;  %v2249_v40 = vmul.f32 %v100_v54, %v2080_v28  ;;  %v2270_v54 = vmul.f32 %v103_v19, %v2096_v37  ;;  %v5170_v28 = vld [vmem:[#allocation11_spill] sm:$0xff]  ;;  %v2280_v34 = vadd.f32 1.0, %v2156_v56 }
  0x56   :  { %5163 = vst [vmem:[#allocation71_spill] sm:$0xff] %v2227_v51  ;;  %v2239_v46 = vpop.eup %1548  ;;  %1574 = vrcp.f32 %v2197_v55  ;;  %5167 = vst [vmem:[#allocation75_spill] sm:$0xff] %v2261_v9  ;;  %v5176_v9 = vmax.f32 %v5175_v21, 0.0  ;;  %v5179_v19 = vmax.f32 %v1918_v2, 0.0  ;;  %v5185_v21 = vld [vmem:[#allocation17_spill] sm:$0xff] }
  0x57   :  { %5164 = vst [vmem:[#allocation72_spill] sm:$0xff] %v2239_v46  ;;  %5165 = vst [vmem:[#allocation73_spill] sm:$0xff] %v2249_v40  ;;  %v2251_v52 = vpop.eup %1550  ;;  %1576 = vrcp.f32 %v2204_v10  ;;  %v5171_v40 = vmax.f32 %v5170_v28, 0.0 }
  0x58   :  { %5166 = vst [vmem:[#allocation74_spill] sm:$0xff] %v2251_v52  ;;  %v2263_v55 = vpop.eup %1552  ;;  %1578 = vrcp.f32 %v2212_v61  ;;  %v2286_v57 = vsub.f32 %v5176_v9, %v5174_v16  ;;  %v5178_v61 = vld [vmem:[#allocation15_spill] sm:$0xff]  ;;  %v5186_v16 = vmax.f32 %v1922_v4, 0.0 }
  0x59   :  { %5168 = vst [vmem:[#allocation76_spill] sm:$0xff] %v2263_v55  ;;  %v2275_v10 = vsub.f32 %v5171_v40, %v5169_v39  ;;  %v2277_v29 = vpop.eup %1554  ;;  %1580 = vrcp.f32 %v2220_v17  ;;  %v2291_v37 = vsub.f32 %v5179_v19, %v5178_v61  ;;  %v2296_v39 = vadd.f32 1.0, %v2161_v25  ;;  %v5182_v40 = vld [vmem:[#allocation16_spill] sm:$0xff]  ;;  %v5189_v19 = vld [vmem:[#allocation18_spill] sm:$0xff] }
  0x5a   :  { %5173 = vst [vmem:[#allocation11_spill] sm:$0xff] %v2277_v29  ;;  %5177 = vst [vmem:[#allocation14_spill] sm:$0xff] %v2286_v57  ;;  %v2293_v28 = vpop.eup %1556  ;;  %1582 = vrcp.f32 %v2230_v24  ;;  %v2307_v9 = vsub.f32 %v5186_v16, %v5185_v21  ;;  %v2312_v61 = vadd.f32 1.0, %v2166_v47  ;;  %v2328_v21 = vadd.f32 1.0, %v2173_v35  ;;  %v5196_v16 = vld [vmem:[#allocation20_spill] sm:$0xff] }
  0x5b   :  { %5172 = vst [vmem:[#allocation13_spill] sm:$0xff] %v2275_v10  ;;  %5180 = vst [vmem:[#allocation12_spill] sm:$0xff] %v2291_v37  ;;  %v5183_v10 = vmax.f32 %v1920_v3, 0.0  ;;  %v2309_v2 = vpop.eup %1558  ;;  %1584 = vrcp.f32 %v2242_v14  ;;  %v5190_v37 = vmax.f32 %v1924_v5, 0.0  ;;  %v5192_v3 = vld [vmem:[#allocation19_spill] sm:$0xff]  ;;  %v5199_v5 = vld [vmem:[#allocation21_spill] sm:$0xff] }
  0x5c   :  { %5181 = vst [vmem:[#allocation15_spill] sm:$0xff] %v2293_v28  ;;  %5187 = vst [vmem:[#allocation17_spill] sm:$0xff] %v2307_v9  ;;  %v2325_v4 = vpop.eup %1560  ;;  %1586 = vrcp.f32 %v2254_v13  ;;  %v5197_v9 = vmax.f32 %v1928_v7, 0.0  ;;  %v5206_v7 = vld [vmem:[#allocation23_spill] sm:$0xff] }
  0x5d   :  { %v2302_v17 = vsub.f32 %v5183_v10, %v5182_v40  ;;  %5188 = vst [vmem:[#allocation77_spill] sm:$0xff] %v2309_v2  ;;  %v2318_v57 = vsub.f32 %v5190_v37, %v5189_v19  ;;  %v5193_v10 = vmax.f32 %v1926_v6, 0.0  ;;  %5195 = vst [vmem:[#allocation78_spill] sm:$0xff] %v2325_v4  ;;  %v5200_v37 = vmax.f32 %v1930_v8, 0.0  ;;  %v2341_v6 = vpop.eup %1562 }
  0x5e   :  { %5202 = vst [vmem:[#allocation79_spill] sm:$0xff] %v2341_v6  ;;  %1588 = vrcp.f32 %v2266_v48  ;;  %v2357_v8 = vpop.eup %1564 }
  0x5f   :  { %5184 = vst [vmem:[#allocation16_spill] sm:$0xff] %v2302_v17  ;;  %5191 = vst [vmem:[#allocation18_spill] sm:$0xff] %v2318_v57  ;;  %v2323_v40 = vsub.f32 %v5193_v10, %v5192_v3  ;;  %v2334_v17 = vsub.f32 %v5197_v9, %v5196_v16  ;;  %v2339_v19 = vsub.f32 %v5200_v37, %v5199_v5  ;;  %v2344_v3 = vadd.f32 1.0, %v2180_v38  ;;  %v5203_v10 = vld [vmem:[#allocation22_spill] sm:$0xff]  ;;  %v5210_v37 = vld [vmem:[#allocation24_spill] sm:$0xff] }
  0x60   :  { %v5207_v9 = vmax.f32 %v1936_v12, 0.0  ;;  %5209 = vst [vmem:[#allocation80_spill] sm:$0xff] %v2357_v8  ;;  %v2360_v5 = vadd.f32 1.0, %v2187_v62  ;;  %1590 = vrcp.f32 %v2280_v34  ;;  %v2373_v12 = vpop.eup %1566 }
  0x61   :  { %5194 = vst [vmem:[#allocation19_spill] sm:$0xff] %v2323_v40  ;;  %5198 = vst [vmem:[#allocation20_spill] sm:$0xff] %v2334_v17  ;;  %v5204_v40 = vmax.f32 %v1934_v11, 0.0  ;;  %v5213_v11 = vld [vmem:[#allocation25_spill] sm:$0xff]  ;;  %1592 = vrcp.f32 %v2296_v39 }
  0x62   :  { %5201 = vst [vmem:[#allocation21_spill] sm:$0xff] %v2339_v19  ;;  %v2355_v16 = vsub.f32 %v5207_v9, %v5206_v7  ;;  %v5211_v19 = vmax.f32 %v1943_v18, 0.0  ;;  %5216 = vst [vmem:[#allocation81_spill] sm:$0xff] %v2373_v12  ;;  %v2376_v7 = vadd.f32 1.0, %v2194_v0  ;;  %v5217_v9 = vld [vmem:[#allocation26_spill] sm:$0xff]  ;;  %v5220_v18 = vld [vmem:[#allocation27_spill] sm:$0xff]  ;;  %1594 = vrcp.f32 %v2312_v61 }
  0x63   :  { %v2350_v57 = vsub.f32 %v5204_v40, %v5203_v10  ;;  %v5214_v40 = vmax.f32 %v1948_v22, 0.0  ;;  %v2389_v22 = vpop.eup %1568  ;;  %v5225_v12 = vmax.f32 %v1957_v32, 0.0  ;;  %1596 = vrcp.f32 %v2328_v21  ;;  %v5234_v32 = vld [vmem:[#allocation33_spill] sm:$0xff] }
  0x64   :  { %5208 = vst [vmem:[#allocation23_spill] sm:$0xff] %v2355_v16  ;;  %v2366_v17 = vsub.f32 %v5211_v19, %v5210_v37  ;;  %v5218_v16 = vmax.f32 %v1950_v23, 0.0  ;;  %v5221_v19 = vmax.f32 %v1954_v27, 0.0  ;;  %5223 = vst [vmem:[#allocation82_spill] sm:$0xff] %v2389_v22  ;;  %v5227_v23 = vld [vmem:[#allocation29_spill] sm:$0xff]  ;;  %v2405_v27 = vpop.eup %1570  ;;  %v5232_v22 = vmax.f32 %v1982_v49, 0.0 }
  0x65   :  { %5205 = vst [vmem:[#allocation22_spill] sm:$0xff] %v2350_v57  ;;  %v2371_v10 = vsub.f32 %v5214_v40, %v5213_v11  ;;  %v2392_v11 = vadd.f32 1.0, %v2201_v1  ;;  %v5224_v40 = vld [vmem:[#allocation28_spill] sm:$0xff]  ;;  %5230 = vst [vmem:[#allocation83_spill] sm:$0xff] %v2405_v27  ;;  %1598 = vrcp.f32 %v2344_v3  ;;  %v5239_v27 = vmax.f32 %v2021_v33, 0.0  ;;  %v5241_v49 = vld [vmem:[#allocation39_spill] sm:$0xff] }
  0x66   :  { %5212 = vst [vmem:[#allocation24_spill] sm:$0xff] %v2366_v17  ;;  %v2382_v57 = vsub.f32 %v5218_v16, %v5217_v9  ;;  %v2387_v37 = vsub.f32 %v5221_v19, %v5220_v18  ;;  %v5228_v16 = vmax.f32 %v1971_v42, 0.0  ;;  %v2408_v18 = vadd.f32 1.0, %v2209_v36  ;;  %v5231_v19 = vld [vmem:[#allocation31_spill] sm:$0xff]  ;;  %v2421_v42 = vpop.eup %1572 }
  0x67   :  { %5215 = vst [vmem:[#allocation25_spill] sm:$0xff] %v2371_v10  ;;  %v2398_v10 = vsub.f32 %v5225_v12, %v5224_v40  ;;  %v5235_v12 = vmax.f32 %v2002_v63, 0.0  ;;  %5237 = vst [vmem:[#allocation84_spill] sm:$0xff] %v2421_v42  ;;  %v2437_v63 = vpop.eup %1574  ;;  %1600 = vrcp.f32 %v2360_v5  ;;  %v5246_v42 = vmax.f32 %v2046_v26, 0.0  ;;  %v5300_v17 = vld [vmem:[#allocation47_spill] sm:$0xff] }
  0x68   :  { %5219 = vst [vmem:[#allocation26_spill] sm:$0xff] %v2382_v57  ;;  %5222 = vst [vmem:[#allocation27_spill] sm:$0xff] %v2387_v37  ;;  %v2403_v9 = vsub.f32 %v5228_v16, %v5227_v23  ;;  %v2414_v37 = vsub.f32 %v5232_v22, %v5231_v19  ;;  %v2424_v23 = vadd.f32 1.0, %v2217_v30  ;;  %v5238_v16 = vld [vmem:[#allocation37_spill] sm:$0xff]  ;;  %v5242_v22 = vmax.f32 %v2037_v58, 0.0  ;;  %v2453_v58 = vpop.eup %1576 }
  0x69   :  { %5226 = vst [vmem:[#allocation28_spill] sm:$0xff] %v2398_v10  ;;  %v2419_v40 = vsub.f32 %v5235_v12, %v5234_v32  ;;  %5244 = vst [vmem:[#allocation85_spill] sm:$0xff] %v2437_v63  ;;  %v2440_v32 = vadd.f32 1.0, %v2227_v51  ;;  %v5245_v12 = vld [vmem:[#allocation40_spill] sm:$0xff]  ;;  %v5248_v33 = vmax.f32 %v2048_v59, 0.0  ;;  %1602 = vrcp.f32 %v2376_v7  ;;  %v2469_v59 = vpop.eup %1578 }
  0x6a   :  { %5229 = vst [vmem:[#allocation29_spill] sm:$0xff] %v2403_v9  ;;  %5233 = vst [vmem:[#allocation31_spill] sm:$0xff] %v2414_v37  ;;  %v2430_v9 = vsub.f32 %v5239_v27, %v5238_v16  ;;  %v2435_v19 = vsub.f32 %v5242_v22, %v5241_v49  ;;  %v2456_v16 = vadd.f32 1.0, %v2239_v46  ;;  %v5251_v49 = vmax.f32 %v2056_v31, 0.0  ;;  %v5259_v31 = vld [vmem:[#allocation32_spill] sm:$0xff] }
  0x6b   :  { %5236 = vst [vmem:[#allocation33_spill] sm:$0xff] %v2419_v40  ;;  %v2446_v40 = vsub.f32 %v5246_v42, %v5245_v12  ;;  %v2451_v27 = vsub.f32 %v5248_v33, %v2130_v45  ;;  %5250 = vst [vmem:[#allocation87_spill] sm:$0xff] %v2453_v58  ;;  %v5253_v26 = vmax.f32 %v2063_v50, 0.0  ;;  %v2472_v45 = vadd.f32 1.0, %v2251_v52  ;;  %v5256_v12 = vld [vmem:[#allocation30_spill] sm:$0xff]  ;;  %v2485_v50 = vpop.eup %1580 }
  0x6c   :  { %5240 = vst [vmem:[#allocation37_spill] sm:$0xff] %v2430_v9  ;;  %5243 = vst [vmem:[#allocation39_spill] sm:$0xff] %v2435_v19  ;;  %v2462_v22 = vsub.f32 %v5251_v49, %v2133_v53  ;;  %1604 = vrcp.f32 %v2392_v11  ;;  %v5257_v33 = vmax.f32 %v5256_v12, 0.0  ;;  %v5260_v53 = vmax.f32 %v5259_v31, 0.0  ;;  %v5266_v12 = vld [vmem:[#allocation41_spill] sm:$0xff]  ;;  %v5288_v9 = vld [vmem:[#allocation44_spill] sm:$0xff] }
  0x6d   :  { %5247 = vst [vmem:[#allocation40_spill] sm:$0xff] %v2446_v40  ;;  %5249 = vst [vmem:[#allocation86_spill] sm:$0xff] %v2451_v27  ;;  %v2467_v42 = vsub.f32 %v5253_v26, %v2225_v60  ;;  %v2488_v60 = vadd.f32 1.0, %v2263_v55  ;;  %1606 = vrcp.f32 %v2408_v18  ;;  %v5264_v26 = vmax.f32 %v2073_v43, 0.0  ;;  %v5287_v40 = vld [vmem:[#allocation43_spill] sm:$0xff]  ;;  %v5314_v55 = vld [vmem:[#allocation52_spill] sm:$0xff] }
  0x6e   :  { %5252 = vst [vmem:[#allocation88_spill] sm:$0xff] %v2462_v22  ;;  %5255 = vst [vmem:[#allocation90_spill] sm:$0xff] %v2469_v59  ;;  %v2478_v58 = vsub.f32 %v5257_v33, %v2234_v41  ;;  %v2483_v49 = vsub.f32 %v5260_v53, %v2237_v15  ;;  %v427_v41 = vmul.f32 -0.5, %v5266_v12  ;;  %v2497_v33 = vpop.eup %1582  ;;  %v2500_v31 = vadd.f32 1.0, %v2277_v29  ;;  %v5269_v15 = vld [vmem:[#allocation73_spill] sm:$0xff]  ;;  %v5270_v53 = vld [vmem:[#allocation34_spill] sm:$0xff] }
  0x6f   :  { %5254 = vst [vmem:[#allocation89_spill] sm:$0xff] %v2467_v42  ;;  %5262 = vst [vmem:[#allocation91_spill] sm:$0xff] %v2485_v50  ;;  %v2494_v59 = vsub.f32 %v5264_v26, %v2246_v20  ;;  %1608 = vrcp.f32 %v2424_v23  ;;  %v5271_v50 = vmax.f32 %v5270_v53, 0.0  ;;  %v2509_v42 = vpop.eup %1584  ;;  %v2512_v43 = vadd.f32 1.0, %v2293_v28  ;;  %v5276_v20 = vld [vmem:[#allocation35_spill] sm:$0xff]  ;;  %v5280_v22 = vld [vmem:[#allocation36_spill] sm:$0xff] }
  0x70   :  { %5258 = vst [vmem:[#allocation30_spill] sm:$0xff] %v2478_v58  ;;  %5261 = vst [vmem:[#allocation32_spill] sm:$0xff] %v2483_v49  ;;  %v5273_v49 = vld [vmem:[#allocation42_spill] sm:$0xff]  ;;  %1610 = vrcp.f32 %v2440_v32  ;;  %v5277_v26 = vmax.f32 %v5276_v20, 0.0  ;;  %v5281_v27 = vmax.f32 %v5280_v22, 0.0  ;;  %v445_v19 = vmul.f32 -0.5, %v5287_v40 }
  0x71   :  { %5263 = vst [vmem:[#allocation92_spill] sm:$0xff] %v2488_v60  ;;  %5265 = vst [vmem:[#allocation93_spill] sm:$0xff] %v2494_v59  ;;  %v2506_v63 = vsub.f32 %v5271_v50, %v5269_v15  ;;  %v436_v58 = vmul.f32 -0.5, %v5273_v49  ;;  %v5279_v59 = vld [vmem:[#allocation75_spill] sm:$0xff]  ;;  %v2525_v50 = vpop.eup %1586  ;;  %1612 = vrcp.f32 %v2456_v16  ;;  %v5284_v15 = vld [vmem:[#allocation38_spill] sm:$0xff]  ;;  %v454_v20 = vmul.f32 -0.5, %v5288_v9 }
  0x72   :  { %5267 = vst [vmem:[#allocation94_spill] sm:$0xff] %v2497_v33  ;;  %5268 = vst [vmem:[#allocation95_spill] sm:$0xff] %v2500_v31  ;;  %v2518_v33 = vsub.f32 %v5277_v26, %v2258_v44  ;;  %v2523_v53 = vsub.f32 %v5281_v27, %v5279_v59  ;;  %v2535_v44 = vpop.eup %1588  ;;  %v2538_v26 = vadd.f32 1.0, %v2309_v2  ;;  %1614 = vrcp.f32 %v2472_v45  ;;  %v5291_v22 = vld [vmem:[#allocation45_spill] sm:$0xff]  ;;  %v5316_v52 = vld [vmem:[#allocation62_spill] sm:$0xff] }
  0x73   :  { %5272 = vst [vmem:[#allocation73_spill] sm:$0xff] %v2506_v63  ;;  %5274 = vst [vmem:[#allocation34_spill] sm:$0xff] %v2509_v42  ;;  %v5285_v42 = vmax.f32 %v5284_v15, 0.0  ;;  %v428_v27 = vadd.f32 1.0, %v427_v41  ;;  %v463_v59 = vmul.f32 -0.5, %v5291_v22  ;;  %v2545_v15 = vadd.f32 1.0, %v2325_v4 }
  0x74   :  { %5275 = vst [vmem:[#allocation96_spill] sm:$0xff] %v2512_v43  ;;  %5278 = vst [vmem:[#allocation35_spill] sm:$0xff] %v2518_v33  ;;  %1616 = vrcp.f32 %v2488_v60  ;;  %v446_v33 = vadd.f32 1.0, %v445_v19  ;;  %v455_v37 = vadd.f32 1.0, %v454_v20  ;;  %v5302_v20 = vld [vmem:[#allocation48_spill] sm:$0xff]  ;;  %v5304_v4 = vld [vmem:[#allocation49_spill] sm:$0xff] }
  0x75   :  { %5282 = vst [vmem:[#allocation75_spill] sm:$0xff] %v2523_v53  ;;  %5283 = vst [vmem:[#allocation36_spill] sm:$0xff] %v2525_v50  ;;  %v2531_v63 = vsub.f32 %v5285_v42, %v2270_v54  ;;  %v2542_v50 = vpop.eup %1590  ;;  %v437_v42 = vadd.f32 1.0, %v436_v58  ;;  %v2555_v53 = vadd.f32 1.0, %v2357_v8  ;;  %1618 = vrcp.f32 %v2500_v31  ;;  %v5298_v54 = vld [vmem:[#allocation46_spill] sm:$0xff] }
  0x76   :  { %5289 = vst [vmem:[#allocation97_spill] sm:$0xff] %v2535_v44  ;;  %5290 = vst [vmem:[#allocation98_spill] sm:$0xff] %v2538_v26  ;;  %v2552_v44 = vadd.f32 1.0, %v2341_v6  ;;  %1620 = vrcp.f32 %v2512_v43  ;;  %v472_v58 = vmul.f32 -0.5, %v5298_v54  ;;  %v464_v57 = vadd.f32 1.0, %v463_v59 }
  0x77   :  { %5286 = vst [vmem:[#allocation38_spill] sm:$0xff] %v2531_v63  ;;  %5292 = vst [vmem:[#allocation99_spill] sm:$0xff] %v2542_v50  ;;  %v2549_v63 = vpop.eup %1592  ;;  %1622 = vrcp.f32 %v2538_v26  ;;  %v481_v8 = vmul.f32 -0.5, %v5300_v17  ;;  %v2574_v41 = vmul.f32 %v5273_v49, %v437_v42  ;;  %v499_v2 = vmul.f32 -0.5, %v5304_v4 }
  0x78   :  { %5293 = vst [vmem:[#allocation100_spill] sm:$0xff] %v2545_v15  ;;  %5294 = vst [vmem:[#allocation101_spill] sm:$0xff] %v2549_v63  ;;  %v2559_v50 = vpop.eup %1594  ;;  %v2567_v63 = vmul.f32 %v5266_v12, %v428_v27  ;;  %1624 = vrcp.f32 %v2545_v15  ;;  %v2588_v42 = vmul.f32 %v5287_v40, %v446_v33  ;;  %v2591_v19 = vmul.f32 %v5288_v9, %v455_v37  ;;  %v5308_v15 = vld [vmem:[#allocation50_spill] sm:$0xff]  ;;  %v5311_v37 = vld [vmem:[#allocation51_spill] sm:$0xff] }
  0x79   :  { %5295 = vst [vmem:[#allocation102_spill] sm:$0xff] %v2552_v44  ;;  %5296 = vst [vmem:[#allocation103_spill] sm:$0xff] %v2555_v53  ;;  %v2563_v10 = vpop.eup %1596  ;;  %1626 = vrcp.f32 %v2552_v44  ;;  %v473_v28 = vadd.f32 1.0, %v472_v58  ;;  %v5307_v44 = vld [vmem:[#allocation56_spill] sm:$0xff]  ;;  %v2597_v27 = vmul.f32 %v5291_v22, %v464_v57  ;;  %v482_v59 = vadd.f32 1.0, %v481_v8 }
  0x7a   :  { %5297 = vst [vmem:[#allocation104_spill] sm:$0xff] %v2559_v50  ;;  %5299 = vst [vmem:[#allocation105_spill] sm:$0xff] %v2563_v10  ;;  %v2570_v6 = vpop.eup %1598  ;;  %v490_v50 = vmul.f32 -0.5, %v5302_v20  ;;  %1628 = vrcp.f32 %v2555_v53  ;;  %v508_v26 = vmul.f32 -0.5, %v5308_v15  ;;  %v5310_v53 = vld [vmem:[#allocation58_spill] sm:$0xff]  ;;  %v517_v29 = vmul.f32 -0.5, %v5311_v37 }
  0x7b   :  { %5301 = vst [vmem:[#allocation106_spill] sm:$0xff] %v2570_v6  ;;  %v2578_v10 = vpop.eup %1600  ;;  %1630 = vlog2.f32 %v5307_v44  ;;  %v500_v57 = vadd.f32 1.0, %v499_v2  ;;  %v526_v8 = vmul.f32 -0.5, %v5314_v55  ;;  %v535_v33 = vmul.f32 -0.5, %v2156_v56 }
  0x7c   :  { %5303 = vst [vmem:[#allocation107_spill] sm:$0xff] %v2578_v10  ;;  %v2584_v6 = vpop.eup %1602  ;;  %1632 = vlog2.f32 %v5310_v53  ;;  %v491_v43 = vadd.f32 1.0, %v490_v50  ;;  %v2614_v53 = vmul.f32 %v5298_v54, %v473_v28  ;;  %v509_v44 = vadd.f32 1.0, %v508_v26 }
  0x7d   :  { %5305 = vst [vmem:[#allocation108_spill] sm:$0xff] %v2584_v6  ;;  %v2593_v10 = vpop.eup %1604  ;;  %v544_v26 = vmul.f32 -0.5, %v2161_v25  ;;  %v553_v50 = vmul.f32 -0.5, %v2166_v47 }
  0x7e   :  { %5306 = vst [vmem:[#allocation109_spill] sm:$0xff] %v2593_v10  ;;  %v2600_v6 = vpop.eup %1606  ;;  %v5313_v10 = vld [vmem:[#allocation60_spill] sm:$0xff]  ;;  %5317 = vst [vmem:[#allocation62_spill] sm:$0xff] %v2614_v53  ;;  %v2629_v28 = vmul.f32 %v5302_v20, %v491_v43  ;;  %v518_v53 = vadd.f32 1.0, %v517_v29  ;;  %v571_v43 = vmul.f32 -0.5, %v2180_v38 }
  0x7f   :  { %5309 = vst [vmem:[#allocation56_spill] sm:$0xff] %v2600_v6  ;;  %v2605_v58 = vpop.eup %1608  ;;  %1634 = vlog2.f32 %v5313_v10  ;;  %v2622_v10 = vmul.f32 %v5300_v17, %v482_v59  ;;  %v2636_v59 = vmul.f32 %v5304_v4, %v500_v57 }
  0x80   :  { %5312 = vst [vmem:[#allocation58_spill] sm:$0xff] %v2605_v58  ;;  %v2610_v31 = vpop.eup %1610  ;;  %1636 = vlog2.f32 %v5316_v52  ;;  %v5319_v58 = vld [vmem:[#allocation64_spill] sm:$0xff]  ;;  %v5321_v52 = vld [vmem:[#allocation66_spill] sm:$0xff] }
  0x81   :  { %5315 = vst [vmem:[#allocation60_spill] sm:$0xff] %v2610_v31  ;;  %v2618_v6 = vpop.eup %1612  ;;  %1638 = vlog2.f32 %v5319_v58  ;;  %5322 = vst [vmem:[#allocation66_spill] sm:$0xff] %v2629_v28  ;;  %v527_v58 = vadd.f32 1.0, %v526_v8  ;;  %v562_v8 = vmul.f32 -0.5, %v2173_v35 }
  0x82   :  { %5318 = vst [vmem:[#allocation110_spill] sm:$0xff] %v2618_v6  ;;  %v2625_v31 = vpop.eup %1614  ;;  %1640 = vlog2.f32 %v5321_v52  ;;  %v5324_v6 = vld [vmem:[#allocation68_spill] sm:$0xff]  ;;  %v536_v52 = vadd.f32 1.0, %v535_v33  ;;  %v5336_v33 = vand.u32 2147483647, %v5273_v49  ;;  %v598_v49 = vmul.f32 -0.5, %v2201_v1 }
  0x83   :  { %5320 = vst [vmem:[#allocation64_spill] sm:$0xff] %v2625_v31  ;;  %v2632_v60 = vpop.eup %1616  ;;  %1642 = vlog2.f32 %v5324_v6  ;;  %v5326_v31 = vld [vmem:[#allocation70_spill] sm:$0xff]  ;;  %v2648_v6 = vmul.f32 %v5308_v15, %v509_v44  ;;  %v545_v44 = vadd.f32 1.0, %v544_v26  ;;  %v580_v26 = vmul.f32 -0.5, %v2187_v62 }
  0x84   :  { %5323 = vst [vmem:[#allocation111_spill] sm:$0xff] %v2632_v60  ;;  %v2639_v2 = vpop.eup %1618  ;;  %1644 = vlog2.f32 %v5326_v31  ;;  %v2656_v31 = vmul.f32 %v5311_v37, %v518_v53  ;;  %vm2677_vm1 = vcmp.lt.f32.partialorder %v5336_v33, 0.0004427343 }
  0x85   :  { %5325 = vst [vmem:[#allocation68_spill] sm:$0xff] %v2639_v2  ;;  %v2644_v29 = vpop.eup %1620  ;;  %1646 = vlog2.f32 %v2230_v24  ;;  %v2664_v24 = vmul.f32 %v5314_v55, %v527_v58  ;;  %v554_v58 = vadd.f32 1.0, %v553_v50  ;;  %v563_v2 = vadd.f32 1.0, %v562_v8 }
  0x86   :  { %5327 = vst [vmem:[#allocation70_spill] sm:$0xff] %v2644_v29  ;;  %v2652_v60 = vpop.eup %1622  ;;  %1648 = vlog2.f32 %v2242_v14  ;;  %5329 = vst [vmem:[#allocation113_spill] sm:$0xff] %v2656_v31  ;;  %v5333_v14 = vand.u32 2147483647, %v5266_v12  ;;  %v572_v50 = vadd.f32 1.0, %v571_v43  ;;  %v5346_v12 = vmov 0 }
  0x87   :  { %5328 = vst [vmem:[#allocation112_spill] sm:$0xff] %v2652_v60  ;;  %v2660_v29 = vpop.eup %1624  ;;  %1650 = vlog2.f32 %v2254_v13  ;;  %5331 = vst [vmem:[#allocation115_spill] sm:$0xff] %v2664_v24  ;;  %v2683_v13 = vmul.f32 %v2156_v56, %v536_v52  ;;  %v2713_v33 = vmul.f32 %v2166_v47, %v554_v58  ;;  %v5351_v24 = vand.u32 2147483647, %v5291_v22 }
  0x88   :  { %5330 = vst [vmem:[#allocation114_spill] sm:$0xff] %v2660_v29  ;;  %v2667_v60 = vpop.eup %1626  ;;  %vm2671_vm0 = vcmp.lt.f32.partialorder %v5333_v14, 0.0004427343  ;;  %v5337_v29 = vmov 0  ;;  %1652 = vlog2.f32 %v2266_v48  ;;  %v5342_v14 = vand.u32 2147483647, %v5287_v40 }
  0x89   :  { %5332 = vst [vmem:[#allocation116_spill] sm:$0xff] %v2667_v60  ;;  %v5338_v29 = vsel %vm2677_vm1, 4294967295, %v5337_v29  ;;  %5340 = vst [vmem:[#allocation118_spill] sm:$0xff] %v2683_v13  ;;  %v2686_v57 = vpop.eup %1628  ;;  %v5343_v60 = vmov 0  ;;  %1654 = vlog2.f32 %v2280_v34  ;;  %v589_v48 = vmul.f32 -0.5, %v2194_v0 }
  0x8a   :  { %5339 = vst [vmem:[#allocation117_spill] sm:$0xff] %v5338_v29  ;;  %5341 = vst [vmem:[#allocation119_spill] sm:$0xff] %v2686_v57  ;;  %vm2690_vm2 = vcmp.lt.f32.partialorder %v5342_v14, 0.0004427343  ;;  %v1631_v52 = vpop.eup %1630  ;;  %1656 = vlog2.f32 %v2296_v39  ;;  %v607_v57 = vmul.f32 -0.5, %v2209_v36  ;;  %v2707_v34 = vmul.f32 %v2161_v25, %v545_v44 }
  0x8b   :  { %v5344_v60 = vsel %vm2690_vm2, 4294967295, %v5343_v60  ;;  %v1633_v40 = vpop.eup %1632  ;;  %v5345_v14 = vand.u32 2147483647, %v5288_v9  ;;  %1658 = vlog2.f32 %v2312_v61  ;;  %v616_v39 = vmul.f32 -0.5, %v2217_v30  ;;  %5350 = vst [vmem:[#allocation122_spill] sm:$0xff] %v2713_v33 }
  0x8c   :  { %5349 = vst [vmem:[#allocation121_spill] sm:$0xff] %v2707_v34  ;;  %v1635_v43 = vpop.eup %1634  ;;  %1660 = vlog2.f32 %v2328_v21  ;;  %v581_v9 = vadd.f32 1.0, %v580_v26  ;;  %vm2719_vm4 = vcmp.lt.f32.partialorder %v5351_v24, 0.0004427343  ;;  %v5352_v44 = vmov 0 }
  0x8d   :  { %vm2702_vm3 = vcmp.lt.f32.partialorder %v5345_v14, 0.0004427343  ;;  %v1637_v13 = vpop.eup %1636  ;;  %v5353_v44 = vsel %vm2719_vm4, 4294967295, %v5352_v44  ;;  %v2724_v61 = vmul.f32 %v2173_v35, %v563_v2  ;;  %1662 = vlog2.f32 %v2344_v3 }
  0x8e   :  { %v5347_v12 = vsel %vm2702_vm3, 4294967295, %v5346_v12  ;;  %v590_v8 = vadd.f32 1.0, %v589_v48  ;;  %v1639_v33 = vpop.eup %1638  ;;  %v5355_v21 = vand.u32 2147483647, %v5298_v54  ;;  %v2735_v24 = vmul.f32 %v2180_v38, %v572_v50 }
  0x8f   :  { %5348 = vst [vmem:[#allocation120_spill] sm:$0xff] %v5347_v12  ;;  %5354 = vst [vmem:[#allocation123_spill] sm:$0xff] %v2724_v61  ;;  %1664 = vlog2.f32 %v2360_v5  ;;  %v599_v14 = vadd.f32 1.0, %v598_v49  ;;  %v608_v2 = vadd.f32 1.0, %v607_v57  ;;  %v1641_v22 = vpop.eup %1640  ;;  %v2738_v61 = vmul.f32 0.6931472, %v1631_v52 }
  0x90   :  { %vm2730_vm5 = vcmp.lt.f32.partialorder %v5355_v21, 0.0004427343  ;;  %5358 = vst [vmem:[#allocation124_spill] sm:$0xff] %v2735_v24  ;;  %v2740_v3 = vmul.f32 0.6931472, %v1633_v40  ;;  %v5363_v50 = vmov 0  ;;  %1666 = vlog2.f32 %v2376_v7  ;;  %v1643_v49 = vpop.eup %1642 }
  0x91   :  { %v5359_v48 = vand.u32 2147483647, %v5300_v17  ;;  %v5362_v21 = vand.u32 2147483647, %v5302_v20  ;;  %v617_v5 = vadd.f32 1.0, %v616_v39  ;;  %v5368_v52 = vmov 0 }
  0x92   :  { %v2755_v57 = vmul.f32 0.6931472, %v1635_v43  ;;  %v5367_v40 = vand.u32 2147483647, %v5304_v4  ;;  %v5372_v20 = vmov 0  ;;  %v5376_v7 = vmov 0 }
  0x93   :  { %vm2744_vm6 = vcmp.lt.f32.partialorder %v5359_v48, 0.0004427343  ;;  %vm2750_vm7 = vcmp.lt.f32.partialorder %v5362_v21, 0.0004427343  ;;  %v5371_v48 = vand.u32 2147483647, %v5308_v15  ;;  %v2776_v39 = vmul.f32 %v2187_v62, %v581_v9 }
  0x94   :  { %v5364_v50 = vsel %vm2750_vm7, 4294967295, %v5363_v50  ;;  %5366 = vst [vmem:[#allocation126_spill] sm:$0xff] %v2755_v57  ;;  %vm2759_vm8 = vcmp.lt.f32.partialorder %v5367_v40, 0.0004427343  ;;  %v5375_v21 = vand.u32 2147483647, %v5311_v37  ;;  %1668 = vlog2.f32 %v2392_v11  ;;  %v1645_v40 = vpop.eup %1644 }
  0x95   :  { %5365 = vst [vmem:[#allocation125_spill] sm:$0xff] %v5364_v50  ;;  %v5369_v52 = vsel %vm2759_vm8, 4294967295, %v5368_v52  ;;  %vm2765_vm9 = vcmp.lt.f32.partialorder %v5371_v48, 0.0004427343  ;;  %5379 = vst [vmem:[#allocation130_spill] sm:$0xff] %v2776_v39  ;;  %v5381_v48 = vmov 0  ;;  %v2787_v37 = vmul.f32 %v2194_v0, %v590_v8  ;;  %v1647_v17 = vpop.eup %1646 }
  0x96   :  { %5370 = vst [vmem:[#allocation127_spill] sm:$0xff] %v5369_v52  ;;  %v5373_v20 = vsel %vm2765_vm9, 4294967295, %v5372_v20  ;;  %vm2771_vm10 = vcmp.lt.f32.partialorder %v5375_v21, 0.0004427343  ;;  %v592_v43 = vand.u32 2147483647, %v2194_v0  ;;  %v2804_v8 = vmul.f32 %v2209_v36, %v608_v2  ;;  %v1649_v4 = vpop.eup %1648 }
  0x97   :  { %5374 = vst [vmem:[#allocation128_spill] sm:$0xff] %v5373_v20  ;;  %v5377_v7 = vsel %vm2771_vm10, 4294967295, %v5376_v7  ;;  %v5380_v15 = vand.u32 2147483647, %v5314_v55  ;;  %5384 = vst [vmem:[#allocation132_spill] sm:$0xff] %v2787_v37  ;;  %v625_v9 = vmul.f32 -0.5, %v2227_v51  ;;  %1670 = vlog2.f32 %v2408_v18  ;;  %v1651_v2 = vpop.eup %1650 }
  0x98   :  { %5378 = vst [vmem:[#allocation129_spill] sm:$0xff] %v5377_v7  ;;  %v601_v21 = vand.u32 2147483647, %v2201_v1  ;;  %v2792_v54 = vmul.f32 0.6931472, %v1637_v13  ;;  %v5387_v55 = vmov 0  ;;  %1672 = vlog2.f32 %v2424_v23 }
  0x99   :  { %vm2782_vm11 = vcmp.lt.f32.partialorder %v5380_v15, 0.0004427343  ;;  %v5386_v11 = vand.u32 2147483647, %v2156_v56  ;;  %v2801_v15 = vmul.f32 %v2201_v1, %v599_v14  ;;  %v2817_v14 = vmul.f32 %v2217_v30, %v617_v5  ;;  %v1653_v56 = vpop.eup %1652  ;;  %v5432_v31 = vld [vmem:[#allocation118_spill] sm:$0xff]  ;;  %v5462_v37 = vld [vmem:[#allocation103_spill] sm:$0xff] }
  0x9a   :  { %v5382_v48 = vsel %vm2782_vm11, 4294967295, %v5381_v48  ;;  %5385 = vst [vmem:[#allocation133_spill] sm:$0xff] %v2792_v54  ;;  %v2823_v1 = vmul.f32 0.6931472, %v1639_v33  ;;  %v634_v13 = vmul.f32 -0.5, %v2239_v46  ;;  %v5393_v5 = vmov 0  ;;  %v1655_v33 = vpop.eup %1654 }
  0x9b   :  { %5383 = vst [vmem:[#allocation131_spill] sm:$0xff] %v5382_v48  ;;  %vm2796_vm12 = vcmp.lt.f32.partialorder %v5386_v11, 0.0004427343  ;;  %5389 = vst [vmem:[#allocation134_spill] sm:$0xff] %v2801_v15  ;;  %v2827_v29 = vmul.f32 0.6931472, %v1641_v22  ;;  %1674 = vlog2.f32 %v2440_v32  ;;  %v1657_v12 = vpop.eup %1656 }
  0x9c   :  { %v5388_v55 = vsel %vm2796_vm12, 4294967295, %v5387_v55  ;;  %5390 = vst [vmem:[#allocation135_spill] sm:$0xff] %v2823_v1  ;;  %v5392_v18 = vand.u32 2147483647, %v2161_v25  ;;  %v626_v11 = vadd.f32 1.0, %v625_v9  ;;  %v5401_v9 = vmov 0 }
  0x9d   :  { %5391 = vst [vmem:[#allocation136_spill] sm:$0xff] %v2827_v29  ;;  %v628_v0 = vand.u32 2147483647, %v2227_v51  ;;  %v2841_v57 = vmul.f32 0.6931472, %v1643_v49  ;;  %1676 = vlog2.f32 %v2456_v16  ;;  %v5419_v54 = vld [vmem:[#allocation62_spill] sm:$0xff] }
  0x9e   :  { %vm2831_vm13 = vcmp.lt.f32.partialorder %v5392_v18, 0.0004427343  ;;  %v2843_v22 = vmul.f32 0.6931472, %v1645_v40  ;;  %v5397_v18 = vand.u32 2147483647, %v2166_v47  ;;  %1678 = vlog2.f32 %v2472_v45 }
  0x9f   :  { %v5394_v5 = vsel %vm2831_vm13, 4294967295, %v5393_v5  ;;  %v5400_v32 = vand.u32 2147483647, %v2173_v35  ;;  %v2858_v23 = vmul.f32 0.6931472, %v1647_v17  ;;  %v5407_v47 = vmov 0 }
  0xa0   :  { %5395 = vst [vmem:[#allocation137_spill] sm:$0xff] %v5394_v5  ;;  %5396 = vst [vmem:[#allocation138_spill] sm:$0xff] %v2843_v22  ;;  %vm2847_vm14 = vcmp.lt.f32.partialorder %v5397_v18, 0.0004427343  ;;  %v2860_v49 = vmul.f32 0.6931472, %v1649_v4  ;;  %v5473_v5 = vsel %vm2671_vm0, %v2567_v63, %v2738_v61 }
  0xa1   :  { %vm2853_vm15 = vcmp.lt.f32.partialorder %v5400_v32, 0.0004427343  ;;  %v2862_v40 = vmul.f32 0.6931472, %v1651_v2  ;;  %v5406_v18 = vand.u32 2147483647, %v2180_v38  ;;  %v1659_v32 = vpop.eup %1658 }
  0xa2   :  { %v5402_v9 = vsel %vm2853_vm15, 4294967295, %v5401_v9  ;;  %5404 = vst [vmem:[#allocation140_spill] sm:$0xff] %v2860_v49  ;;  %v2875_v17 = vmul.f32 0.6931472, %v1653_v56  ;;  %v5411_v4 = vand.u32 2147483647, %v2187_v62  ;;  %v1661_v35 = vpop.eup %1660 }
  0xa3   :  { %5403 = vst [vmem:[#allocation139_spill] sm:$0xff] %v5402_v9  ;;  %5405 = vst [vmem:[#allocation141_spill] sm:$0xff] %v2862_v40  ;;  %vm2866_vm3 = vcmp.lt.f32.partialorder %v5406_v18, 0.0004427343  ;;  %v5412_v2 = vmov 0  ;;  %v5415_v18 = vmov 0 }
  0xa4   :  { %v5408_v47 = vsel %vm2866_vm3, 4294967295, %v5407_v47  ;;  %5410 = vst [vmem:[#allocation143_spill] sm:$0xff] %v2875_v17  ;;  %vm2879_vm2 = vcmp.lt.f32.partialorder %v5411_v4, 0.0004427343  ;;  %vm2883_vm1 = vcmp.lt.f32.partialorder %v592_v43, 0.0004427343  ;;  %v2899_v43 = vmul.f32 %v2227_v51, %v626_v11 }
  0xa5   :  { %5409 = vst [vmem:[#allocation142_spill] sm:$0xff] %v5408_v47  ;;  %v5413_v2 = vsel %vm2879_vm2, 4294967295, %v5412_v2  ;;  %v5416_v18 = vsel %vm2883_vm1, 4294967295, %v5415_v18  ;;  %v635_v38 = vadd.f32 1.0, %v634_v13  ;;  %v5418_v45 = vld [vmem:[#allocation92_spill] sm:$0xff]  ;;  %v5421_v4 = vmov 0  ;;  %v1663_v13 = vpop.eup %1662 }
  0xa6   :  { %5414 = vst [vmem:[#allocation144_spill] sm:$0xff] %v5413_v2  ;;  %5417 = vst [vmem:[#allocation145_spill] sm:$0xff] %v5416_v18  ;;  %1680 = vlog2.f32 %v5418_v45  ;;  %v2892_v16 = vmul.f32 0.6931472, %v1655_v33  ;;  %vm2894_vm4 = vcmp.lt.f32.partialorder %v601_v21, 0.0004427343  ;;  %v1665_v29 = vpop.eup %1664 }
  0xa7   :  { %v5422_v4 = vsel %vm2894_vm4, 4294967295, %v5421_v4  ;;  %v5424_v62 = vld [vmem:[#allocation74_spill] sm:$0xff]  ;;  %v637_v21 = vand.u32 2147483647, %v2239_v46  ;;  %v5425_v56 = vld [vmem:[#allocation95_spill] sm:$0xff]  ;;  %v5426_v51 = vld [vmem:[#allocation76_spill] sm:$0xff]  ;;  %v1667_v28 = vpop.eup %1666  ;;  %v2938_v45 = vmul.f32 %v2239_v46, %v635_v38 }
  0xa8   :  { %5420 = vst [vmem:[#allocation92_spill] sm:$0xff] %v2892_v16  ;;  %5423 = vst [vmem:[#allocation62_spill] sm:$0xff] %v5422_v4  ;;  %v643_v1 = vmul.f32 -0.5, %v5424_v62  ;;  %1682 = vlog2.f32 %v5425_v56  ;;  %v652_v22 = vmul.f32 -0.5, %v5426_v51  ;;  %v2929_v52 = vmul.f32 0.6931472, %v1657_v12  ;;  %v1669_v40 = vpop.eup %1668 }
  0xa9   :  { %v5429_v11 = vand.u32 2147483647, %v2209_v36  ;;  %v646_v33 = vand.u32 2147483647, %v5424_v62  ;;  %v2945_v50 = vmul.f32 0.6931472, %v1659_v32 }
  0xaa   :  { %5428 = vst [vmem:[#allocation95_spill] sm:$0xff] %v2929_v52  ;;  %v2947_v12 = vmul.f32 0.6931472, %v1661_v35  ;;  %v644_v36 = vadd.f32 1.0, %v643_v1  ;;  %v5435_v17 = vand.u32 2147483647, %v2217_v30 }
  0xab   :  { %vm2933_vm8 = vcmp.lt.f32.partialorder %v5429_v11, 0.0004427343  ;;  %5433 = vst [vmem:[#allocation118_spill] sm:$0xff] %v2945_v50  ;;  %v2949_v11 = vmul.f32 0.6931472, %v1663_v13  ;;  %v5438_v56 = vld [vmem:[#allocation11_spill] sm:$0xff] }
  0xac   :  { %vm2953_vm11 = vcmp.lt.f32.partialorder %v5435_v17, 0.0004427343  ;;  %v655_v46 = vand.u32 2147483647, %v5426_v51  ;;  %v661_v7 = vmul.f32 -0.5, %v5438_v56  ;;  %v5439_v49 = vld [vmem:[#allocation96_spill] sm:$0xff]  ;;  %v1671_v17 = vpop.eup %1670 }
  0xad   :  { %5434 = vst [vmem:[#allocation146_spill] sm:$0xff] %v2949_v11  ;;  %1684 = vlog2.f32 %v5439_v49  ;;  %v2960_v48 = vmul.f32 0.6931472, %v1665_v29  ;;  %v2962_v32 = vmul.f32 0.6931472, %v1667_v28  ;;  %v653_v35 = vadd.f32 1.0, %v652_v22  ;;  %v1673_v49 = vpop.eup %1672 }
  0xae   :  { %vm2964_vm12 = vcmp.lt.f32.partialorder %v628_v0, 0.0004427343  ;;  %v5444_v13 = vld [vmem:[#allocation98_spill] sm:$0xff]  ;;  %v2973_v16 = vmul.f32 0.6931472, %v1669_v40  ;;  %v5450_v22 = vld [vmem:[#allocation100_spill] sm:$0xff]  ;;  %v1675_v34 = vpop.eup %1674 }
  0xaf   :  { %5440 = vst [vmem:[#allocation96_spill] sm:$0xff] %v2960_v48  ;;  %5441 = vst [vmem:[#allocation147_spill] sm:$0xff] %v2962_v32  ;;  %1686 = vlog2.f32 %v5444_v13  ;;  %vm2975_vm10 = vcmp.lt.f32.partialorder %v637_v21, 0.0004427343  ;;  %vm2979_vm9 = vcmp.lt.f32.partialorder %v646_v33, 0.0004427343  ;;  %v2994_v33 = vmul.f32 %v5424_v62, %v644_v36  ;;  %v1677_v9 = vpop.eup %1676 }
  0xb0   :  { %5445 = vst [vmem:[#allocation98_spill] sm:$0xff] %v2973_v16  ;;  %v664_v28 = vand.u32 2147483647, %v5438_v56  ;;  %1688 = vlog2.f32 %v5450_v22  ;;  %v5452_v40 = vld [vmem:[#allocation123_spill] sm:$0xff]  ;;  %v5453_v52 = vld [vmem:[#allocation102_spill] sm:$0xff]  ;;  %v662_v30 = vadd.f32 1.0, %v661_v7  ;;  %v1679_v22 = vpop.eup %1678 }
  0xb1   :  { %1690 = vlog2.f32 %v5453_v52  ;;  %vm3001_vm13 = vcmp.lt.f32.partialorder %v655_v46, 0.0004427343  ;;  %v5456_v50 = vld [vmem:[#allocation15_spill] sm:$0xff]  ;;  %v3014_v21 = vmul.f32 0.6931472, %v1671_v17  ;;  %v3017_v46 = vmul.f32 %v5426_v51, %v653_v35  ;;  %v5459_v36 = vld [vmem:[#allocation77_spill] sm:$0xff] }
  0xb2   :  { %v670_v13 = vmul.f32 -0.5, %v5456_v50  ;;  %vm3023_vm3 = vcmp.lt.f32.partialorder %v664_v28, 0.0004427343  ;;  %v679_v48 = vmul.f32 -0.5, %v5459_v36  ;;  %v5460_v39 = vld [vmem:[#allocation78_spill] sm:$0xff]  ;;  %v5461_v51 = vld [vmem:[#allocation79_spill] sm:$0xff]  ;;  %1692 = vlog2.f32 %v5462_v37 }
  0xb3   :  { %v688_v18 = vmul.f32 -0.5, %v5460_v39  ;;  %v1681_v52 = vpop.eup %1680  ;;  %v3029_v17 = vmul.f32 0.6931472, %v1673_v49  ;;  %v673_v35 = vand.u32 2147483647, %v5456_v50  ;;  %v697_v32 = vmul.f32 -0.5, %v5461_v51 }
  0xb4   :  { %v3034_v2 = vmul.f32 0.6931472, %v1675_v34  ;;  %v3037_v28 = vmul.f32 %v5438_v56, %v662_v30  ;;  %v671_v7 = vadd.f32 1.0, %v670_v13  ;;  %v5463_v16 = vld [vmem:[#allocation80_spill] sm:$0xff]  ;;  %v612_v49 = vsel %vm2933_vm8, %v2804_v8, %v3014_v21  ;;  %v5472_v0 = vld [vmem:[#allocation13_spill] sm:$0xff]  ;;  %v5551_v20 = vld [vmem:[#allocation122_spill] sm:$0xff] }
  0xb5   :  { %v706_v15 = vmul.f32 -0.5, %v5463_v16  ;;  %v1683_v4 = vpop.eup %1682  ;;  %v3044_v11 = vmul.f32 0.6931472, %v1677_v9  ;;  %v3046_v24 = vmul.f32 0.6931472, %v1679_v22  ;;  %v680_v47 = vadd.f32 1.0, %v679_v48 }
  0xb6   :  { %v682_v37 = vand.u32 2147483647, %v5459_v36  ;;  %v3049_v34 = vmul.f32 0.6931472, %v1681_v52  ;;  %v689_v30 = vadd.f32 1.0, %v688_v18  ;;  %v621_v56 = vsel %vm2953_vm11, %v2817_v14, %v3029_v17  ;;  %v5484_v61 = vld [vmem:[#allocation12_spill] sm:$0xff] }
  0xb7   :  { %v691_v13 = vand.u32 2147483647, %v5460_v39  ;;  %vm3056_vm4 = vcmp.lt.f32.partialorder %v673_v35, 0.0004427343  ;;  %v698_v8 = vadd.f32 1.0, %v697_v32  ;;  %v630_v48 = vsel %vm2964_vm12, %v2899_v43, %v3034_v2  ;;  %v5492_v62 = vld [vmem:[#allocation133_spill] sm:$0xff] }
  0xb8   :  { %v700_v9 = vand.u32 2147483647, %v5461_v51  ;;  %v660_v18 = vmul.f32 0.6931472, %v1683_v4  ;;  %v707_v21 = vadd.f32 1.0, %v706_v15  ;;  %v639_v14 = vsel %vm2975_vm10, %v2938_v45, %v3044_v11 }
  0xb9   :  { %v709_v22 = vand.u32 2147483647, %v5463_v16  ;;  %v648_v38 = vsel %vm2979_vm9, %v2994_v33, %v3046_v24  ;;  %v672_v32 = vmul.f32 %v5456_v50, %v671_v7  ;;  %vm3075_vm8 = vcmp.lt.f32.partialorder %v682_v37, 0.0004427343  ;;  %v5475_v33 = vld [vmem:[#allocation14_spill] sm:$0xff] }
  0xba   :  { %v1685_v52 = vpop.eup %1684  ;;  %v657_v2 = vsel %vm3001_vm13, %v3017_v46, %v3049_v34  ;;  %v681_v4 = vmul.f32 %v5459_v36, %v680_v47  ;;  %v690_v43 = vmul.f32 %v5460_v39, %v689_v30  ;;  %vm3085_vm10 = vcmp.lt.f32.partialorder %v691_v13, 0.0004427343  ;;  %v5476_v46 = vld [vmem:[#allocation117_spill] sm:$0xff]  ;;  %v5489_v13 = vld [vmem:[#allocation16_spill] sm:$0xff] }
  0xbb   :  { %v699_v11 = vmul.f32 %v5461_v51, %v698_v8  ;;  %vm3090_vm9 = vcmp.lt.f32.partialorder %v700_v9, 0.0004427343  ;;  %v3100_v47 = vadd.f32 %v5473_v5, %v5472_v0  ;;  %vm5477_vm11 = vnez %v5476_v46  ;;  %v5490_v8 = vld [vmem:[#allocation120_spill] sm:$0xff] }
  0xbc   :  { %v1687_v15 = vpop.eup %1686  ;;  %v5478_v7 = vsel %vm5477_vm11, %v2574_v41, %v2740_v3  ;;  %v666_v37 = vsel %vm3023_vm3, %v3037_v28, %v660_v18  ;;  %v669_v34 = vmul.f32 0.6931472, %v1685_v52  ;;  %v3114_v53 = vmul.f32 %v5463_v16, %v707_v21  ;;  %v5486_v41 = vld [vmem:[#allocation126_spill] sm:$0xff]  ;;  %v5495_v18 = vld [vmem:[#allocation17_spill] sm:$0xff]  ;;  %v5497_v21 = vld [vmem:[#allocation135_spill] sm:$0xff] }
  0xbd   :  { %v1689_v24 = vpop.eup %1688  ;;  %5474 = vst [vmem:[#allocation100_spill] sm:$0xff] %v3100_v47  ;;  %v3108_v17 = vadd.f32 %v5478_v7, %v5475_v33  ;;  %vm3116_vm0 = vcmp.lt.f32.partialorder %v709_v22, 0.0004427343  ;;  %v5481_v63 = vmov 0  ;;  %vm5485_vm12 = vnez %v5344_v60  ;;  %v5500_v52 = vld [vmem:[#allocation18_spill] sm:$0xff]  ;;  %v5504_v33 = vld [vmem:[#allocation19_spill] sm:$0xff] }
  0xbe   :  { %v1691_v35 = vpop.eup %1690  ;;  %5480 = vst [vmem:[#allocation102_spill] sm:$0xff] %v3114_v53  ;;  %v5482_v63 = vsel %vm3116_vm0, 4294967295, %v5481_v63  ;;  %v5487_v3 = vsel %vm5485_vm12, %v2588_v42, %v5486_v41  ;;  %vm5491_vm13 = vnez %v5490_v8  ;;  %vm5496_vm3 = vnez %v5353_v44  ;;  %v5501_v42 = vld [vmem:[#allocation136_spill] sm:$0xff]  ;;  %v5510_v41 = vld [vmem:[#allocation138_spill] sm:$0xff]  ;;  %v5535_v7 = vld [vmem:[#allocation143_spill] sm:$0xff] }
  0xbf   :  { %5479 = vst [vmem:[#allocation123_spill] sm:$0xff] %v3108_v17  ;;  %5483 = vst [vmem:[#allocation15_spill] sm:$0xff] %v5482_v63  ;;  %v3126_v30 = vadd.f32 %v5487_v3, %v5484_v61  ;;  %v5493_v28 = vsel %vm5491_vm13, %v2591_v19, %v5492_v62  ;;  %v5498_v22 = vsel %vm5496_vm3, %v2597_v27, %v5497_v21  ;;  %v678_v46 = vmul.f32 0.6931472, %v1687_v15  ;;  %v5507_v27 = vld [vmem:[#allocation20_spill] sm:$0xff]  ;;  %v5509_v61 = vld [vmem:[#allocation66_spill] sm:$0xff] }
  0xc0   :  { %v3134_v9 = vadd.f32 %v5493_v28, %v5489_v13  ;;  %v3142_v60 = vadd.f32 %v5498_v22, %v5495_v18  ;;  %v5502_v0 = vsel %vm2730_vm5, %v5419_v54, %v5501_v42  ;;  %v5505_v19 = vsel %vm2744_vm6, %v2622_v10, %v2841_v57  ;;  %v5513_v54 = vld [vmem:[#allocation21_spill] sm:$0xff]  ;;  %v5514_v13 = vld [vmem:[#allocation127_spill] sm:$0xff]  ;;  %v5518_v10 = vld [vmem:[#allocation22_spill] sm:$0xff] }
  0xc1   :  { %5488 = vst [vmem:[#allocation77_spill] sm:$0xff] %v3126_v30  ;;  %v3150_v5 = vadd.f32 %v5502_v0, %v5500_v52  ;;  %v3158_v44 = vadd.f32 %v5505_v19, %v5504_v33  ;;  %v5511_v26 = vsel %vm2750_vm7, %v5509_v61, %v5510_v41  ;;  %vm5515_vm5 = vnez %v5514_v13  ;;  %v5519_v57 = vld [vmem:[#allocation128_spill] sm:$0xff]  ;;  %v5524_v22 = vld [vmem:[#allocation23_spill] sm:$0xff]  ;;  %v5525_v52 = vld [vmem:[#allocation129_spill] sm:$0xff] }
  0xc2   :  { %5494 = vst [vmem:[#allocation78_spill] sm:$0xff] %v3134_v9  ;;  %5499 = vst [vmem:[#allocation79_spill] sm:$0xff] %v3142_v60  ;;  %v3166_v3 = vadd.f32 %v5511_v26, %v5507_v27  ;;  %v5516_v58 = vsel %vm5515_vm5, %v2636_v59, %v2858_v23  ;;  %vm5520_vm6 = vnez %v5519_v57  ;;  %v5521_v15 = vld [vmem:[#allocation140_spill] sm:$0xff]  ;;  %v687_v18 = vmul.f32 0.6931472, %v1689_v24  ;;  %v5527_v42 = vld [vmem:[#allocation113_spill] sm:$0xff] }
  0xc3   :  { %5503 = vst [vmem:[#allocation103_spill] sm:$0xff] %v3150_v5  ;;  %5506 = vst [vmem:[#allocation80_spill] sm:$0xff] %v3158_v44  ;;  %v3174_v8 = vadd.f32 %v5516_v58, %v5513_v54  ;;  %v5522_v62 = vsel %vm5520_vm6, %v2648_v6, %v5521_v15  ;;  %v696_v21 = vmul.f32 0.6931472, %v1691_v35  ;;  %vm5526_vm7 = vnez %v5525_v52  ;;  %v5528_v0 = vld [vmem:[#allocation141_spill] sm:$0xff]  ;;  %v5531_v59 = vld [vmem:[#allocation24_spill] sm:$0xff]  ;;  %v1693_v6 = vpop.eup %1692 }
  0xc4   :  { %5512 = vst [vmem:[#allocation13_spill] sm:$0xff] %v3166_v3  ;;  %v3182_v28 = vadd.f32 %v5522_v62, %v5518_v10  ;;  %v5529_v33 = vsel %vm5526_vm7, %v5527_v42, %v5528_v0  ;;  %v5532_v23 = vld [vmem:[#allocation131_spill] sm:$0xff]  ;;  %v675_v24 = vsel %vm3056_vm4, %v672_v32, %v669_v34  ;;  %v5538_v35 = vld [vmem:[#allocation25_spill] sm:$0xff]  ;;  %vm5539_vm12 = vnez %v5388_v55  ;;  %v5540_v26 = vld [vmem:[#allocation92_spill] sm:$0xff] }
  0xc5   :  { %5517 = vst [vmem:[#allocation14_spill] sm:$0xff] %v3174_v8  ;;  %v3190_v19 = vadd.f32 %v5529_v33, %v5524_v22  ;;  %vm5533_vm11 = vnez %v5532_v23  ;;  %v5534_v27 = vld [vmem:[#allocation115_spill] sm:$0xff]  ;;  %v5541_v54 = vsel %vm5539_vm12, %v5432_v31, %v5540_v26  ;;  %v5543_v58 = vld [vmem:[#allocation26_spill] sm:$0xff]  ;;  %v5544_v10 = vld [vmem:[#allocation137_spill] sm:$0xff]  ;;  %v5557_v0 = vsel %vm2853_vm15, %v5452_v40, %v2947_v12 }
  0xc6   :  { %5523 = vst [vmem:[#allocation117_spill] sm:$0xff] %v3182_v28  ;;  %v5536_v61 = vsel %vm5533_vm11, %v5534_v27, %v5535_v7  ;;  %v3208_v13 = vadd.f32 %v5541_v54, %v5538_v35  ;;  %vm5545_vm13 = vnez %v5544_v10  ;;  %v5546_v57 = vld [vmem:[#allocation121_spill] sm:$0xff]  ;;  %v5547_v15 = vld [vmem:[#allocation95_spill] sm:$0xff]  ;;  %v5552_v32 = vld [vmem:[#allocation118_spill] sm:$0xff]  ;;  %v693_v26 = vsel %vm3085_vm10, %v690_v43, %v687_v18 }
  0xc7   :  { %5530 = vst [vmem:[#allocation12_spill] sm:$0xff] %v3190_v19  ;;  %v3198_v41 = vadd.f32 %v5536_v61, %v5531_v59  ;;  %v5548_v62 = vsel %vm5545_vm13, %v5546_v57, %v5547_v15  ;;  %v5550_v52 = vld [vmem:[#allocation27_spill] sm:$0xff]  ;;  %v5553_v34 = vsel %vm2847_vm14, %v5551_v20, %v5552_v32  ;;  %v5555_v42 = vld [vmem:[#allocation28_spill] sm:$0xff]  ;;  %v5559_v59 = vld [vmem:[#allocation29_spill] sm:$0xff]  ;;  %v684_v32 = vsel %vm3075_vm8, %v681_v4, %v678_v46 }
  0xc8   :  { %5542 = vst [vmem:[#allocation16_spill] sm:$0xff] %v3208_v13  ;;  %v3216_v22 = vadd.f32 %v5548_v62, %v5543_v58  ;;  %v3224_v55 = vadd.f32 %v5553_v34, %v5550_v52  ;;  %v3232_v33 = vadd.f32 %v5557_v0, %v5555_v42  ;;  %v5560_v23 = vld [vmem:[#allocation142_spill] sm:$0xff]  ;;  %v5562_v27 = vld [vmem:[#allocation124_spill] sm:$0xff]  ;;  %v5566_v35 = vld [vmem:[#allocation31_spill] sm:$0xff]  ;;  %v702_v1 = vsel %vm3090_vm9, %v699_v11, %v696_v21 }
  0xc9   :  { %5537 = vst [vmem:[#allocation126_spill] sm:$0xff] %v3198_v41  ;;  %vm5561_vm4 = vnez %v5560_v23  ;;  %v5563_v7 = vld [vmem:[#allocation146_spill] sm:$0xff]  ;;  %v5569_v58 = vld [vmem:[#allocation96_spill] sm:$0xff]  ;;  %v5572_v15 = vld [vmem:[#allocation33_spill] sm:$0xff]  ;;  %v3278_v4 = vmul.f32 0.6931472, %v1693_v6 }
  0xca   :  { %5549 = vst [vmem:[#allocation120_spill] sm:$0xff] %v3216_v22  ;;  %5554 = vst [vmem:[#allocation133_spill] sm:$0xff] %v3224_v55  ;;  %v5564_v61 = vsel %vm5561_vm4, %v5562_v27, %v5563_v7  ;;  %v5568_v54 = vld [vmem:[#allocation130_spill] sm:$0xff]  ;;  %v5574_v40 = vld [vmem:[#allocation132_spill] sm:$0xff] }
  0xcb   :  { %5558 = vst [vmem:[#allocation17_spill] sm:$0xff] %v3232_v33  ;;  %v3240_v25 = vadd.f32 %v5564_v61, %v5559_v59  ;;  %v5570_v10 = vsel %vm2879_vm2, %v5568_v54, %v5569_v58  ;;  %v5575_v62 = vld [vmem:[#allocation147_spill] sm:$0xff]  ;;  %v5578_v34 = vld [vmem:[#allocation37_spill] sm:$0xff]  ;;  %v5579_v42 = vld [vmem:[#allocation62_spill] sm:$0xff] }
  0xcc   :  { %v3248_v57 = vadd.f32 %v5570_v10, %v5566_v35  ;;  %v5576_v52 = vsel %vm2883_vm1, %v5574_v40, %v5575_v62  ;;  %vm5580_vm14 = vnez %v5579_v42  ;;  %v5581_v31 = vld [vmem:[#allocation134_spill] sm:$0xff]  ;;  %v5585_v27 = vld [vmem:[#allocation39_spill] sm:$0xff]  ;;  %v5587_v61 = vld [vmem:[#allocation40_spill] sm:$0xff]  ;;  %5589 = vst [vmem:[#allocation66_spill] sm:$0xff] %v3278_v4 }
  0xcd   :  { %5565 = vst [vmem:[#allocation135_spill] sm:$0xff] %v3240_v25  ;;  %v3256_v20 = vadd.f32 %v5576_v52, %v5572_v15  ;;  %v5582_v0 = vld [vmem:[#allocation98_spill] sm:$0xff]  ;;  %v3269_v7 = vadd.f32 %v612_v49, %v5585_v27  ;;  %v3272_v35 = vadd.f32 %v621_v56, %v5587_v61  ;;  %v5592_v58 = vld [vmem:[#allocation88_spill] sm:$0xff]  ;;  %v5594_v15 = vld [vmem:[#allocation89_spill] sm:$0xff] }
  0xce   :  { %5571 = vst [vmem:[#allocation18_spill] sm:$0xff] %v3248_v57  ;;  %v5583_v59 = vsel %vm5580_vm14, %v5581_v31, %v5582_v0  ;;  %v5590_v46 = vld [vmem:[#allocation86_spill] sm:$0xff]  ;;  %v3284_v10 = vadd.f32 %v639_v14, %v5592_v58  ;;  %v3287_v49 = vadd.f32 %v648_v38, %v5594_v15  ;;  %v5598_v40 = vld [vmem:[#allocation32_spill] sm:$0xff]  ;;  %v5600_v43 = vld [vmem:[#allocation93_spill] sm:$0xff] }
  0xcf   :  { %5577 = vst [vmem:[#allocation136_spill] sm:$0xff] %v3256_v20  ;;  %v3266_v23 = vadd.f32 %v5583_v59, %v5578_v34  ;;  %5586 = vst [vmem:[#allocation20_spill] sm:$0xff] %v3269_v7  ;;  %v3281_v54 = vadd.f32 %v630_v48, %v5590_v46  ;;  %v5596_v12 = vld [vmem:[#allocation30_spill] sm:$0xff]  ;;  %v3293_v45 = vadd.f32 %v666_v37, %v5598_v40  ;;  %v5602_v11 = vld [vmem:[#allocation73_spill] sm:$0xff] }
  0xd0   :  { %5588 = vst [vmem:[#allocation125_spill] sm:$0xff] %v3272_v35  ;;  %5593 = vst [vmem:[#allocation21_spill] sm:$0xff] %v3284_v10  ;;  %v3290_v56 = vadd.f32 %v657_v2, %v5596_v12  ;;  %v3296_v29 = vadd.f32 %v675_v24, %v5600_v43  ;;  %v3299_v18 = vadd.f32 %v684_v32, %v5602_v11  ;;  %v3301_v48 = vld [vmem:[#allocation2] sm:$0xff]  ;;  %v3304_v14 = vld [vmem:[#allocation2 + $0x8] sm:$0xff] }
  0xd1   :  { %5584 = vst [vmem:[#allocation19_spill] sm:$0xff] %v3266_v23  ;;  %5591 = vst [vmem:[#allocation138_spill] sm:$0xff] %v3281_v54  ;;  %vm744_vm1 = vcmp.ge.f32.partialorder %v3301_v48, 0.0  ;;  %vm745_vm2 = vcmp.ge.f32.partialorder %v3304_v14, 0.0  ;;  %v5604_v38 = vld [vmem:[#allocation35_spill] sm:$0xff]  ;;  %v3313_v6 = vld [vmem:[#allocation2 + $0x10] sm:$0xff] }
  0xd2   :  { %5595 = vst [vmem:[#allocation127_spill] sm:$0xff] %v3287_v49  ;;  %5597 = vst [vmem:[#allocation22_spill] sm:$0xff] %v3290_v56  ;;  %v3308_v2 = vadd.f32 %v693_v26, %v5604_v38  ;;  %v5606_v21 = vld [vmem:[#allocation75_spill] sm:$0xff]  ;;  %vm746_vm15 = vcmp.ge.f32.partialorder %v3313_v6, 0.0  ;;  %v3316_v24 = vld [vmem:[#allocation2 + $0x18] sm:$0xff] }
  0xd3   :  { %5599 = vst [vmem:[#allocation128_spill] sm:$0xff] %v3293_v45  ;;  %5601 = vst [vmem:[#allocation140_spill] sm:$0xff] %v3296_v29  ;;  %v3311_v37 = vadd.f32 %v702_v1, %v5606_v21  ;;  %vm747_vm8 = vcmp.ge.f32.partialorder %v3316_v24, 0.0  ;;  %v3319_v62 = vld [vmem:[#allocation2 + $0x20] sm:$0xff]  ;;  %v3322_v52 = vld [vmem:[#allocation2 + $0x28] sm:$0xff] }
  0xd4   :  { %5603 = vst [vmem:[#allocation23_spill] sm:$0xff] %v3299_v18  ;;  %5605 = vst [vmem:[#allocation129_spill] sm:$0xff] %v3308_v2  ;;  %vm748_vm10 = vcmp.ge.f32.partialorder %v3319_v62, 0.0  ;;  %vm749_vm9 = vcmp.ge.f32.partialorder %v3322_v52, 0.0  ;;  %v3329_v34 = vld [vmem:[#allocation2 + $0x30] sm:$0xff]  ;;  %v3332_v42 = vld [vmem:[#allocation2 + $0x38] sm:$0xff] }
  0xd5   :  { %5607 = vst [vmem:[#allocation113_spill] sm:$0xff] %v3311_v37  ;;  %5608 = vst [vmem:[#allocation141_spill] sm:$0xff] %v3329_v34  ;;  %vm750_vm3 = vcmp.ge.f32.partialorder %v3329_v34, 0.0  ;;  %vm751_vm5 = vcmp.ge.f32.partialorder %v3332_v42, 0.0  ;;  %v3335_v31 = vld [vmem:[#allocation2 + $0x40] sm:$0xff]  ;;  %v3338_v0 = vld [vmem:[#allocation2 + $0x48] sm:$0xff] }
  0xd6   :  { %5609 = vst [vmem:[#allocation24_spill] sm:$0xff] %v3332_v42  ;;  %5610 = vst [vmem:[#allocation131_spill] sm:$0xff] %v3335_v31  ;;  %vm752_vm6 = vcmp.ge.f32.partialorder %v3335_v31, 0.0  ;;  %vm753_vm7 = vcmp.ge.f32.partialorder %v3338_v0, 0.0  ;;  %v3341_v59 = vld [vmem:[#allocation2 + $0x50] sm:$0xff]  ;;  %v3344_v27 = vld [vmem:[#allocation2 + $0x58] sm:$0xff] }
  0xd7   :  { %5611 = vst [vmem:[#allocation115_spill] sm:$0xff] %v3338_v0  ;;  %5612 = vst [vmem:[#allocation143_spill] sm:$0xff] %v3341_v59  ;;  %vm754_vm11 = vcmp.ge.f32.partialorder %v3341_v59, 0.0  ;;  %v3347_v61 = vld [vmem:[#allocation2 + $0x60] sm:$0xff]  ;;  %v3350_v26 = vld [vmem:[#allocation2 + $0x68] sm:$0xff] }
  0xd8   :  { %5613 = vst [vmem:[#allocation25_spill] sm:$0xff] %v3344_v27  ;;  %5614 = vst [vmem:[#allocation92_spill] sm:$0xff] %v3347_v61  ;;  %v5616_v1 = vld [vmem:[#allocation41_spill] sm:$0xff]  ;;  %v5618_v15 = vld [vmem:[#allocation42_spill] sm:$0xff] }
  0xd9   :  { %5615 = vst [vmem:[#allocation26_spill] sm:$0xff] %v3350_v26  ;;  %v5617_v46 = vld [vmem:[#allocation81_spill] sm:$0xff]  ;;  %v5619_v12 = vld [vmem:[#allocation82_spill] sm:$0xff]  ;;  %v3361_v43 = vld [vmem:[#allocation2 + $0x70] sm:$0xff] }
  0xda   :  { %v3355_v58 = vmul.f32 %v5617_v46, %v5616_v1  ;;  %v3359_v40 = vmul.f32 %v5619_v12, %v5618_v15  ;;  %5620 = vst [vmem:[#allocation137_spill] sm:$0xff] %v3361_v43  ;;  %v3364_v11 = vld [vmem:[#allocation2 + $0x78] sm:$0xff]  ;;  %v3367_v38 = vld [vmem:[#allocation2 + $0x80] sm:$0xff]  ;;  %v3370_v21 = vld [vmem:[#allocation2 + $0x88] sm:$0xff] }
  0xdb   :  { %5621 = vst [vmem:[#allocation121_spill] sm:$0xff] %v3364_v11  ;;  %5622 = vst [vmem:[#allocation95_spill] sm:$0xff] %v3367_v38  ;;  %v5624_v1 = vld [vmem:[#allocation43_spill] sm:$0xff]  ;;  %v5626_v37 = vld [vmem:[#allocation44_spill] sm:$0xff] }
  0xdc   :  { %5623 = vst [vmem:[#allocation27_spill] sm:$0xff] %v3370_v21  ;;  %v5625_v32 = vld [vmem:[#allocation83_spill] sm:$0xff]  ;;  %v5627_v2 = vld [vmem:[#allocation84_spill] sm:$0xff]  ;;  %v5628_v53 = vld [vmem:[#allocation45_spill] sm:$0xff] }
  0xdd   :  { %v778_v15 = vmul.f32 %v5625_v32, %v5624_v1  ;;  %v779_v4 = vmul.f32 %v5627_v2, %v5626_v37  ;;  %v5629_v63 = vld [vmem:[#allocation85_spill] sm:$0xff]  ;;  %v5630_v29 = vld [vmem:[#allocation46_spill] sm:$0xff]  ;;  %v5631_v45 = vld [vmem:[#allocation87_spill] sm:$0xff] }
  0xde   :  { %v780_v18 = vmul.f32 %v5629_v63, %v5628_v53  ;;  %v781_v56 = vmul.f32 %v5631_v45, %v5630_v29  ;;  %v3381_v49 = vld [vmem:[#allocation2 + $0x90] sm:$0xff]  ;;  %v3384_v10 = vld [vmem:[#allocation2 + $0x98] sm:$0xff]  ;;  %v3387_v54 = vld [vmem:[#allocation2 + $0xa0] sm:$0xff] }
  0xdf   :  { %5632 = vst [vmem:[#allocation122_spill] sm:$0xff] %v3381_v49  ;;  %5633 = vst [vmem:[#allocation118_spill] sm:$0xff] %v3384_v10  ;;  %v3390_v1 = vld [vmem:[#allocation2 + $0xa8] sm:$0xff]  ;;  %v5637_v37 = vld [vmem:[#allocation90_spill] sm:$0xff] }
  0xe0   :  { %5634 = vst [vmem:[#allocation28_spill] sm:$0xff] %v3387_v54  ;;  %5635 = vst [vmem:[#allocation139_spill] sm:$0xff] %v3390_v1  ;;  %v5636_v53 = vld [vmem:[#allocation47_spill] sm:$0xff]  ;;  %v5638_v29 = vld [vmem:[#allocation48_spill] sm:$0xff] }
  0xe1   :  { %v782_v35 = vmul.f32 %v5637_v37, %v5636_v53  ;;  %v5639_v7 = vld [vmem:[#allocation91_spill] sm:$0xff]  ;;  %v5640_v20 = vld [vmem:[#allocation49_spill] sm:$0xff]  ;;  %v5641_v57 = vld [vmem:[#allocation94_spill] sm:$0xff] }
  0xe2   :  { %v783_v23 = vmul.f32 %v5639_v7, %v5638_v29  ;;  %v784_v25 = vmul.f32 %v5641_v57, %v5640_v20  ;;  %v5642_v33 = vld [vmem:[#allocation50_spill] sm:$0xff]  ;;  %v3401_v13 = vld [vmem:[#allocation2 + $0xb0] sm:$0xff]  ;;  %v3404_v41 = vld [vmem:[#allocation2 + $0xb8] sm:$0xff] }
  0xe3   :  { %v5643_v55 = vld [vmem:[#allocation34_spill] sm:$0xff]  ;;  %5644 = vst [vmem:[#allocation29_spill] sm:$0xff] %v3401_v13  ;;  %5645 = vst [vmem:[#allocation142_spill] sm:$0xff] %v3404_v41  ;;  %v3410_v53 = vld [vmem:[#allocation2 + $0xc8] sm:$0xff] }
  0xe4   :  { %v785_v22 = vmul.f32 %v5643_v55, %v5642_v33  ;;  %v3407_v19 = vld [vmem:[#allocation2 + $0xc0] sm:$0xff]  ;;  %5647 = vst [vmem:[#allocation146_spill] sm:$0xff] %v3410_v53  ;;  %v5648_v20 = vld [vmem:[#allocation51_spill] sm:$0xff]  ;;  %v5649_v29 = vld [vmem:[#allocation36_spill] sm:$0xff] }
  0xe5   :  { %5646 = vst [vmem:[#allocation124_spill] sm:$0xff] %v3407_v19  ;;  %v786_v28 = vmul.f32 %v5649_v29, %v5648_v20  ;;  %v5650_v33 = vld [vmem:[#allocation52_spill] sm:$0xff]  ;;  %v5651_v8 = vld [vmem:[#allocation97_spill] sm:$0xff]  ;;  %v5653_v5 = vld [vmem:[#allocation99_spill] sm:$0xff] }
  0xe6   :  { %v787_v3 = vmul.f32 %v5651_v8, %v5650_v33  ;;  %v5652_v44 = vld [vmem:[#allocation53_spill] sm:$0xff]  ;;  %v5654_v9 = vld [vmem:[#allocation54_spill] sm:$0xff]  ;;  %v1784_v47 = vld [vmem:[#allocation2 + $0xd0] sm:$0xff] }
  0xe7   :  { %v788_v60 = vmul.f32 %v5653_v5, %v5652_v44  ;;  %v5655_v30 = vld [vmem:[#allocation101_spill] sm:$0xff]  ;;  %v1786_v19 = vld [vmem:[#allocation2 + $0xe0] sm:$0xff]  ;;  %v1787_v13 = vld [vmem:[#allocation2 + $0xe8] sm:$0xff] }
  0xe8   :  { %v789_v17 = vmul.f32 %v5655_v30, %v5654_v9  ;;  %v1785_v41 = vld [vmem:[#allocation2 + $0xd8] sm:$0xff]  ;;  %vm772_vm13 = vcmp.ge.f32.partialorder %v1786_v19, 0.0  ;;  %vm773_vm4 = vcmp.ge.f32.partialorder %v1787_v13, 0.0  ;;  %v5656_v53 = vld [vmem:[#allocation55_spill] sm:$0xff]  ;;  %v5657_v1 = vld [vmem:[#allocation104_spill] sm:$0xff] }
  0xe9   :  { %v790_v20 = vmul.f32 %v5657_v1, %v5656_v53  ;;  %v5658_v54 = vld [vmem:[#allocation57_spill] sm:$0xff]  ;;  %v5660_v49 = vld [vmem:[#allocation59_spill] sm:$0xff]  ;;  %v5661_v21 = vld [vmem:[#allocation106_spill] sm:$0xff] }
  0xea   :  { %v5659_v10 = vld [vmem:[#allocation105_spill] sm:$0xff]  ;;  %v792_v44 = vmul.f32 %v5661_v21, %v5660_v49  ;;  %v5663_v11 = vld [vmem:[#allocation107_spill] sm:$0xff]  ;;  %v1788_v43 = vld [vmem:[#allocation2 + $0xf0] sm:$0xff] }
  0xeb   :  { %v791_v33 = vmul.f32 %v5659_v10, %v5658_v54  ;;  %v5662_v38 = vld [vmem:[#allocation61_spill] sm:$0xff]  ;;  %vm774_vm14 = vcmp.ge.f32.partialorder %v1788_v43, 0.0  ;;  %v5664_v30 = vld [vmem:[#allocation63_spill] sm:$0xff]  ;;  %v5665_v61 = vld [vmem:[#allocation108_spill] sm:$0xff] }
  0xec   :  { %v793_v9 = vmul.f32 %v5663_v11, %v5662_v38  ;;  %v1789_v26 = vld [vmem:[#allocation2 + $0xf8] sm:$0xff]  ;;  %v794_v5 = vmul.f32 %v5665_v61, %v5664_v30  ;;  %v5668_v53 = vld [vmem:[#allocation67_spill] sm:$0xff]  ;;  %v5669_v1 = vld [vmem:[#allocation56_spill] sm:$0xff] }
  0xed   :  { %vm775_vm12 = vcmp.ge.f32.partialorder %v1789_v26, 0.0  ;;  %v5666_v27 = vld [vmem:[#allocation65_spill] sm:$0xff]  ;;  %v796_v29 = vmul.f32 %v5669_v1, %v5668_v53  ;;  %v5671_v10 = vld [vmem:[#allocation58_spill] sm:$0xff]  ;;  %v5672_v49 = vld [vmem:[#allocation71_spill] sm:$0xff] }
  0xee   :  { %v5667_v8 = vld [vmem:[#allocation109_spill] sm:$0xff]  ;;  %v5673_v21 = vld [vmem:[#allocation60_spill] sm:$0xff]  ;;  %v5675_v11 = vld [vmem:[#allocation110_spill] sm:$0xff] }
  0xef   :  { %v795_v59 = vmul.f32 %v5667_v8, %v5666_v27  ;;  %v5670_v54 = vld [vmem:[#allocation69_spill] sm:$0xff]  ;;  %v798_v55 = vmul.f32 %v5673_v21, %v5672_v49  ;;  %v5674_v38 = vld [vmem:[#allocation72_spill] sm:$0xff]  ;;  %v5676_v57 = vld [vmem:[#allocation74_spill] sm:$0xff] }
  0xf0   :  { %v797_v0 = vmul.f32 %v5671_v10, %v5670_v54  ;;  %v799_v31 = vmul.f32 %v5675_v11, %v5674_v38  ;;  %v5677_v42 = vld [vmem:[#allocation64_spill] sm:$0xff]  ;;  %v5679_v30 = vld [vmem:[#allocation111_spill] sm:$0xff]  ;;  %v5682_v53 = vld [vmem:[#allocation70_spill] sm:$0xff] }
  0xf1   :  { %v800_v7 = vmul.f32 %v5677_v42, %v5676_v57  ;;  %v5678_v34 = vld [vmem:[#allocation76_spill] sm:$0xff]  ;;  %v5680_v37 = vld [vmem:[#allocation11_spill] sm:$0xff]  ;;  %v803_v1 = vmul.f32 %v5682_v53, %v5456_v50  ;;  %v5684_v49 = vld [vmem:[#allocation114_spill] sm:$0xff]  ;;  %v3467_v50 = vsel %vm745_vm2, %v5619_v12, %v3359_v40 }
  0xf2   :  { %v801_v61 = vmul.f32 %v5679_v30, %v5678_v34  ;;  %v5681_v27 = vld [vmem:[#allocation68_spill] sm:$0xff]  ;;  %v805_v21 = vmul.f32 %v5684_v49, %v5460_v39  ;;  %v5686_v57 = vld [vmem:[#allocation119_spill] sm:$0xff]  ;;  %v3461_v34 = vsel %vm744_vm1, %v5617_v46, %v3355_v58  ;;  %v3472_v39 = vsel %vm746_vm15, %v5625_v32, %v778_v15  ;;  %v5687_v48 = vld [vmem:[#allocation90_spill] sm:$0xff] }
  0xf3   :  { %v802_v8 = vmul.f32 %v5681_v27, %v5680_v37  ;;  %v5683_v54 = vld [vmem:[#allocation112_spill] sm:$0xff]  ;;  %v807_v42 = vmul.f32 %v5686_v57, %v5463_v16  ;;  %v3482_v16 = vsel %vm748_vm10, %v5629_v63, %v780_v18  ;;  %v3492_v6 = vsel %vm750_vm3, %v5687_v48, %v782_v35  ;;  %v5689_v32 = vld [vmem:[#allocation91_spill] sm:$0xff]  ;;  %v5693_v18 = vld [vmem:[#allocation34_spill] sm:$0xff] }
  0xf4   :  { %v804_v10 = vmul.f32 %v5683_v54, %v5459_v36  ;;  %v5685_v38 = vld [vmem:[#allocation116_spill] sm:$0xff]  ;;  %v3487_v36 = vsel %vm749_vm9, %v5631_v45, %v781_v56  ;;  %v3507_v56 = vsel %vm753_vm7, %v5693_v18, %v785_v22  ;;  %v5697_v58 = vld [vmem:[#allocation97_spill] sm:$0xff]  ;;  %v5700_v40 = vld [vmem:[#allocation99_spill] sm:$0xff] }
  0xf5   :  { %v806_v11 = vmul.f32 %v5685_v38, %v5461_v51  ;;  %v3477_v51 = vsel %vm747_vm8, %v5627_v2, %v779_v4  ;;  %v3497_v4 = vsel %vm751_vm5, %v5689_v32, %v783_v23  ;;  %v5691_v2 = vld [vmem:[#allocation94_spill] sm:$0xff]  ;;  %v5695_v45 = vld [vmem:[#allocation36_spill] sm:$0xff]  ;;  %v5698_v12 = vld [vmem:[#allocation25_spill] sm:$0xff] }
  0xf6   :  { %v3502_v63 = vsel %vm752_vm6, %v5691_v2, %v784_v25  ;;  %v3512_v35 = vsel %vm754_vm11, %v5695_v45, %v786_v28  ;;  %vm5699_vm1 = vcmp.ge.f32.partialorder %v5698_v12, 0.0  ;;  %v5701_v15 = vld [vmem:[#allocation92_spill] sm:$0xff]  ;;  %v5703_v37 = vld [vmem:[#allocation101_spill] sm:$0xff]  ;;  %v5704_v48 = vld [vmem:[#allocation26_spill] sm:$0xff] }
  0xf7   :  { %v3517_v23 = vsel %vm5699_vm1, %v5697_v58, %v787_v3  ;;  %vm5702_vm2 = vcmp.ge.f32.partialorder %v5701_v15, 0.0  ;;  %vm5705_vm15 = vcmp.ge.f32.partialorder %v5704_v48, 0.0  ;;  %v5706_v14 = vld [vmem:[#allocation104_spill] sm:$0xff]  ;;  %v5707_v32 = vld [vmem:[#allocation137_spill] sm:$0xff]  ;;  %v5712_v24 = vld [vmem:[#allocation106_spill] sm:$0xff] }
  0xf8   :  { %v3522_v25 = vsel %vm5702_vm2, %v5700_v40, %v788_v60  ;;  %v3527_v22 = vsel %vm5705_vm15, %v5703_v37, %v789_v17  ;;  %vm5708_vm8 = vcmp.ge.f32.partialorder %v5707_v32, 0.0  ;;  %v5709_v46 = vld [vmem:[#allocation105_spill] sm:$0xff]  ;;  %v5713_v18 = vld [vmem:[#allocation95_spill] sm:$0xff]  ;;  %v5718_v52 = vld [vmem:[#allocation108_spill] sm:$0xff] }
  0xf9   :  { %v3532_v28 = vsel %vm5708_vm8, %v5706_v14, %v790_v20  ;;  %v5710_v2 = vld [vmem:[#allocation121_spill] sm:$0xff]  ;;  %vm5714_vm9 = vcmp.ge.f32.partialorder %v5713_v18, 0.0  ;;  %v5715_v62 = vld [vmem:[#allocation107_spill] sm:$0xff]  ;;  %v5719_v58 = vld [vmem:[#allocation122_spill] sm:$0xff] }
  0xfa   :  { %vm5711_vm10 = vcmp.ge.f32.partialorder %v5710_v2, 0.0  ;;  %v3542_v60 = vsel %vm5714_vm9, %v5712_v24, %v792_v44  ;;  %v5716_v45 = vld [vmem:[#allocation27_spill] sm:$0xff]  ;;  %vm5720_vm5 = vcmp.ge.f32.partialorder %v5719_v58, 0.0  ;;  %v5721_v12 = vld [vmem:[#allocation109_spill] sm:$0xff]  ;;  %v5722_v40 = vld [vmem:[#allocation118_spill] sm:$0xff]  ;;  %vm5748_vm9 = vcmp.ge.f32.partialorder %v1785_v41, 0.0 }
  0xfb   :  { %v3537_v3 = vsel %vm5711_vm10, %v5709_v46, %v791_v33  ;;  %vm5717_vm3 = vcmp.ge.f32.partialorder %v5716_v45, 0.0  ;;  %v3552_v20 = vsel %vm5720_vm5, %v5718_v52, %v794_v5  ;;  %vm5723_vm6 = vcmp.ge.f32.partialorder %v5722_v40, 0.0  ;;  %v5724_v15 = vld [vmem:[#allocation56_spill] sm:$0xff]  ;;  %v5727_v48 = vld [vmem:[#allocation58_spill] sm:$0xff]  ;;  %v5728_v14 = vld [vmem:[#allocation139_spill] sm:$0xff] }
  0xfc   :  { %v3547_v17 = vsel %vm5717_vm3, %v5715_v62, %v793_v9  ;;  %v3557_v33 = vsel %vm5723_vm6, %v5721_v12, %v795_v59  ;;  %v5725_v37 = vld [vmem:[#allocation28_spill] sm:$0xff]  ;;  %vm5729_vm11 = vcmp.ge.f32.partialorder %v5728_v14, 0.0  ;;  %v5732_v46 = vld [vmem:[#allocation29_spill] sm:$0xff]  ;;  %v5735_v2 = vld [vmem:[#allocation110_spill] sm:$0xff]  ;;  %vm5746_vm10 = vcmp.ge.f32.partialorder %v1784_v47, 0.0 }
  0xfd   :  { %vm5726_vm7 = vcmp.ge.f32.partialorder %v5725_v37, 0.0  ;;  %v3567_v9 = vsel %vm5729_vm11, %v5727_v48, %v797_v0  ;;  %v5731_v32 = vld [vmem:[#allocation60_spill] sm:$0xff]  ;;  %vm5733_vm1 = vcmp.ge.f32.partialorder %v5732_v46, 0.0  ;;  %v5736_v24 = vld [vmem:[#allocation142_spill] sm:$0xff]  ;;  %v3591_v52 = vsel %vm5746_vm10, %v5681_v27, %v802_v8  ;;  %v3619_v19 = vld [vmem:[#allocation5 + $0x8] sm:$0xff] }
  0xfe   :  { %v3562_v44 = vsel %vm5726_vm7, %v5724_v15, %v796_v29  ;;  %5730 = vst [vmem:[#allocation31_spill] sm:$0xff] %v3567_v9  ;;  %v3572_v5 = vsel %vm5733_vm1, %v5731_v32, %v798_v55  ;;  %vm5737_vm2 = vcmp.ge.f32.partialorder %v5736_v24, 0.0  ;;  %v5739_v18 = vld [vmem:[#allocation64_spill] sm:$0xff]  ;;  %v5743_v45 = vld [vmem:[#allocation146_spill] sm:$0xff]  ;;  %5747 = vst [vmem:[#allocation145_spill] sm:$0xff] %v3591_v52  ;;  %v3595_v55 = vsel %vm5748_vm9, %v5682_v53, %v803_v1 }
  0xff   :  { %5734 = vst [vmem:[#allocation144_spill] sm:$0xff] %v3572_v5  ;;  %v3577_v59 = vsel %vm5737_vm2, %v5735_v2, %v799_v31  ;;  %v5740_v62 = vld [vmem:[#allocation124_spill] sm:$0xff]  ;;  %vm5744_vm8 = vcmp.ge.f32.partialorder %v5743_v45, 0.0  ;;  %5749 = vst [vmem:[#allocation132_spill] sm:$0xff] %v3595_v55  ;;  %v3599_v31 = vsel %vm772_vm13, %v5683_v54, %v804_v10  ;;  %v3611_v47 = vsel %vm775_vm12, %v5686_v57, %v807_v42  ;;  %v3613_v8 = vld [vmem:[#allocation5] sm:$0xff] }
 0x100   :  { %5738 = vst [vmem:[#allocation130_spill] sm:$0xff] %v3577_v59  ;;  %vm5741_vm15 = vcmp.ge.f32.partialorder %v5740_v62, 0.0  ;;  %v3587_v0 = vsel %vm5744_vm8, %v5679_v30, %v801_v61  ;;  %5750 = vst [vmem:[#allocation147_spill] sm:$0xff] %v3599_v31  ;;  %v3607_v61 = vsel %vm774_vm14, %v5685_v38, %v806_v11  ;;  %v3617_v41 = vmul.f32 %v3613_v8, %v3461_v34  ;;  %v3625_v10 = vld [vmem:[#allocation5 + $0x10] sm:$0xff]  ;;  %v3631_v42 = vld [vmem:[#allocation5 + $0x18] sm:$0xff] }
 0x101   :  { %v3582_v29 = vsel %vm5741_vm15, %v5739_v18, %v800_v7  ;;  %5745 = vst [vmem:[#allocation33_spill] sm:$0xff] %v3587_v0  ;;  %v3603_v7 = vsel %vm773_vm4, %v5684_v49, %v805_v21  ;;  %5752 = vst [vmem:[#allocation62_spill] sm:$0xff] %v3607_v61  ;;  %v3623_v13 = vmul.f32 %v3619_v19, %v3467_v50  ;;  %v3637_v11 = vld [vmem:[#allocation5 + $0x20] sm:$0xff]  ;;  %v3643_v1 = vld [vmem:[#allocation5 + $0x28] sm:$0xff] }
 0x102   :  { %5742 = vst [vmem:[#allocation96_spill] sm:$0xff] %v3582_v29  ;;  %5751 = vst [vmem:[#allocation37_spill] sm:$0xff] %v3603_v7  ;;  %v3629_v43 = vmul.f32 %v3625_v10, %v3472_v39  ;;  %v3635_v26 = vmul.f32 %v3631_v42, %v3477_v51  ;;  %v3641_v21 = vmul.f32 %v3637_v11, %v3482_v16  ;;  %v3649_v27 = vld [vmem:[#allocation5 + $0x30] sm:$0xff]  ;;  %v3655_v54 = vld [vmem:[#allocation5 + $0x38] sm:$0xff] }
 0x103   :  { %5753 = vst [vmem:[#allocation134_spill] sm:$0xff] %v3617_v41  ;;  %5754 = vst [vmem:[#allocation98_spill] sm:$0xff] %v3623_v13  ;;  %v3647_v30 = vmul.f32 %v3643_v1, %v3487_v36  ;;  %v3653_v53 = vmul.f32 %v3649_v27, %v3492_v6  ;;  %v3659_v49 = vmul.f32 %v3655_v54, %v3497_v4  ;;  %v3661_v38 = vld [vmem:[#allocation5 + $0x40] sm:$0xff]  ;;  %v3667_v58 = vld [vmem:[#allocation5 + $0x48] sm:$0xff] }
 0x104   :  { %5755 = vst [vmem:[#allocation39_spill] sm:$0xff] %v3629_v43  ;;  %5756 = vst [vmem:[#allocation40_spill] sm:$0xff] %v3635_v26  ;;  %v3665_v57 = vmul.f32 %v3661_v38, %v3502_v63  ;;  %v3671_v12 = vmul.f32 %v3667_v58, %v3507_v56  ;;  %v3673_v40 = vld [vmem:[#allocation5 + $0x50] sm:$0xff]  ;;  %v3679_v37 = vld [vmem:[#allocation5 + $0x58] sm:$0xff] }
 0x105   :  { %5757 = vst [vmem:[#allocation86_spill] sm:$0xff] %v3641_v21  ;;  %5758 = vst [vmem:[#allocation88_spill] sm:$0xff] %v3647_v30  ;;  %v3677_v15 = vmul.f32 %v3673_v40, %v3512_v35  ;;  %v3683_v48 = vmul.f32 %v3679_v37, %v3517_v23  ;;  %v3685_v14 = vld [vmem:[#allocation5 + $0x60] sm:$0xff]  ;;  %v3691_v46 = vld [vmem:[#allocation5 + $0x68] sm:$0xff] }
 0x106   :  { %5759 = vst [vmem:[#allocation89_spill] sm:$0xff] %v3653_v53  ;;  %5760 = vst [vmem:[#allocation30_spill] sm:$0xff] %v3659_v49  ;;  %v3689_v32 = vmul.f32 %v3685_v14, %v3522_v25  ;;  %v3695_v2 = vmul.f32 %v3691_v46, %v3527_v22  ;;  %v3697_v24 = vld [vmem:[#allocation5 + $0x70] sm:$0xff]  ;;  %v3703_v62 = vld [vmem:[#allocation5 + $0x78] sm:$0xff] }
 0x107   :  { %5761 = vst [vmem:[#allocation32_spill] sm:$0xff] %v3665_v57  ;;  %5762 = vst [vmem:[#allocation93_spill] sm:$0xff] %v3671_v12  ;;  %v3701_v18 = vmul.f32 %v3697_v24, %v3532_v28  ;;  %v3707_v45 = vmul.f32 %v3703_v62, %v3537_v3  ;;  %v3721_v12 = vld [vmem:[#allocation5 + $0x90] sm:$0xff]  ;;  %v3727_v57 = vld [vmem:[#allocation5 + $0x98] sm:$0xff] }
 0x108   :  { %5763 = vst [vmem:[#allocation73_spill] sm:$0xff] %v3677_v15  ;;  %5764 = vst [vmem:[#allocation35_spill] sm:$0xff] %v3679_v37  ;;  %v3715_v15 = vld [vmem:[#allocation5 + $0x88] sm:$0xff]  ;;  %v3733_v49 = vld [vmem:[#allocation5 + $0xa0] sm:$0xff] }
 0x109   :  { %5765 = vst [vmem:[#allocation75_spill] sm:$0xff] %v3683_v48  ;;  %5766 = vst [vmem:[#allocation41_spill] sm:$0xff] %v3685_v14  ;;  %v3709_v48 = vld [vmem:[#allocation5 + $0x80] sm:$0xff]  ;;  %v3739_v53 = vld [vmem:[#allocation5 + $0xa8] sm:$0xff] }
 0x10a   :  { %5767 = vst [vmem:[#allocation81_spill] sm:$0xff] %v3689_v32  ;;  %5768 = vst [vmem:[#allocation42_spill] sm:$0xff] %v3691_v46  ;;  %v3713_v32 = vmul.f32 %v3709_v48, %v3542_v60  ;;  %v3745_v30 = vld [vmem:[#allocation5 + $0xb0] sm:$0xff]  ;;  %v3751_v21 = vld [vmem:[#allocation5 + $0xb8] sm:$0xff] }
 0x10b   :  { %5769 = vst [vmem:[#allocation82_spill] sm:$0xff] %v3695_v2  ;;  %5770 = vst [vmem:[#allocation43_spill] sm:$0xff] %v3697_v24  ;;  %v3719_v2 = vmul.f32 %v3715_v15, %v3547_v17  ;;  %v3757_v26 = vld [vmem:[#allocation5 + $0xc0] sm:$0xff]  ;;  %v3763_v43 = vld [vmem:[#allocation5 + $0xc8] sm:$0xff] }
 0x10c   :  { %5771 = vst [vmem:[#allocation83_spill] sm:$0xff] %v3701_v18  ;;  %5772 = vst [vmem:[#allocation44_spill] sm:$0xff] %v3703_v62  ;;  %v3725_v18 = vmul.f32 %v3721_v12, %v3552_v20  ;;  %v3769_v13 = vld [vmem:[#allocation5 + $0xd0] sm:$0xff]  ;;  %v3775_v41 = vld [vmem:[#allocation5 + $0xd8] sm:$0xff] }
 0x10d   :  { %5773 = vst [vmem:[#allocation84_spill] sm:$0xff] %v3707_v45  ;;  %5774 = vst [vmem:[#allocation45_spill] sm:$0xff] %v3709_v48  ;;  %v3731_v45 = vmul.f32 %v3727_v57, %v3557_v33 }
 0x10e   :  { %5775 = vst [vmem:[#allocation85_spill] sm:$0xff] %v3713_v32  ;;  %5776 = vst [vmem:[#allocation46_spill] sm:$0xff] %v3715_v15  ;;  %v3737_v32 = vmul.f32 %v3733_v49, %v3562_v44 }
 0x10f   :  { %5777 = vst [vmem:[#allocation87_spill] sm:$0xff] %v3719_v2  ;;  %5778 = vst [vmem:[#allocation47_spill] sm:$0xff] %v3721_v12  ;;  %v3743_v2 = vmul.f32 %v3739_v53, %v3567_v9  ;;  %v910_v9 = vsub.f32 1.0, %v3492_v6  ;;  %v920_v6 = vsub.f32 1.0, %v3542_v60 }
 0x110   :  { %5779 = vst [vmem:[#allocation48_spill] sm:$0xff] %v3725_v18  ;;  %5780 = vst [vmem:[#allocation49_spill] sm:$0xff] %v3727_v57  ;;  %v3749_v18 = vmul.f32 %v3745_v30, %v3572_v5  ;;  %v907_v5 = vsub.f32 1.0, %v3477_v51  ;;  %v917_v51 = vsub.f32 1.0, %v3527_v22 }
 0x111   :  { %5781 = vst [vmem:[#allocation50_spill] sm:$0xff] %v3731_v45  ;;  %5782 = vst [vmem:[#allocation51_spill] sm:$0xff] %v3733_v49  ;;  %v3755_v45 = vmul.f32 %v3751_v21, %v3577_v59  ;;  %v904_v59 = vsub.f32 1.0, %v3461_v34  ;;  %v914_v34 = vsub.f32 1.0, %v3512_v35  ;;  %v924_v35 = vsub.f32 1.0, %v3562_v44 }
 0x112   :  { %5783 = vst [vmem:[#allocation52_spill] sm:$0xff] %v3737_v32  ;;  %5784 = vst [vmem:[#allocation53_spill] sm:$0xff] %v3739_v53  ;;  %v3761_v32 = vmul.f32 %v3757_v26, %v3582_v29  ;;  %v3781_v29 = vld [vmem:[#allocation5 + $0xe0] sm:$0xff] }
 0x113   :  { %5785 = vst [vmem:[#allocation54_spill] sm:$0xff] %v3743_v2  ;;  %5786 = vst [vmem:[#allocation55_spill] sm:$0xff] %v3745_v30  ;;  %v3767_v2 = vmul.f32 %v3763_v43, %v3587_v0  ;;  %v3787_v0 = vld [vmem:[#allocation5 + $0xe8] sm:$0xff]  ;;  %v5815_v30 = vld [vmem:[#allocation62_spill] sm:$0xff] }
 0x114   :  { %5787 = vst [vmem:[#allocation57_spill] sm:$0xff] %v3749_v18  ;;  %5788 = vst [vmem:[#allocation59_spill] sm:$0xff] %v3751_v21  ;;  %v3773_v18 = vmul.f32 %v3769_v13, %v3591_v52  ;;  %v3793_v52 = vld [vmem:[#allocation5 + $0xf0] sm:$0xff]  ;;  %v5814_v21 = vld [vmem:[#allocation37_spill] sm:$0xff]  ;;  %v934_v44 = vsub.f32 1.0, %v5815_v30 }
 0x115   :  { %5789 = vst [vmem:[#allocation61_spill] sm:$0xff] %v3755_v45  ;;  %5790 = vst [vmem:[#allocation63_spill] sm:$0xff] %v3757_v26  ;;  %v3779_v45 = vmul.f32 %v3775_v41, %v3595_v55  ;;  %v3799_v55 = vld [vmem:[#allocation5 + $0xf8] sm:$0xff]  ;;  %v5813_v26 = vld [vmem:[#allocation147_spill] sm:$0xff] }
 0x116   :  { %5791 = vst [vmem:[#allocation65_spill] sm:$0xff] %v3761_v32  ;;  %5792 = vst [vmem:[#allocation67_spill] sm:$0xff] %v3763_v43  ;;  %v3785_v32 = vmul.f32 %v3781_v29, %v3599_v31  ;;  %v913_v31 = vsub.f32 1.0, %v3507_v56  ;;  %v923_v56 = vsub.f32 1.0, %v3557_v33  ;;  %v5812_v43 = vld [vmem:[#allocation132_spill] sm:$0xff]  ;;  %v933_v33 = vsub.f32 1.0, %v5814_v21 }
 0x117   :  { %5793 = vst [vmem:[#allocation69_spill] sm:$0xff] %v3767_v2  ;;  %5794 = vst [vmem:[#allocation71_spill] sm:$0xff] %v3769_v13  ;;  %v3791_v2 = vmul.f32 %v3787_v0, %v3603_v7  ;;  %v906_v7 = vsub.f32 1.0, %v3472_v39  ;;  %v916_v39 = vsub.f32 1.0, %v3522_v25  ;;  %v5811_v13 = vld [vmem:[#allocation145_spill] sm:$0xff]  ;;  %v5821_v21 = vsub.f32 1.0, %v3643_v1 }
 0x118   :  { %5795 = vst [vmem:[#allocation72_spill] sm:$0xff] %v3773_v18  ;;  %5796 = vst [vmem:[#allocation74_spill] sm:$0xff] %v3775_v41  ;;  %v3797_v18 = vmul.f32 %v3793_v52, %v3607_v61  ;;  %v909_v61 = vsub.f32 1.0, %v3487_v36  ;;  %v919_v36 = vsub.f32 1.0, %v3537_v3  ;;  %v5810_v41 = vld [vmem:[#allocation33_spill] sm:$0xff]  ;;  %v930_v60 = vsub.f32 1.0, %v5811_v13 }
 0x119   :  { %5797 = vst [vmem:[#allocation76_spill] sm:$0xff] %v3779_v45  ;;  %5798 = vst [vmem:[#allocation111_spill] sm:$0xff] %v3781_v29  ;;  %v3803_v45 = vmul.f32 %v3799_v55, %v3611_v47  ;;  %v5809_v29 = vld [vmem:[#allocation96_spill] sm:$0xff]  ;;  %v929_v3 = vsub.f32 1.0, %v5810_v41  ;;  %v5818_v41 = vsub.f32 1.0, %v3625_v10  ;;  %v5819_v13 = vsub.f32 1.0, %v3631_v42 }
 0x11a   :  { %5799 = vst [vmem:[#allocation11_spill] sm:$0xff] %v3785_v32  ;;  %5800 = vst [vmem:[#allocation68_spill] sm:$0xff] %v3787_v0  ;;  %v912_v32 = vsub.f32 1.0, %v3502_v63  ;;  %v922_v63 = vsub.f32 1.0, %v3552_v20  ;;  %v5808_v0 = vld [vmem:[#allocation130_spill] sm:$0xff]  ;;  %v932_v20 = vsub.f32 1.0, %v5813_v26  ;;  %v941_v30 = vmul.f32 %v909_v61, %v5821_v21 }
 0x11b   :  { %5801 = vst [vmem:[#allocation70_spill] sm:$0xff] %v3791_v2  ;;  %5802 = vst [vmem:[#allocation112_spill] sm:$0xff] %v3793_v52  ;;  %v905_v2 = vsub.f32 1.0, %v3467_v50  ;;  %v915_v50 = vsub.f32 1.0, %v3517_v23  ;;  %v5807_v52 = vld [vmem:[#allocation144_spill] sm:$0xff]  ;;  %v927_v22 = vsub.f32 1.0, %v5808_v0  ;;  %v938_v49 = vmul.f32 %v906_v7, %v5818_v41 }
 0x11c   :  { %5803 = vst [vmem:[#allocation114_spill] sm:$0xff] %v3797_v18  ;;  %5804 = vst [vmem:[#allocation116_spill] sm:$0xff] %v3799_v55  ;;  %v908_v18 = vsub.f32 1.0, %v3482_v16  ;;  %v918_v16 = vsub.f32 1.0, %v3532_v28  ;;  %v5806_v55 = vld [vmem:[#allocation31_spill] sm:$0xff]  ;;  %v926_v25 = vsub.f32 1.0, %v5807_v52 }
 0x11d   :  { %5805 = vst [vmem:[#allocation119_spill] sm:$0xff] %v3803_v45  ;;  %v911_v45 = vsub.f32 1.0, %v3497_v4  ;;  %v921_v4 = vsub.f32 1.0, %v3547_v17  ;;  %v925_v23 = vsub.f32 1.0, %v5806_v55  ;;  %v928_v28 = vsub.f32 1.0, %v5809_v29 }
 0x11e   :  { %v931_v17 = vsub.f32 1.0, %v5812_v43  ;;  %v935_v55 = vsub.f32 1.0, %v3611_v47  ;;  %v5816_v52 = vsub.f32 1.0, %v3613_v8  ;;  %v5817_v0 = vsub.f32 1.0, %v3619_v19 }
 0x11f   :  { %v939_v43 = vmul.f32 %v907_v5, %v5819_v13  ;;  %v5820_v26 = vsub.f32 1.0, %v3637_v11  ;;  %v5822_v47 = vsub.f32 1.0, %v3649_v27  ;;  %v5825_v7 = vsub.f32 1.0, %v3667_v58 }
 0x120   :  { %v936_v53 = vmul.f32 %v904_v59, %v5816_v52  ;;  %v937_v29 = vmul.f32 %v905_v2, %v5817_v0  ;;  %v5823_v59 = vsub.f32 1.0, %v3655_v54  ;;  %v5824_v2 = vsub.f32 1.0, %v3661_v38 }
 0x121   :  { %v940_v57 = vmul.f32 %v908_v18, %v5820_v26  ;;  %v942_v12 = vmul.f32 %v910_v9, %v5822_v47  ;;  %v945_v41 = vmul.f32 %v913_v31, %v5825_v7  ;;  %v5826_v5 = vsub.f32 1.0, %v3673_v40 }
 0x122   :  { %v943_v52 = vmul.f32 %v911_v45, %v5823_v59  ;;  %v944_v0 = vmul.f32 %v912_v32, %v5824_v2  ;;  %v5827_v18 = vsub.f32 1.0, %v3679_v37  ;;  %v5828_v61 = vsub.f32 1.0, %v3685_v14  ;;  %v5834_v37 = vld [vmem:[#allocation47_spill] sm:$0xff]  ;;  %v5836_v14 = vld [vmem:[#allocation49_spill] sm:$0xff] }
 0x123   :  { %v946_v13 = vmul.f32 %v914_v34, %v5826_v5  ;;  %v5829_v9 = vsub.f32 1.0, %v3691_v46  ;;  %v5830_v45 = vsub.f32 1.0, %v3697_v24  ;;  %v5831_v32 = vsub.f32 1.0, %v3703_v62  ;;  %v5838_v46 = vld [vmem:[#allocation51_spill] sm:$0xff]  ;;  %v5840_v24 = vld [vmem:[#allocation53_spill] sm:$0xff] }
 0x124   :  { %v947_v26 = vmul.f32 %v915_v50, %v5827_v18  ;;  %v948_v21 = vmul.f32 %v916_v39, %v5828_v61  ;;  %v5832_v31 = vsub.f32 1.0, %v3709_v48  ;;  %v5833_v34 = vsub.f32 1.0, %v3715_v15  ;;  %v5842_v62 = vld [vmem:[#allocation55_spill] sm:$0xff] }
 0x125   :  { %v949_v47 = vmul.f32 %v917_v51, %v5829_v9  ;;  %v950_v59 = vmul.f32 %v918_v16, %v5830_v45  ;;  %v951_v2 = vmul.f32 %v919_v36, %v5831_v32  ;;  %v5835_v50 = vsub.f32 1.0, %v5834_v37  ;;  %v5844_v48 = vld [vmem:[#allocation59_spill] sm:$0xff] }
 0x126   :  { %v952_v7 = vmul.f32 %v920_v6, %v5832_v31  ;;  %v953_v5 = vmul.f32 %v921_v4, %v5833_v34  ;;  %v5837_v39 = vsub.f32 1.0, %v5836_v14  ;;  %v5839_v51 = vsub.f32 1.0, %v5838_v46  ;;  %v5846_v15 = vld [vmem:[#allocation63_spill] sm:$0xff]  ;;  %v5852_v46 = vld [vmem:[#allocation74_spill] sm:$0xff] }
 0x127   :  { %v954_v18 = vmul.f32 %v922_v63, %v5835_v50  ;;  %v5841_v16 = vsub.f32 1.0, %v5840_v24  ;;  %v5843_v36 = vsub.f32 1.0, %v5842_v62  ;;  %v5845_v6 = vsub.f32 1.0, %v5844_v48  ;;  %v5848_v37 = vld [vmem:[#allocation67_spill] sm:$0xff]  ;;  %v5856_v62 = vld [vmem:[#allocation68_spill] sm:$0xff] }
 0x128   :  { %v955_v61 = vmul.f32 %v923_v56, %v5837_v39  ;;  %v956_v9 = vmul.f32 %v924_v35, %v5839_v51  ;;  %v5847_v4 = vsub.f32 1.0, %v5846_v15  ;;  %v5849_v63 = vsub.f32 1.0, %v5848_v37  ;;  %v5850_v14 = vld [vmem:[#allocation71_spill] sm:$0xff]  ;;  %v5858_v48 = vld [vmem:[#allocation112_spill] sm:$0xff]  ;;  %v5862_v37 = vld [vmem:[#allocation134_spill] sm:$0xff] }
 0x129   :  { %v957_v45 = vmul.f32 %v925_v23, %v5841_v16  ;;  %v958_v32 = vmul.f32 %v926_v25, %v5843_v36  ;;  %v959_v31 = vmul.f32 %v927_v22, %v5845_v6  ;;  %v5851_v56 = vsub.f32 1.0, %v5850_v14  ;;  %v5854_v24 = vld [vmem:[#allocation111_spill] sm:$0xff]  ;;  %v5860_v15 = vld [vmem:[#allocation116_spill] sm:$0xff] }
 0x12a   :  { %v960_v34 = vmul.f32 %v928_v28, %v5847_v4  ;;  %v961_v50 = vmul.f32 %v929_v3, %v5849_v63  ;;  %v5853_v35 = vsub.f32 1.0, %v5852_v46  ;;  %v5855_v23 = vsub.f32 1.0, %v5854_v24  ;;  %v5863_v63 = vld [vmem:[#allocation98_spill] sm:$0xff] }
 0x12b   :  { %v962_v39 = vmul.f32 %v930_v60, %v5851_v56  ;;  %v5857_v25 = vsub.f32 1.0, %v5856_v62  ;;  %v5859_v22 = vsub.f32 1.0, %v5858_v48  ;;  %v5861_v28 = vsub.f32 1.0, %v5860_v15  ;;  %v5864_v56 = vld [vmem:[#allocation39_spill] sm:$0xff] }
 0x12c   :  { %v963_v51 = vmul.f32 %v931_v17, %v5853_v35  ;;  %v964_v16 = vmul.f32 %v932_v20, %v5855_v23  ;;  %v3934_v3 = vadd.f32 %v936_v53, %v5862_v37  ;;  %v3937_v60 = vadd.f32 %v937_v29, %v5863_v63  ;;  %v5865_v35 = vld [vmem:[#allocation40_spill] sm:$0xff]  ;;  %v5867_v23 = vld [vmem:[#allocation86_spill] sm:$0xff] }
 0x12d   :  { %v965_v36 = vmul.f32 %v933_v33, %v5857_v25  ;;  %v966_v6 = vmul.f32 %v934_v44, %v5859_v22  ;;  %v967_v4 = vmul.f32 %v935_v55, %v5861_v28  ;;  %v3940_v17 = vadd.f32 %v938_v49, %v5864_v56  ;;  %v5869_v25 = vld [vmem:[#allocation88_spill] sm:$0xff]  ;;  %v5871_v22 = vld [vmem:[#allocation89_spill] sm:$0xff]  ;;  %v5873_v53 = vld [vmem:[#allocation30_spill] sm:$0xff] }
 0x12e   :  { %v3943_v20 = vadd.f32 %v939_v43, %v5865_v35  ;;  %v3946_v33 = vadd.f32 %v940_v57, %v5867_v23  ;;  %v3949_v44 = vadd.f32 %v941_v30, %v5869_v25  ;;  %v3952_v55 = vadd.f32 %v942_v12, %v5871_v22  ;;  %v5875_v29 = vld [vmem:[#allocation32_spill] sm:$0xff]  ;;  %v5877_v49 = vld [vmem:[#allocation93_spill] sm:$0xff]  ;;  %v5881_v57 = vld [vmem:[#allocation75_spill] sm:$0xff] }
 0x12f   :  { %v3955_v37 = vadd.f32 %v943_v52, %v5873_v53  ;;  %v3958_v28 = vadd.f32 %v944_v0, %v5875_v29  ;;  %v3961_v63 = vadd.f32 %v945_v41, %v5877_v49  ;;  %v5879_v43 = vld [vmem:[#allocation73_spill] sm:$0xff]  ;;  %v3967_v35 = vadd.f32 %v947_v26, %v5881_v57  ;;  %v5885_v12 = vld [vmem:[#allocation82_spill] sm:$0xff]  ;;  %v5887_v52 = vld [vmem:[#allocation83_spill] sm:$0xff] }
 0x130   :  { %5866 = vst [vmem:[#allocation90_spill] sm:$0xff] %v3943_v20  ;;  %5868 = vst [vmem:[#allocation141_spill] sm:$0xff] %v3946_v33  ;;  %v3964_v56 = vadd.f32 %v946_v13, %v5879_v43  ;;  %v5883_v30 = vld [vmem:[#allocation81_spill] sm:$0xff]  ;;  %v3973_v25 = vadd.f32 %v949_v47, %v5885_v12  ;;  %v3976_v22 = vadd.f32 %v950_v59, %v5887_v52  ;;  %v5889_v0 = vld [vmem:[#allocation84_spill] sm:$0xff] }
 0x131   :  { %5870 = vst [vmem:[#allocation91_spill] sm:$0xff] %v3949_v44  ;;  %5872 = vst [vmem:[#allocation24_spill] sm:$0xff] %v3952_v55  ;;  %v3970_v23 = vadd.f32 %v948_v21, %v5883_v30  ;;  %v3979_v53 = vadd.f32 %v951_v2, %v5889_v0  ;;  %v5891_v41 = vld [vmem:[#allocation85_spill] sm:$0xff]  ;;  %v5893_v13 = vld [vmem:[#allocation87_spill] sm:$0xff]  ;;  %v4108_v44 = vmul.f32 0.25, %v5850_v14 }
 0x132   :  { %5874 = vst [vmem:[#allocation94_spill] sm:$0xff] %v3955_v37  ;;  %5876 = vst [vmem:[#allocation131_spill] sm:$0xff] %v3958_v28  ;;  %v3982_v29 = vadd.f32 %v952_v7, %v5891_v41  ;;  %v3985_v49 = vadd.f32 %v953_v5, %v5893_v13  ;;  %v5895_v26 = vld [vmem:[#allocation48_spill] sm:$0xff]  ;;  %v5897_v21 = vld [vmem:[#allocation50_spill] sm:$0xff] }
 0x133   :  { %5878 = vst [vmem:[#allocation34_spill] sm:$0xff] %v3961_v63  ;;  %5880 = vst [vmem:[#allocation115_spill] sm:$0xff] %v3964_v56  ;;  %v3988_v43 = vadd.f32 %v954_v18, %v5895_v26  ;;  %v3991_v57 = vadd.f32 %v955_v61, %v5897_v21  ;;  %v5899_v47 = vld [vmem:[#allocation52_spill] sm:$0xff]  ;;  %v5901_v59 = vld [vmem:[#allocation54_spill] sm:$0xff] }
 0x134   :  { %5882 = vst [vmem:[#allocation36_spill] sm:$0xff] %v3967_v35  ;;  %5884 = vst [vmem:[#allocation143_spill] sm:$0xff] %v3970_v23  ;;  %v3994_v30 = vadd.f32 %v956_v9, %v5899_v47  ;;  %v3997_v12 = vadd.f32 %v957_v45, %v5901_v59  ;;  %v5903_v2 = vld [vmem:[#allocation57_spill] sm:$0xff]  ;;  %v5911_v61 = vld [vmem:[#allocation72_spill] sm:$0xff] }
 0x135   :  { %5886 = vst [vmem:[#allocation97_spill] sm:$0xff] %v3973_v25  ;;  %5888 = vst [vmem:[#allocation25_spill] sm:$0xff] %v3976_v22  ;;  %v4000_v52 = vadd.f32 %v958_v32, %v5903_v2  ;;  %v5905_v7 = vld [vmem:[#allocation61_spill] sm:$0xff]  ;;  %v4012_v26 = vadd.f32 %v962_v39, %v5911_v61  ;;  %v5913_v9 = vld [vmem:[#allocation76_spill] sm:$0xff]  ;;  %v4033_v39 = vmul.f32 0.25, %v3619_v19  ;;  %v4057_v61 = vmul.f32 0.25, %v3667_v58 }
 0x136   :  { %5890 = vst [vmem:[#allocation99_spill] sm:$0xff] %v3979_v53  ;;  %5892 = vst [vmem:[#allocation92_spill] sm:$0xff] %v3982_v29  ;;  %v4003_v0 = vadd.f32 %v959_v31, %v5905_v7  ;;  %v5907_v5 = vld [vmem:[#allocation65_spill] sm:$0xff]  ;;  %v4015_v21 = vadd.f32 %v963_v51, %v5913_v9  ;;  %v5915_v45 = vld [vmem:[#allocation11_spill] sm:$0xff]  ;;  %v4036_v51 = vmul.f32 0.25, %v3625_v10  ;;  %v4060_v9 = vmul.f32 0.25, %v3673_v40 }
 0x137   :  { %5894 = vst [vmem:[#allocation101_spill] sm:$0xff] %v3985_v49  ;;  %5896 = vst [vmem:[#allocation26_spill] sm:$0xff] %v3988_v43  ;;  %v4006_v41 = vadd.f32 %v960_v34, %v5907_v5  ;;  %v5909_v18 = vld [vmem:[#allocation69_spill] sm:$0xff]  ;;  %v4018_v47 = vadd.f32 %v964_v16, %v5915_v45  ;;  %v5917_v32 = vld [vmem:[#allocation70_spill] sm:$0xff]  ;;  %v4039_v16 = vmul.f32 0.25, %v3631_v42  ;;  %v4051_v5 = vmul.f32 0.25, %v3655_v54 }
 0x138   :  { %5898 = vst [vmem:[#allocation104_spill] sm:$0xff] %v3991_v57  ;;  %5900 = vst [vmem:[#allocation137_spill] sm:$0xff] %v3994_v30  ;;  %v4009_v13 = vadd.f32 %v961_v50, %v5909_v18  ;;  %v4021_v59 = vadd.f32 %v965_v36, %v5917_v32  ;;  %v5919_v31 = vld [vmem:[#allocation114_spill] sm:$0xff]  ;;  %v5921_v34 = vld [vmem:[#allocation119_spill] sm:$0xff]  ;;  %v4030_v50 = vmul.f32 0.25, %v3613_v8  ;;  %v4042_v36 = vmul.f32 0.25, %v3637_v11 }
 0x139   :  { %5902 = vst [vmem:[#allocation105_spill] sm:$0xff] %v3997_v12  ;;  %5904 = vst [vmem:[#allocation121_spill] sm:$0xff] %v4000_v52  ;;  %v4024_v2 = vadd.f32 %v966_v6, %v5919_v31  ;;  %v4027_v7 = vadd.f32 %v967_v4, %v5921_v34  ;;  %v4045_v6 = vmul.f32 0.25, %v3643_v1  ;;  %v4048_v4 = vmul.f32 0.25, %v3649_v27  ;;  %v5923_v45 = vld [vmem:[#allocation35_spill] sm:$0xff]  ;;  %v5924_v31 = vld [vmem:[#allocation41_spill] sm:$0xff] }
 0x13a   :  { %5906 = vst [vmem:[#allocation106_spill] sm:$0xff] %v4003_v0  ;;  %5908 = vst [vmem:[#allocation95_spill] sm:$0xff] %v4006_v41  ;;  %v4054_v18 = vmul.f32 0.25, %v3661_v38  ;;  %v4063_v32 = vmul.f32 0.25, %v5923_v45  ;;  %v4066_v34 = vmul.f32 0.25, %v5924_v31  ;;  %v5931_v0 = vld [vmem:[#allocation46_spill] sm:$0xff] }
 0x13b   :  { %5910 = vst [vmem:[#allocation107_spill] sm:$0xff] %v4009_v13  ;;  %5912 = vst [vmem:[#allocation27_spill] sm:$0xff] %v4012_v26  ;;  %v5929_v13 = vld [vmem:[#allocation45_spill] sm:$0xff]  ;;  %v4081_v52 = vmul.f32 0.25, %v5931_v0  ;;  %v5933_v12 = vld [vmem:[#allocation47_spill] sm:$0xff] }
 0x13c   :  { %5914 = vst [vmem:[#allocation108_spill] sm:$0xff] %v4015_v21  ;;  %5916 = vst [vmem:[#allocation122_spill] sm:$0xff] %v4018_v47  ;;  %v5927_v21 = vld [vmem:[#allocation44_spill] sm:$0xff]  ;;  %v4078_v41 = vmul.f32 0.25, %v5929_v13  ;;  %v4084_v30 = vmul.f32 0.25, %v5933_v12  ;;  %v5935_v57 = vld [vmem:[#allocation49_spill] sm:$0xff] }
 0x13d   :  { %5918 = vst [vmem:[#allocation109_spill] sm:$0xff] %v4021_v59  ;;  %5920 = vst [vmem:[#allocation118_spill] sm:$0xff] %v4024_v2  ;;  %v5926_v59 = vld [vmem:[#allocation43_spill] sm:$0xff]  ;;  %v4075_v26 = vmul.f32 0.25, %v5927_v21  ;;  %v4087_v43 = vmul.f32 0.25, %v5935_v57  ;;  %v5939_v53 = vld [vmem:[#allocation53_spill] sm:$0xff] }
 0x13e   :  { %5922 = vst [vmem:[#allocation56_spill] sm:$0xff] %v4027_v7  ;;  %v5925_v7 = vld [vmem:[#allocation42_spill] sm:$0xff]  ;;  %v4072_v47 = vmul.f32 0.25, %v5926_v59  ;;  %5930 = vst [vmem:[#allocation58_spill] sm:$0xff] %v4078_v41  ;;  %v5937_v49 = vld [vmem:[#allocation51_spill] sm:$0xff]  ;;  %v4093_v22 = vmul.f32 0.25, %v5939_v53 }
 0x13f   :  { %v4069_v2 = vmul.f32 0.25, %v5925_v7  ;;  %5928 = vst [vmem:[#allocation28_spill] sm:$0xff] %v4075_v26  ;;  %5932 = vst [vmem:[#allocation139_spill] sm:$0xff] %v4081_v52  ;;  %v4090_v29 = vmul.f32 0.25, %v5937_v49  ;;  %v5941_v25 = vld [vmem:[#allocation55_spill] sm:$0xff] }
 0x140   :  { %5934 = vst [vmem:[#allocation60_spill] sm:$0xff] %v4084_v30  ;;  %5936 = vst [vmem:[#allocation29_spill] sm:$0xff] %v4087_v43  ;;  %v4096_v23 = vmul.f32 0.25, %v5941_v25  ;;  %v5943_v35 = vld [vmem:[#allocation59_spill] sm:$0xff] }
 0x141   :  { %5938 = vst [vmem:[#allocation110_spill] sm:$0xff] %v4090_v29  ;;  %5940 = vst [vmem:[#allocation142_spill] sm:$0xff] %v4093_v22  ;;  %v4099_v56 = vmul.f32 0.25, %v5943_v35  ;;  %v5945_v63 = vld [vmem:[#allocation63_spill] sm:$0xff]  ;;  %v4111_v29 = vmul.f32 0.25, %v5852_v46  ;;  %v4114_v22 = vmul.f32 0.25, %v5854_v24 }
 0x142   :  { %5942 = vst [vmem:[#allocation64_spill] sm:$0xff] %v4096_v23  ;;  %v4102_v28 = vmul.f32 0.25, %v5945_v63  ;;  %v5947_v37 = vld [vmem:[#allocation67_spill] sm:$0xff]  ;;  %5949 = vst [vmem:[#allocation144_spill] sm:$0xff] %v4108_v44  ;;  %v4117_v23 = vmul.f32 0.25, %v5856_v62  ;;  %v5956_v44 = vsub.f32 1.0, %v3619_v19 }
 0x143   :  { %5944 = vst [vmem:[#allocation124_spill] sm:$0xff] %v4099_v56  ;;  %v4105_v55 = vmul.f32 0.25, %v5947_v37  ;;  %5950 = vst [vmem:[#allocation130_spill] sm:$0xff] %v4111_v29  ;;  %v4120_v56 = vmul.f32 0.25, %v5858_v48  ;;  %v5957_v29 = vsub.f32 1.0, %v3625_v10  ;;  %v5963_v19 = vsub.f32 1.0, %v3661_v38 }
 0x144   :  { %5946 = vst [vmem:[#allocation146_spill] sm:$0xff] %v4102_v28  ;;  %5951 = vst [vmem:[#allocation96_spill] sm:$0xff] %v4114_v22  ;;  %v4123_v28 = vmul.f32 0.25, %v5860_v15  ;;  %v1033_v43 = vmul.f32 0.75, %v5956_v44  ;;  %v5958_v22 = vsub.f32 1.0, %v3631_v42  ;;  %v5964_v10 = vsub.f32 1.0, %v3667_v58 }
 0x145   :  { %5948 = vst [vmem:[#allocation31_spill] sm:$0xff] %v4105_v55  ;;  %5952 = vst [vmem:[#allocation33_spill] sm:$0xff] %v4117_v23  ;;  %v5955_v55 = vsub.f32 1.0, %v3613_v8  ;;  %v1034_v30 = vmul.f32 0.75, %v5957_v29  ;;  %v5959_v23 = vsub.f32 1.0, %v3637_v11  ;;  %v5962_v8 = vsub.f32 1.0, %v3655_v54 }
 0x146   :  { %5953 = vst [vmem:[#allocation145_spill] sm:$0xff] %v4120_v56  ;;  %5954 = vst [vmem:[#allocation132_spill] sm:$0xff] %v4123_v28  ;;  %v1035_v20 = vmul.f32 0.75, %v5958_v22  ;;  %v5960_v56 = vsub.f32 1.0, %v3643_v1  ;;  %v5961_v28 = vsub.f32 1.0, %v3649_v27  ;;  %v1040_v44 = vmul.f32 0.75, %v5963_v19 }
 0x147   :  { %v1032_v33 = vmul.f32 0.75, %v5955_v55  ;;  %v1036_v52 = vmul.f32 0.75, %v5959_v23  ;;  %v1039_v55 = vmul.f32 0.75, %v5962_v8  ;;  %v1041_v29 = vmul.f32 0.75, %v5964_v10 }
 0x148   :  { %v1037_v41 = vmul.f32 0.75, %v5960_v56  ;;  %v1038_v26 = vmul.f32 0.75, %v5961_v28  ;;  %v5965_v42 = vsub.f32 1.0, %v3673_v40  ;;  %v5966_v11 = vsub.f32 1.0, %v5923_v45 }
 0x149   :  { %v5967_v1 = vsub.f32 1.0, %v5924_v31  ;;  %v5968_v27 = vsub.f32 1.0, %v5925_v7  ;;  %v5969_v54 = vsub.f32 1.0, %v5926_v59  ;;  %v5970_v38 = vsub.f32 1.0, %v5927_v21 }
 0x14a   :  { %v1042_v22 = vmul.f32 0.75, %v5965_v42  ;;  %v1043_v23 = vmul.f32 0.75, %v5966_v11  ;;  %v5971_v58 = vsub.f32 1.0, %v5929_v13  ;;  %v5972_v40 = vsub.f32 1.0, %v5931_v0 }
 0x14b   :  { %v1044_v56 = vmul.f32 0.75, %v5967_v1  ;;  %v1045_v28 = vmul.f32 0.75, %v5968_v27  ;;  %v1046_v8 = vmul.f32 0.75, %v5969_v54  ;;  %v1047_v19 = vmul.f32 0.75, %v5970_v38 }
 0x14c   :  { %v1048_v10 = vmul.f32 0.75, %v5971_v58  ;;  %v1049_v42 = vmul.f32 0.75, %v5972_v40  ;;  %v5973_v45 = vsub.f32 1.0, %v5933_v12  ;;  %v5974_v31 = vsub.f32 1.0, %v5935_v57 }
 0x14d   :  { %v5975_v7 = vsub.f32 1.0, %v5937_v49  ;;  %v5976_v59 = vsub.f32 1.0, %v5939_v53  ;;  %v5977_v21 = vsub.f32 1.0, %v5941_v25  ;;  %v5978_v13 = vsub.f32 1.0, %v5943_v35 }
 0x14e   :  { %v1050_v11 = vmul.f32 0.75, %v5973_v45  ;;  %v1051_v1 = vmul.f32 0.75, %v5974_v31  ;;  %v5979_v0 = vsub.f32 1.0, %v5945_v63  ;;  %v5980_v12 = vsub.f32 1.0, %v5947_v37 }
 0x14f   :  { %v1052_v27 = vmul.f32 0.75, %v5975_v7  ;;  %v1053_v54 = vmul.f32 0.75, %v5976_v59  ;;  %v1054_v38 = vmul.f32 0.75, %v5977_v21  ;;  %v1055_v58 = vmul.f32 0.75, %v5978_v13 }
 0x150   :  { %v1056_v40 = vmul.f32 0.75, %v5979_v0  ;;  %v1057_v45 = vmul.f32 0.75, %v5980_v12  ;;  %v5981_v57 = vsub.f32 1.0, %v5850_v14  ;;  %v5982_v49 = vsub.f32 1.0, %v5852_v46 }
 0x151   :  { %v5983_v53 = vsub.f32 1.0, %v5854_v24  ;;  %v5984_v25 = vsub.f32 1.0, %v5856_v62  ;;  %v5985_v35 = vsub.f32 1.0, %v5858_v48  ;;  %v5986_v63 = vsub.f32 1.0, %v5860_v15 }
 0x152   :  { %v1058_v31 = vmul.f32 0.75, %v5981_v57  ;;  %v1059_v7 = vmul.f32 0.75, %v5982_v49  ;;  %v4192_v37 = vadd.f32 %v1032_v33, %v4030_v50  ;;  %v4195_v14 = vadd.f32 %v1033_v43, %v4033_v39  ;;  %v6015_v57 = vld [vmem:[#allocation144_spill] sm:$0xff] }
 0x153   :  { %v1060_v59 = vmul.f32 0.75, %v5983_v53  ;;  %v1061_v21 = vmul.f32 0.75, %v5984_v25  ;;  %v1062_v13 = vmul.f32 0.75, %v5985_v35  ;;  %v4189_v0 = vmul.f32 0.75, %v5986_v63  ;;  %v6021_v35 = vld [vmem:[#allocation94_spill] sm:$0xff] }
 0x154   :  { %v4198_v46 = vadd.f32 %v1034_v30, %v4036_v51  ;;  %v4201_v24 = vadd.f32 %v1035_v20, %v4039_v16  ;;  %v4204_v62 = vadd.f32 %v1036_v52, %v4042_v36  ;;  %v4207_v48 = vadd.f32 %v1037_v41, %v4045_v6  ;;  %v5989_v16 = vld [vmem:[#allocation28_spill] sm:$0xff]  ;;  %v5991_v6 = vld [vmem:[#allocation58_spill] sm:$0xff] }
 0x155   :  { %5987 = vst [vmem:[#allocation147_spill] sm:$0xff] %v4189_v0  ;;  %v4210_v15 = vadd.f32 %v1038_v26, %v4048_v4  ;;  %v4213_v33 = vadd.f32 %v1039_v55, %v4051_v5  ;;  %v4216_v43 = vadd.f32 %v1040_v44, %v4054_v18  ;;  %v4219_v30 = vsub.f32 1.0, %v3934_v3  ;;  %v5995_v18 = vld [vmem:[#allocation90_spill] sm:$0xff] }
 0x156   :  { %v4222_v20 = vadd.f32 %v1041_v29, %v4057_v61  ;;  %v4225_v52 = vadd.f32 %v1042_v22, %v4060_v9  ;;  %v4228_v41 = vadd.f32 %v1043_v23, %v4063_v32  ;;  %v4231_v26 = vsub.f32 1.0, %v3937_v60  ;;  %v5993_v60 = vld [vmem:[#allocation139_spill] sm:$0xff]  ;;  %v6001_v55 = vld [vmem:[#allocation110_spill] sm:$0xff] }
 0x157   :  { %v4234_v50 = vadd.f32 %v1044_v56, %v4066_v34  ;;  %v4237_v39 = vadd.f32 %v1045_v28, %v4069_v2  ;;  %v4240_v3 = vadd.f32 %v1046_v8, %v4072_v47  ;;  %v4243_v51 = vsub.f32 1.0, %v3940_v17  ;;  %v5996_v2 = vld [vmem:[#allocation60_spill] sm:$0xff]  ;;  %v5998_v47 = vld [vmem:[#allocation29_spill] sm:$0xff]  ;;  %v6003_v29 = vld [vmem:[#allocation142_spill] sm:$0xff] }
 0x158   :  { %v4246_v36 = vadd.f32 %v1047_v19, %v5989_v16  ;;  %v4249_v4 = vadd.f32 %v1048_v10, %v5991_v6  ;;  %v4252_v5 = vadd.f32 %v1049_v42, %v5993_v60  ;;  %v4255_v61 = vsub.f32 1.0, %v5995_v18  ;;  %v6000_v17 = vld [vmem:[#allocation141_spill] sm:$0xff]  ;;  %v6005_v23 = vld [vmem:[#allocation91_spill] sm:$0xff]  ;;  %v6006_v28 = vld [vmem:[#allocation64_spill] sm:$0xff] }
 0x159   :  { %5988 = vst [vmem:[#allocation37_spill] sm:$0xff] %v4240_v3  ;;  %v4258_v9 = vadd.f32 %v1050_v11, %v5996_v2  ;;  %v4261_v32 = vadd.f32 %v1051_v1, %v5998_v47  ;;  %v4264_v34 = vsub.f32 1.0, %v6000_v17  ;;  %1694 = vrsqrt.f32 %v4219_v30  ;;  %v6008_v19 = vld [vmem:[#allocation124_spill] sm:$0xff]  ;;  %v6011_v1 = vld [vmem:[#allocation146_spill] sm:$0xff] }
 0x15a   :  { %5990 = vst [vmem:[#allocation62_spill] sm:$0xff] %v4246_v36  ;;  %5992 = vst [vmem:[#allocation71_spill] sm:$0xff] %v4249_v4  ;;  %v4268_v44 = vadd.f32 %v1052_v27, %v6001_v55  ;;  %v4271_v22 = vadd.f32 %v1053_v54, %v6003_v29  ;;  %v4274_v56 = vsub.f32 1.0, %v6005_v23  ;;  %1696 = vrsqrt.f32 %v4231_v26  ;;  %v6010_v42 = vld [vmem:[#allocation24_spill] sm:$0xff]  ;;  %v6013_v54 = vld [vmem:[#allocation31_spill] sm:$0xff] }
 0x15b   :  { %5994 = vst [vmem:[#allocation74_spill] sm:$0xff] %v4252_v5  ;;  %5997 = vst [vmem:[#allocation111_spill] sm:$0xff] %v4258_v9  ;;  %v4278_v8 = vadd.f32 %v1054_v38, %v6006_v28  ;;  %v4281_v10 = vadd.f32 %v1055_v58, %v6008_v19  ;;  %v4284_v11 = vsub.f32 1.0, %v6010_v42  ;;  %1698 = vrsqrt.f32 %v4243_v51  ;;  %v6017_v38 = vld [vmem:[#allocation130_spill] sm:$0xff]  ;;  %v6019_v58 = vld [vmem:[#allocation96_spill] sm:$0xff] }
 0x15c   :  { %5999 = vst [vmem:[#allocation68_spill] sm:$0xff] %v4261_v32  ;;  %6002 = vst [vmem:[#allocation112_spill] sm:$0xff] %v4268_v44  ;;  %v4288_v27 = vadd.f32 %v1056_v40, %v6011_v1  ;;  %v4291_v12 = vadd.f32 %v1057_v45, %v6013_v54  ;;  %v4294_v49 = vadd.f32 %v1058_v31, %v6015_v57  ;;  %1700 = vrsqrt.f32 %v4255_v61  ;;  %v6022_v40 = vld [vmem:[#allocation33_spill] sm:$0xff]  ;;  %v6026_v31 = vld [vmem:[#allocation131_spill] sm:$0xff] }
 0x15d   :  { %6004 = vst [vmem:[#allocation116_spill] sm:$0xff] %v4271_v22  ;;  %6007 = vst [vmem:[#allocation134_spill] sm:$0xff] %v4278_v8  ;;  %v4298_v53 = vadd.f32 %v1059_v7, %v6017_v38  ;;  %v4301_v25 = vadd.f32 %v1060_v59, %v6019_v58  ;;  %v4304_v63 = vsub.f32 1.0, %v6021_v35  ;;  %1702 = vrsqrt.f32 %v4264_v34  ;;  %v6024_v45 = vld [vmem:[#allocation145_spill] sm:$0xff]  ;;  %v6027_v7 = vld [vmem:[#allocation34_spill] sm:$0xff] }
 0x15e   :  { %6009 = vst [vmem:[#allocation98_spill] sm:$0xff] %v4281_v10  ;;  %6012 = vst [vmem:[#allocation39_spill] sm:$0xff] %v4288_v27  ;;  %v4308_v16 = vadd.f32 %v1061_v21, %v6022_v40  ;;  %v4311_v6 = vadd.f32 %v1062_v13, %v6024_v45  ;;  %v4314_v60 = vsub.f32 1.0, %v6026_v31  ;;  %1704 = vrsqrt.f32 %v4274_v56  ;;  %v6028_v59 = vld [vmem:[#allocation115_spill] sm:$0xff]  ;;  %v6029_v47 = vld [vmem:[#allocation36_spill] sm:$0xff] }
 0x15f   :  { %6014 = vst [vmem:[#allocation40_spill] sm:$0xff] %v4291_v12  ;;  %6016 = vst [vmem:[#allocation86_spill] sm:$0xff] %v4294_v49  ;;  %v4318_v18 = vsub.f32 1.0, %v6027_v7  ;;  %v4321_v2 = vsub.f32 1.0, %v6028_v59  ;;  %v4324_v17 = vsub.f32 1.0, %v6029_v47  ;;  %1706 = vrsqrt.f32 %v4284_v11  ;;  %v6030_v21 = vld [vmem:[#allocation143_spill] sm:$0xff] }
 0x160   :  { %6018 = vst [vmem:[#allocation88_spill] sm:$0xff] %v4298_v53  ;;  %6020 = vst [vmem:[#allocation89_spill] sm:$0xff] %v4301_v25  ;;  %v4328_v55 = vsub.f32 1.0, %v6030_v21  ;;  %v6031_v13 = vld [vmem:[#allocation97_spill] sm:$0xff]  ;;  %v6033_v19 = vld [vmem:[#allocation99_spill] sm:$0xff]  ;;  %1708 = vrsqrt.f32 %v4304_v63  ;;  %vm1130_vm12 = vcmp.eq.f32.partialorder %v4219_v30, inf }
 0x161   :  { %6023 = vst [vmem:[#allocation30_spill] sm:$0xff] %v4308_v16  ;;  %6025 = vst [vmem:[#allocation32_spill] sm:$0xff] %v4311_v6  ;;  %v4331_v29 = vsub.f32 1.0, %v6031_v13  ;;  %v6032_v23 = vld [vmem:[#allocation25_spill] sm:$0xff]  ;;  %v4337_v42 = vsub.f32 1.0, %v6033_v19  ;;  %v6034_v1 = vld [vmem:[#allocation92_spill] sm:$0xff]  ;;  %1710 = vrsqrt.f32 %v4314_v60 }
 0x162   :  { %v4334_v28 = vsub.f32 1.0, %v6032_v23  ;;  %v4340_v54 = vsub.f32 1.0, %v6034_v1  ;;  %v6035_v57 = vld [vmem:[#allocation101_spill] sm:$0xff]  ;;  %v6036_v58 = vld [vmem:[#allocation26_spill] sm:$0xff]  ;;  %v6037_v40 = vld [vmem:[#allocation104_spill] sm:$0xff]  ;;  %1712 = vrsqrt.f32 %v4318_v18  ;;  %vm1132_vm13 = vcmp.eq.f32.partialorder %v4219_v30, 0.0 }
 0x163   :  { %v4343_v38 = vsub.f32 1.0, %v6035_v57  ;;  %v4346_v35 = vsub.f32 1.0, %v6036_v58  ;;  %v4350_v45 = vsub.f32 1.0, %v6037_v40  ;;  %v6038_v31 = vld [vmem:[#allocation137_spill] sm:$0xff]  ;;  %v6041_v23 = vld [vmem:[#allocation106_spill] sm:$0xff]  ;;  %v6042_v1 = vld [vmem:[#allocation95_spill] sm:$0xff]  ;;  %1714 = vrsqrt.f32 %v4321_v2 }
 0x164   :  { %v4353_v7 = vsub.f32 1.0, %v6038_v31  ;;  %v6039_v59 = vld [vmem:[#allocation105_spill] sm:$0xff]  ;;  %v4363_v19 = vsub.f32 1.0, %v6041_v23  ;;  %v4366_v57 = vsub.f32 1.0, %v6042_v1  ;;  %v6043_v58 = vld [vmem:[#allocation107_spill] sm:$0xff]  ;;  %v6046_v0 = vld [vmem:[#allocation122_spill] sm:$0xff]  ;;  %1716 = vrsqrt.f32 %v4324_v17 }
 0x165   :  { %v4356_v47 = vsub.f32 1.0, %v6039_v59  ;;  %v6040_v21 = vld [vmem:[#allocation121_spill] sm:$0xff]  ;;  %v4370_v40 = vsub.f32 1.0, %v6043_v58  ;;  %v6044_v31 = vld [vmem:[#allocation27_spill] sm:$0xff]  ;;  %v6045_v59 = vld [vmem:[#allocation108_spill] sm:$0xff]  ;;  %vm1137_vm4 = vcmp.eq.f32.partialorder %v4231_v26, inf  ;;  %1718 = vrsqrt.f32 %v4328_v55 }
 0x166   :  { %v4360_v13 = vsub.f32 1.0, %v6040_v21  ;;  %v4373_v6 = vsub.f32 1.0, %v6044_v31  ;;  %v4376_v16 = vsub.f32 1.0, %v6045_v59  ;;  %v4379_v21 = vsub.f32 1.0, %v6046_v0  ;;  %v6048_v25 = vld [vmem:[#allocation109_spill] sm:$0xff]  ;;  %v6050_v53 = vld [vmem:[#allocation118_spill] sm:$0xff]  ;;  %v1695_v58 = vpop.eup %1694 }
 0x167   :  { %v4382_v23 = vsub.f32 1.0, %v6048_v25  ;;  %v4385_v1 = vsub.f32 1.0, %v6050_v53  ;;  %v6052_v49 = vld [vmem:[#allocation56_spill] sm:$0xff]  ;;  %v1133_v31 = vand.u32 2147483648, %v4219_v30  ;;  %vm1139_vm14 = vcmp.eq.f32.partialorder %v4231_v26, 0.0  ;;  %v1697_v0 = vpop.eup %1696 }
 0x168   :  { %6047 = vst [vmem:[#allocation93_spill] sm:$0xff] %v4379_v21  ;;  %v4388_v12 = vsub.f32 1.0, %v6052_v49  ;;  %v1140_v53 = vand.u32 2147483648, %v4231_v26  ;;  %vm1144_vm3 = vcmp.eq.f32.partialorder %v4243_v51, inf  ;;  %vm1146_vm5 = vcmp.eq.f32.partialorder %v4243_v51, 0.0  ;;  %v1699_v49 = vpop.eup %1698 }
 0x169   :  { %6049 = vst [vmem:[#allocation73_spill] sm:$0xff] %v4382_v23  ;;  %6051 = vst [vmem:[#allocation75_spill] sm:$0xff] %v4385_v1  ;;  %v1147_v25 = vand.u32 2147483648, %v4243_v51  ;;  %vm1151_vm6 = vcmp.eq.f32.partialorder %v4255_v61, inf  ;;  %vm1153_vm7 = vcmp.eq.f32.partialorder %v4255_v61, 0.0  ;;  %v1154_v59 = vand.u32 2147483648, %v4255_v61  ;;  %v1701_v27 = vpop.eup %1700 }
 0x16a   :  { %6053 = vst [vmem:[#allocation81_spill] sm:$0xff] %v4388_v12  ;;  %vm1158_vm11 = vcmp.eq.f32.partialorder %v4264_v34, inf  ;;  %vm1165_vm1 = vcmp.eq.f32.partialorder %v4274_v56, inf  ;;  %v1703_v8 = vpop.eup %1702  ;;  %v1129_v22 = vmul.f32 %v1695_v58, %v4219_v30  ;;  %v1136_v44 = vmul.f32 %v1697_v0, %v4231_v26 }
 0x16b   :  { %v1705_v9 = vpop.eup %1704  ;;  %v1143_v12 = vmul.f32 %v1699_v49, %v4243_v51  ;;  %vm1179_vm8 = vcmp.eq.f32.partialorder %v4304_v63, inf  ;;  %1720 = vrsqrt.f32 %v4331_v29  ;;  %v1150_v58 = vmul.f32 %v1701_v27, %v4255_v61 }
 0x16c   :  { %v1707_v5 = vpop.eup %1706  ;;  %vm1167_vm10 = vcmp.eq.f32.partialorder %v4274_v56, 0.0  ;;  %vm1186_vm2 = vcmp.eq.f32.partialorder %v4314_v60, inf  ;;  %1722 = vrsqrt.f32 %v4334_v28  ;;  %v1131_v27 = vsel %vm1130_vm12, %v4219_v30, %v1129_v22 }
 0x16d   :  { %v1709_v1 = vpop.eup %1708  ;;  %v1138_v0 = vsel %vm1137_vm4, %v4231_v26, %v1136_v44  ;;  %v1157_v4 = vmul.f32 %v1703_v8, %v4264_v34  ;;  %vm1181_vm9 = vcmp.eq.f32.partialorder %v4304_v63, 0.0  ;;  %v1145_v32 = vsel %vm1144_vm3, %v4243_v51, %v1143_v12 }
 0x16e   :  { %v1711_v10 = vpop.eup %1710  ;;  %v1164_v23 = vmul.f32 %v1705_v9, %v4274_v56  ;;  %v1171_v22 = vmul.f32 %v1707_v5, %v4284_v11  ;;  %vm1200_vm12 = vcmp.eq.f32.partialorder %v4321_v2, inf  ;;  %1724 = vrsqrt.f32 %v4337_v42 }
 0x16f   :  { %v1713_v44 = vpop.eup %1712  ;;  %v1152_v8 = vsel %vm1151_vm6, %v4255_v61, %v1150_v58  ;;  %vm1195_vm4 = vcmp.eq.f32.partialorder %v4318_v18, 0.0  ;;  %vm1207_vm15 = vcmp.eq.f32.partialorder %v4324_v17, inf  ;;  %v1134_v5 = vsel %vm1132_vm13, %v1133_v31, %v1131_v27  ;;  %v6056_v31 = vld [vmem:[#allocation123_spill] sm:$0xff] }
 0x170   :  { %v1141_v36 = vsel %vm1139_vm14, %v1140_v53, %v1138_v0  ;;  %v1178_v21 = vmul.f32 %v1709_v1, %v4304_v63  ;;  %1726 = vrsqrt.f32 %v4340_v54  ;;  %v1148_v58 = vsel %vm1146_vm5, %v1147_v25, %v1145_v32  ;;  %v1715_v53 = vpop.eup %1714 }
 0x171   :  { %v1159_v49 = vsel %vm1158_vm11, %v4264_v34, %v1157_v4  ;;  %v1185_v12 = vmul.f32 %v1711_v10, %v4314_v60  ;;  %vm1202_vm3 = vcmp.eq.f32.partialorder %v4321_v2, 0.0  ;;  %vm1214_vm13 = vcmp.eq.f32.partialorder %v4328_v55, inf  ;;  %v1717_v25 = vpop.eup %1716 }
 0x172   :  { %v1155_v1 = vsel %vm1153_vm7, %v1154_v59, %v1152_v8  ;;  %v1166_v32 = vsel %vm1165_vm1, %v4274_v56, %v1164_v23  ;;  %vm6054_vm14 = vcmp.eq.f32.partialorder %v4284_v11, inf  ;;  %v1192_v10 = vmul.f32 %v1713_v44, %v4318_v18  ;;  %v6055_v59 = vld [vmem:[#allocation100_spill] sm:$0xff] }
 0x173   :  { %v1173_v4 = vsel %vm6054_vm14, %v4284_v11, %v1171_v22  ;;  %vm1209_vm5 = vcmp.eq.f32.partialorder %v4324_v17, 0.0  ;;  %vm1221_vm6 = vcmp.eq.f32.partialorder %v4331_v29, inf  ;;  %v1352_v0 = vmul.f32 %v1134_v5, %v4219_v30  ;;  %v1719_v30 = vpop.eup %1718 }
 0x174   :  { %v1353_v27 = vmul.f32 %v1141_v36, %v4231_v26  ;;  %v1384_v8 = vmul.f32 %v4192_v37, %v6055_v59  ;;  %v1385_v23 = vmul.f32 %v4195_v14, %v6056_v31  ;;  %v6057_v9 = vand.u32 2147483648, %v4264_v34  ;;  %v6059_v36 = vld [vmem:[#allocation77_spill] sm:$0xff] }
 0x175   :  { %vm6058_vm7 = vcmp.eq.f32.partialorder %v4264_v34, 0.0  ;;  %v1180_v44 = vsel %vm1179_vm8, %v4304_v63, %v1178_v21  ;;  %1728 = vrsqrt.f32 %v4343_v38  ;;  %v1187_v37 = vsel %vm1186_vm2, %v4314_v60, %v1185_v12 }
 0x176   :  { %v1162_v22 = vsel %vm6058_vm7, %v6057_v9, %v1159_v49  ;;  %v1199_v14 = vmul.f32 %v1715_v53, %v4321_v2  ;;  %vm1216_vm11 = vcmp.eq.f32.partialorder %v4328_v55, 0.0  ;;  %vm1228_vm1 = vcmp.eq.f32.partialorder %v4334_v28, inf }
 0x177   :  { %v1354_v26 = vmul.f32 %v1148_v58, %v4243_v51  ;;  %v1386_v21 = vmul.f32 %v4198_v46, %v6059_v36  ;;  %v6060_v49 = vand.u32 2147483648, %v4274_v56  ;;  %v6061_v5 = vand.u32 2147483648, %v4284_v11  ;;  %v6064_v58 = vld [vmem:[#allocation78_spill] sm:$0xff] }
 0x178   :  { %vm6062_vm2 = vcmp.eq.f32.partialorder %v4284_v11, 0.0  ;;  %vm6063_vm8 = vcmp.eq.f32.partialorder %v4318_v18, inf  ;;  %v1206_v53 = vmul.f32 %v1717_v25, %v4324_v17  ;;  %v1721_v51 = vpop.eup %1720  ;;  %vm1223_vm14 = vcmp.eq.f32.partialorder %v4331_v29, 0.0 }
 0x179   :  { %v1169_v9 = vsel %vm1167_vm10, %v6060_v49, %v1166_v32  ;;  %v1176_v12 = vsel %vm6062_vm2, %v6061_v5, %v1173_v4  ;;  %v1194_v31 = vsel %vm6063_vm8, %v4318_v18, %v1192_v10  ;;  %vm1235_vm7 = vcmp.eq.f32.partialorder %v4337_v42, inf }
 0x17a   :  { %v1355_v46 = vmul.f32 %v1155_v1, %v4255_v61  ;;  %v1387_v32 = vmul.f32 %v4201_v24, %v6064_v58  ;;  %v1416_v59 = vmul.f32 %v1384_v8, %v1352_v0  ;;  %v1417_v36 = vmul.f32 %v1385_v23, %v1353_v27  ;;  %v1723_v61 = vpop.eup %1722  ;;  %v6068_v0 = vld [vmem:[#allocation79_spill] sm:$0xff] }
 0x17b   :  { %v6065_v4 = vand.u32 2147483648, %v4304_v63  ;;  %v6066_v10 = vand.u32 2147483648, %v4314_v60  ;;  %vm6067_vm10 = vcmp.eq.f32.partialorder %v4314_v60, 0.0  ;;  %v1213_v5 = vmul.f32 %v1719_v30, %v4328_v55 }
 0x17c   :  { %v1252_v3 = vand.u32 2147483648, %v4343_v38  ;;  %v1201_v24 = vsel %vm1200_vm12, %v4321_v2, %v1199_v14  ;;  %vm1230_vm2 = vcmp.eq.f32.partialorder %v4334_v28, 0.0  ;;  %vm1242_vm8 = vcmp.eq.f32.partialorder %v4340_v54, inf  ;;  %v1725_v14 = vpop.eup %1724 }
 0x17d   :  { %v1183_v49 = vsel %vm1181_vm9, %v6065_v4, %v1180_v44  ;;  %v1190_v25 = vsel %vm6067_vm10, %v6066_v10, %v1187_v37  ;;  %v1356_v1 = vmul.f32 %v1162_v22, %v4264_v34  ;;  %v1388_v27 = vmul.f32 %v4204_v62, %v6068_v0  ;;  %v6070_v62 = vld [vmem:[#allocation103_spill] sm:$0xff]  ;;  %v1727_v4 = vpop.eup %1726 }
 0x17e   :  { %v1418_v8 = vmul.f32 %v1386_v21, %v1354_v26  ;;  %v6069_v23 = vand.u32 2147483648, %v4318_v18  ;;  %v1208_v30 = vsel %vm1207_vm15, %v4324_v17, %v1206_v53  ;;  %v1220_v37 = vmul.f32 %v1721_v51, %v4331_v29 }
 0x17f   :  { %1730 = vrsqrt.f32 %v4346_v35  ;;  %vm1237_vm9 = vcmp.eq.f32.partialorder %v4337_v42, 0.0  ;;  %v1357_v34 = vmul.f32 %v1169_v9, %v4274_v56  ;;  %v1389_v22 = vmul.f32 %v4207_v48, %v6070_v62  ;;  %v6072_v56 = vld [vmem:[#allocation80_spill] sm:$0xff] }
 0x180   :  { %v1197_v44 = vsel %vm1195_vm4, %v6069_v23, %v1194_v31  ;;  %v1419_v26 = vmul.f32 %v1387_v32, %v1355_v46  ;;  %v1448_v21 = vadd.f32 %v1417_v36, %v1416_v59  ;;  %v6071_v31 = vand.u32 2147483648, %v4321_v2 }
 0x181   :  { %v1215_v53 = vsel %vm1214_vm13, %v4328_v55, %v1213_v5  ;;  %v1227_v51 = vmul.f32 %v1723_v61, %v4334_v28  ;;  %1732 = vrsqrt.f32 %v4350_v45  ;;  %vm1244_vm15 = vcmp.eq.f32.partialorder %v4340_v54, 0.0 }
 0x182   :  { %v1204_v58 = vsel %vm1202_vm3, %v6071_v31, %v1201_v24  ;;  %vm1249_vm12 = vcmp.eq.f32.partialorder %v4343_v38, inf  ;;  %v1358_v48 = vmul.f32 %v1176_v12, %v4284_v11  ;;  %v1390_v9 = vmul.f32 %v4210_v15, %v6072_v56  ;;  %v6074_v12 = vld [vmem:[#allocation13_spill] sm:$0xff]  ;;  %v1729_v23 = vpop.eup %1728 }
 0x183   :  { %v1420_v46 = vmul.f32 %v1388_v27, %v1356_v1  ;;  %v1449_v32 = vadd.f32 %v1448_v21, %v1418_v8  ;;  %v6073_v59 = vand.u32 2147483648, %v4324_v17  ;;  %v1222_v10 = vsel %vm1221_vm6, %v4331_v29, %v1220_v37 }
 0x184   :  { %v1234_v5 = vmul.f32 %v1725_v14, %v4337_v42  ;;  %1734 = vrsqrt.f32 %v4353_v7  ;;  %v1359_v11 = vmul.f32 %v1183_v49, %v4304_v63  ;;  %v1391_v15 = vmul.f32 %v4213_v33, %v6074_v12  ;;  %v6076_v63 = vld [vmem:[#allocation14_spill] sm:$0xff] }
 0x185   :  { %v1211_v36 = vsel %vm1209_vm5, %v6073_v59, %v1208_v30  ;;  %v1421_v61 = vmul.f32 %v1389_v22, %v1357_v34  ;;  %v1450_v24 = vadd.f32 %v1449_v32, %v1419_v26  ;;  %v6075_v1 = vand.u32 2147483648, %v4328_v55 }
 0x186   :  { %v1229_v27 = vsel %vm1228_vm1, %v4334_v28, %v1227_v51  ;;  %v1241_v8 = vmul.f32 %v1727_v4, %v4340_v54  ;;  %1736 = vrsqrt.f32 %v4356_v47  ;;  %vm1251_vm4 = vcmp.eq.f32.partialorder %v4343_v38, 0.0 }
 0x187   :  { %v1218_v0 = vsel %vm1216_vm11, %v6075_v1, %v1215_v53  ;;  %v1360_v33 = vmul.f32 %v1190_v25, %v4314_v60  ;;  %v1392_v49 = vmul.f32 %v4216_v43, %v6076_v63  ;;  %v1422_v30 = vmul.f32 %v1390_v9, %v1358_v48  ;;  %v6078_v43 = vld [vmem:[#allocation117_spill] sm:$0xff] }
 0x188   :  { %v1451_v37 = vadd.f32 %v1450_v24, %v1420_v46  ;;  %v6077_v14 = vand.u32 2147483648, %v4331_v29  ;;  %v1236_v62 = vsel %vm1235_vm7, %v4337_v42, %v1234_v5  ;;  %v1259_v22 = vand.u32 2147483648, %v4346_v35 }
 0x189   :  { %1738 = vrsqrt.f32 %v4360_v13  ;;  %vm1256_vm3 = vcmp.eq.f32.partialorder %v4346_v35, inf  ;;  %v1361_v60 = vmul.f32 %v1197_v44, %v4318_v18  ;;  %v1393_v25 = vmul.f32 %v4222_v20, %v6078_v43  ;;  %v6080_v20 = vld [vmem:[#allocation12_spill] sm:$0xff] }
 0x18a   :  { %v1225_v34 = vsel %vm1223_vm14, %v6077_v14, %v1222_v10  ;;  %v1423_v26 = vmul.f32 %v1391_v15, %v1359_v11  ;;  %v1452_v21 = vadd.f32 %v1451_v37, %v1421_v61  ;;  %v6079_v31 = vand.u32 2147483648, %v4334_v28 }
 0x18b   :  { %v1243_v51 = vsel %vm1242_vm8, %v4340_v54, %v1241_v8  ;;  %v1248_v4 = vmul.f32 %v1729_v23, %v4343_v38  ;;  %1740 = vrsqrt.f32 %v4363_v19  ;;  %vm1263_vm13 = vcmp.eq.f32.partialorder %v4350_v45, inf }
 0x18c   :  { %v1232_v53 = vsel %vm1230_vm2, %v6079_v31, %v1229_v27  ;;  %v1362_v18 = vmul.f32 %v1204_v58, %v4321_v2  ;;  %v1394_v44 = vmul.f32 %v4225_v52, %v6080_v20  ;;  %v1424_v48 = vmul.f32 %v1392_v49, %v1360_v33  ;;  %v1731_v10 = vpop.eup %1730  ;;  %v6082_v2 = vld [vmem:[#allocation126_spill] sm:$0xff] }
 0x18d   :  { %v1453_v56 = vadd.f32 %v1452_v21, %v1422_v30  ;;  %v6081_v9 = vand.u32 2147483648, %v4337_v42  ;;  %v1266_v32 = vand.u32 2147483648, %v4350_v45  ;;  %v1273_v59 = vand.u32 2147483648, %v4353_v7  ;;  %v6090_v20 = vld [vmem:[#allocation62_spill] sm:$0xff] }
 0x18e   :  { %1742 = vrsqrt.f32 %v4366_v57  ;;  %vm1258_vm5 = vcmp.eq.f32.partialorder %v4346_v35, 0.0  ;;  %vm1270_vm6 = vcmp.eq.f32.partialorder %v4353_v7, inf  ;;  %v1363_v52 = vmul.f32 %v1211_v36, %v4324_v17  ;;  %v1733_v1 = vpop.eup %1732  ;;  %v6084_v17 = vld [vmem:[#allocation16_spill] sm:$0xff] }
 0x18f   :  { %v1239_v46 = vsel %vm1237_vm9, %v6081_v9, %v1236_v62  ;;  %v1395_v58 = vmul.f32 %v4228_v41, %v6082_v2  ;;  %v1425_v5 = vmul.f32 %v1393_v25, %v1361_v60  ;;  %v1454_v11 = vadd.f32 %v1453_v56, %v1423_v26  ;;  %v6091_v2 = vld [vmem:[#allocation73_spill] sm:$0xff] }
 0x190   :  { %v6083_v12 = vand.u32 2147483648, %v4340_v54  ;;  %v1250_v61 = vsel %vm1249_vm12, %v4343_v38, %v1248_v4  ;;  %v1280_v24 = vand.u32 2147483648, %v4356_v47  ;;  %1744 = vrsqrt.f32 %v4370_v40  ;;  %v6088_v4 = vld [vmem:[#allocation93_spill] sm:$0xff] }
 0x191   :  { %vm1265_vm11 = vcmp.eq.f32.partialorder %v4350_v45, 0.0  ;;  %vm1277_vm1 = vcmp.eq.f32.partialorder %v4356_v47, inf  ;;  %v1364_v41 = vmul.f32 %v1218_v0, %v4328_v55  ;;  %v1396_v36 = vmul.f32 %v4234_v50, %v6084_v17  ;;  %v1735_v49 = vpop.eup %1734  ;;  %v6085_v0 = vld [vmem:[#allocation120_spill] sm:$0xff] }
 0x192   :  { %v1246_v15 = vsel %vm1244_vm15, %v6083_v12, %v1243_v51  ;;  %v1426_v27 = vmul.f32 %v1394_v44, %v1362_v18  ;;  %v1455_v8 = vadd.f32 %v1454_v11, %v1424_v48  ;;  %v1255_v23 = vmul.f32 %v1731_v10, %v4346_v35 }
 0x193   :  { %v1287_v33 = vand.u32 2147483648, %v4360_v13  ;;  %v1294_v63 = vand.u32 2147483648, %v4363_v19  ;;  %1746 = vrsqrt.f32 %v4373_v6  ;;  %vm1272_vm14 = vcmp.eq.f32.partialorder %v4353_v7, 0.0  ;;  %v1737_v43 = vpop.eup %1736 }
 0x194   :  { %vm1284_vm7 = vcmp.eq.f32.partialorder %v4360_v13, inf  ;;  %v1365_v55 = vmul.f32 %v1225_v34, %v4331_v29  ;;  %v1397_v50 = vmul.f32 %v4237_v39, %v6085_v0  ;;  %v1427_v30 = vmul.f32 %v1395_v58, %v1363_v52  ;;  %v6086_v29 = vld [vmem:[#allocation133_spill] sm:$0xff] }
 0x195   :  { %v1456_v37 = vadd.f32 %v1455_v8, %v1425_v5  ;;  %v1253_v14 = vsel %vm1251_vm4, %v1252_v3, %v1250_v61  ;;  %v1262_v62 = vmul.f32 %v1733_v1, %v4350_v45  ;;  %v1301_v60 = vand.u32 2147483648, %v4366_v57  ;;  %v6087_v34 = vld [vmem:[#allocation37_spill] sm:$0xff]  ;;  %v6093_v5 = vld [vmem:[#allocation71_spill] sm:$0xff]  ;;  %v6096_v8 = vld [vmem:[#allocation74_spill] sm:$0xff] }
 0x196   :  { %1748 = vrsqrt.f32 %v4376_v16  ;;  %vm1279_vm10 = vcmp.eq.f32.partialorder %v4356_v47, 0.0  ;;  %vm1291_vm2 = vcmp.eq.f32.partialorder %v4363_v19, inf  ;;  %v1366_v39 = vmul.f32 %v1232_v53, %v4334_v28  ;;  %v1739_v18 = vpop.eup %1738  ;;  %v6089_v53 = vld [vmem:[#allocation17_spill] sm:$0xff] }
 0x197   :  { %v1398_v25 = vmul.f32 %v6087_v34, %v6086_v29  ;;  %v1428_v26 = vmul.f32 %v1396_v36, %v1364_v41  ;;  %v1457_v21 = vadd.f32 %v1456_v37, %v1426_v27  ;;  %v1257_v3 = vsel %vm1256_vm3, %v4346_v35, %v1255_v23  ;;  %v6094_v36 = vld [vmem:[#allocation75_spill] sm:$0xff] }
 0x198   :  { %v1269_v31 = vmul.f32 %v1735_v49, %v4353_v7  ;;  %v1308_v51 = vand.u32 2147483648, %v4370_v40  ;;  %1750 = vrsqrt.f32 %v6088_v4  ;;  %vm1286_vm8 = vcmp.eq.f32.partialorder %v4360_v13, 0.0  ;;  %v1741_v58 = vpop.eup %1740 }
 0x199   :  { %vm1298_vm9 = vcmp.eq.f32.partialorder %v4366_v57, inf  ;;  %v1367_v28 = vmul.f32 %v1239_v46, %v4337_v42  ;;  %v1399_v44 = vmul.f32 %v6090_v20, %v6089_v53  ;;  %v1429_v48 = vmul.f32 %v1397_v50, %v1365_v55  ;;  %v6092_v46 = vld [vmem:[#allocation135_spill] sm:$0xff] }
 0x19a   :  { %v1458_v56 = vadd.f32 %v1457_v21, %v1427_v30  ;;  %v1264_v9 = vsel %vm1263_vm13, %v4350_v45, %v1262_v62  ;;  %v1276_v10 = vmul.f32 %v1737_v43, %v4356_v47  ;;  %v1315_v52 = vand.u32 2147483648, %v4373_v6  ;;  %v6097_v30 = vld [vmem:[#allocation81_spill] sm:$0xff]  ;;  %v6099_v62 = vld [vmem:[#allocation111_spill] sm:$0xff] }
 0x19b   :  { %1752 = vrsqrt.f32 %v6091_v2  ;;  %vm1293_vm15 = vcmp.eq.f32.partialorder %v4363_v19, 0.0  ;;  %vm1305_vm12 = vcmp.eq.f32.partialorder %v4370_v40, inf  ;;  %v1368_v42 = vmul.f32 %v1246_v15, %v4340_v54  ;;  %v1743_v27 = vpop.eup %1742  ;;  %v6095_v15 = vld [vmem:[#allocation18_spill] sm:$0xff] }
 0x19c   :  { %v1400_v11 = vmul.f32 %v6093_v5, %v6092_v46  ;;  %v1430_v12 = vmul.f32 %v1398_v25, %v1366_v39  ;;  %v1459_v61 = vadd.f32 %v1458_v56, %v1428_v26  ;;  %v1260_v1 = vsel %vm1258_vm5, %v1259_v22, %v1257_v3  ;;  %v6100_v3 = vld [vmem:[#allocation19_spill] sm:$0xff]  ;;  %v6102_v56 = vld [vmem:[#allocation20_spill] sm:$0xff] }
 0x19d   :  { %v1271_v41 = vsel %vm1270_vm6, %v4353_v7, %v1269_v31  ;;  %v1283_v17 = vmul.f32 %v1739_v18, %v4360_v13  ;;  %1754 = vrsqrt.f32 %v6094_v36  ;;  %vm1300_vm4 = vcmp.eq.f32.partialorder %v4366_v57, 0.0  ;;  %v1745_v37 = vpop.eup %1744  ;;  %v6101_v31 = vld [vmem:[#allocation68_spill] sm:$0xff] }
 0x19e   :  { %vm1312_vm3 = vcmp.eq.f32.partialorder %v4373_v6, inf  ;;  %v1369_v54 = vmul.f32 %v1253_v14, %v4343_v38  ;;  %v1401_v23 = vmul.f32 %v6096_v8, %v6095_v15  ;;  %v1431_v49 = vmul.f32 %v1399_v44, %v1367_v28  ;;  %v6098_v14 = vld [vmem:[#allocation136_spill] sm:$0xff] }
 0x19f   :  { %v1460_v22 = vadd.f32 %v1459_v61, %v1429_v48  ;;  %v1267_v55 = vsel %vm1265_vm11, %v1266_v32, %v1264_v9  ;;  %v1278_v0 = vsel %vm1277_vm1, %v4356_v47, %v1276_v10  ;;  %v1290_v50 = vmul.f32 %v1741_v58, %v4363_v19  ;;  %v6103_v9 = vld [vmem:[#allocation112_spill] sm:$0xff]  ;;  %v6104_v61 = vld [vmem:[#allocation125_spill] sm:$0xff] }
 0x1a0   :  { %1756 = vrsqrt.f32 %v6097_v30  ;;  %vm1307_vm13 = vcmp.eq.f32.partialorder %v4370_v40, 0.0  ;;  %vm1319_vm5 = vcmp.eq.f32.partialorder %v4376_v16, inf  ;;  %v1370_v38 = vmul.f32 %v1260_v1, %v4346_v35  ;;  %v1747_v21 = vpop.eup %1746  ;;  %v6105_v1 = vld [vmem:[#allocation116_spill] sm:$0xff] }
 0x1a1   :  { %v1402_v43 = vmul.f32 %v6099_v62, %v6098_v14  ;;  %v1432_v39 = vmul.f32 %v1400_v11, %v1368_v42  ;;  %v1461_v32 = vadd.f32 %v1460_v22, %v1430_v12  ;;  %v1274_v29 = vsel %vm1272_vm14, %v1273_v59, %v1271_v41  ;;  %v6108_v14 = vld [vmem:[#allocation21_spill] sm:$0xff]  ;;  %v6109_v62 = vld [vmem:[#allocation98_spill] sm:$0xff] }
 0x1a2   :  { %v1285_v34 = vsel %vm1284_vm7, %v4360_v13, %v1283_v17  ;;  %v1297_v25 = vmul.f32 %v1743_v27, %v4366_v57  ;;  %v1322_v26 = vand.u32 2147483648, %v4376_v16  ;;  %vm1314_vm6 = vcmp.eq.f32.partialorder %v4373_v6, 0.0 }
 0x1a3   :  { %v1371_v35 = vmul.f32 %v1267_v55, %v4350_v45  ;;  %v1403_v18 = vmul.f32 %v6101_v31, %v6100_v3  ;;  %v1433_v28 = vmul.f32 %v1401_v23, %v1369_v54  ;;  %v1462_v53 = vadd.f32 %v1461_v32, %v1431_v49  ;;  %v1749_v48 = vpop.eup %1748  ;;  %v6106_v23 = vld [vmem:[#allocation138_spill] sm:$0xff]  ;;  %v6111_v3 = vld [vmem:[#allocation39_spill] sm:$0xff] }
 0x1a4   :  { %v1281_v59 = vsel %vm1279_vm10, %v1280_v24, %v1278_v0  ;;  %v1292_v20 = vsel %vm1291_vm2, %v4363_v19, %v1290_v50  ;;  %v1304_v44 = vmul.f32 %v1745_v37, %v4370_v40  ;;  %vm1326_vm11 = vcmp.eq.f32.partialorder %v6088_v4, inf  ;;  %v6107_v49 = vld [vmem:[#allocation134_spill] sm:$0xff] }
 0x1a5   :  { %vm1321_vm1 = vcmp.eq.f32.partialorder %v4376_v16, 0.0  ;;  %v1372_v45 = vmul.f32 %v1274_v29, %v4353_v7  ;;  %v1404_v10 = vmul.f32 %v6103_v9, %v6102_v56  ;;  %v1434_v58 = vmul.f32 %v1402_v43, %v1370_v38  ;;  %v1751_v12 = vpop.eup %1750 }
 0x1a6   :  { %v1463_v42 = vadd.f32 %v1462_v53, %v1432_v39  ;;  %v1288_v24 = vsel %vm1286_vm8, %v1287_v33, %v1285_v34  ;;  %v1299_v46 = vsel %vm1298_vm9, %v4366_v57, %v1297_v25  ;;  %v1311_v5 = vmul.f32 %v1747_v21, %v4373_v6 }
 0x1a7   :  { %v1329_v11 = vand.u32 2147483648, %v6088_v4  ;;  %vm1328_vm14 = vcmp.eq.f32.partialorder %v6088_v4, 0.0  ;;  %v1373_v7 = vmul.f32 %v1281_v59, %v4356_v47  ;;  %v1405_v41 = vmul.f32 %v6105_v1, %v6104_v61  ;;  %v6116_v1 = vld [vmem:[#allocation140_spill] sm:$0xff] }
 0x1a8   :  { %v1435_v17 = vmul.f32 %v1403_v18, %v1371_v35  ;;  %v1464_v27 = vadd.f32 %v1463_v42, %v1433_v28  ;;  %v1295_v33 = vsel %vm1293_vm15, %v1294_v63, %v1292_v20  ;;  %v1306_v54 = vsel %vm1305_vm12, %v4370_v40, %v1304_v44  ;;  %v1753_v8 = vpop.eup %1752  ;;  %v6110_v35 = vld [vmem:[#allocation127_spill] sm:$0xff]  ;;  %v6112_v20 = vld [vmem:[#allocation22_spill] sm:$0xff]  ;;  %v6113_v44 = vld [vmem:[#allocation40_spill] sm:$0xff] }
 0x1a9   :  { %v1318_v15 = vmul.f32 %v1749_v48, %v4376_v16  ;;  %vm1333_vm7 = vcmp.eq.f32.partialorder %v6091_v2, inf  ;;  %v1374_v47 = vmul.f32 %v1288_v24, %v4360_v13  ;;  %v1406_v22 = vmul.f32 %v6107_v49, %v6106_v23  ;;  %v6115_v42 = vld [vmem:[#allocation86_spill] sm:$0xff] }
 0x1aa   :  { %v1436_v55 = vmul.f32 %v1404_v10, %v1372_v45  ;;  %v1465_v0 = vadd.f32 %v1464_v27, %v1434_v58  ;;  %v1302_v63 = vsel %vm1300_vm4, %v1301_v60, %v1299_v46  ;;  %v1313_v50 = vsel %vm1312_vm3, %v4373_v6, %v1311_v5  ;;  %v1755_v38 = vpop.eup %1754  ;;  %v6114_v58 = vld [vmem:[#allocation128_spill] sm:$0xff] }
 0x1ab   :  { %v1325_v37 = vmul.f32 %v1751_v12, %v6088_v4  ;;  %vm1335_vm10 = vcmp.eq.f32.partialorder %v6091_v2, 0.0  ;;  %v1375_v13 = vmul.f32 %v1295_v33, %v4363_v19  ;;  %v1407_v43 = vmul.f32 %v6109_v62, %v6108_v14 }
 0x1ac   :  { %v1437_v39 = vmul.f32 %v1405_v41, %v1373_v7  ;;  %v1466_v32 = vadd.f32 %v1465_v0, %v1435_v17  ;;  %v1309_v60 = vsel %vm1307_vm13, %v1308_v51, %v1306_v54  ;;  %v1320_v29 = vsel %vm1319_vm5, %v4376_v16, %v1318_v15  ;;  %v6117_v41 = vld [vmem:[#allocation88_spill] sm:$0xff]  ;;  %v6122_v0 = vld [vmem:[#allocation102_spill] sm:$0xff] }
 0x1ad   :  { %v1332_v34 = vmul.f32 %v1753_v8, %v6091_v2  ;;  %v1336_v25 = vand.u32 2147483648, %v6091_v2  ;;  %v1757_v21 = vpop.eup %1756  ;;  %v1376_v19 = vmul.f32 %v1302_v63, %v4366_v57  ;;  %v1408_v31 = vmul.f32 %v6111_v3, %v6110_v35  ;;  %v6118_v8 = vld [vmem:[#allocation23_spill] sm:$0xff]  ;;  %v6123_v63 = vld [vmem:[#allocation66_spill] sm:$0xff] }
 0x1ae   :  { %v1438_v18 = vmul.f32 %v1406_v22, %v1374_v47  ;;  %v1467_v28 = vadd.f32 %v1466_v32, %v1436_v55  ;;  %v1316_v51 = vsel %vm1314_vm6, %v1315_v52, %v1313_v50  ;;  %v1327_v53 = vsel %vm1326_vm11, %v6088_v4, %v1325_v37  ;;  %v6119_v47 = vld [vmem:[#allocation89_spill] sm:$0xff]  ;;  %v6120_v22 = vld [vmem:[#allocation38_spill] sm:$0xff] }
 0x1af   :  { %v1339_v59 = vmul.f32 %v1755_v38, %v6094_v36  ;;  %vm1340_vm2 = vcmp.eq.f32.partialorder %v6094_v36, inf  ;;  %v1377_v57 = vmul.f32 %v1309_v60, %v4370_v40  ;;  %v1409_v48 = vmul.f32 %v6113_v44, %v6112_v20  ;;  %v6125_v38 = vld [vmem:[#allocation132_spill] sm:$0xff] }
 0x1b0   :  { %v1439_v45 = vmul.f32 %v1407_v43, %v1375_v13  ;;  %v1468_v56 = vadd.f32 %v1467_v28, %v1437_v39  ;;  %v1323_v52 = vsel %vm1321_vm1, %v1322_v26, %v1320_v29  ;;  %v1334_v9 = vsel %vm1333_vm7, %v6091_v2, %v1332_v34  ;;  %v6126_v13 = vld [vmem:[#allocation147_spill] sm:$0xff]  ;;  %v6127_v43 = vld [vmem:[#allocation129_spill] sm:$0xff]  ;;  %v6128_v39 = vld [vmem:[#allocation30_spill] sm:$0xff] }
 0x1b1   :  { %v1346_v10 = vmul.f32 %v1757_v21, %v6097_v30  ;;  %vm1347_vm8 = vcmp.eq.f32.partialorder %v6097_v30, inf  ;;  %v1378_v40 = vmul.f32 %v1316_v51, %v4373_v6  ;;  %v1410_v24 = vmul.f32 %v6115_v42, %v6114_v58  ;;  %v6129_v21 = vld [vmem:[#allocation113_spill] sm:$0xff] }
 0x1b2   :  { %v1440_v46 = vmul.f32 %v1408_v31, %v1376_v19  ;;  %v1469_v5 = vadd.f32 %v1468_v56, %v1438_v18  ;;  %v1330_v12 = vsel %vm1328_vm14, %v1329_v11, %v1327_v53  ;;  %v1341_v26 = vsel %vm1340_vm2, %v6094_v36, %v1339_v59  ;;  %v6130_v19 = vld [vmem:[#allocation32_spill] sm:$0xff] }
 0x1b3   :  { %vm1342_vm9 = vcmp.eq.f32.partialorder %v6094_v36, 0.0  ;;  %v1343_v7 = vand.u32 2147483648, %v6094_v36  ;;  %v1379_v61 = vmul.f32 %v1323_v52, %v4376_v16  ;;  %v1411_v17 = vmul.f32 %v6117_v41, %v6116_v1 }
 0x1b4   :  { %v1441_v6 = vmul.f32 %v1409_v48, %v1377_v57  ;;  %v1470_v27 = vadd.f32 %v1469_v5, %v1439_v45  ;;  %v1337_v33 = vsel %vm1335_vm10, %v1336_v25, %v1334_v9  ;;  %v1348_v54 = vsel %vm1347_vm8, %v6097_v30, %v1346_v10 }
 0x1b5   :  { %vm1349_vm15 = vcmp.eq.f32.partialorder %v6097_v30, 0.0  ;;  %v1350_v11 = vand.u32 2147483648, %v6097_v30  ;;  %v1380_v15 = vmul.f32 %v1330_v12, %v6088_v4  ;;  %v1412_v23 = vmul.f32 %v6119_v47, %v6118_v8 }
 0x1b6   :  { %v1442_v16 = vmul.f32 %v1410_v24, %v1378_v40  ;;  %v1471_v49 = vadd.f32 %v1470_v27, %v1440_v46  ;;  %v6124_v50 = vsel %vm3116_vm0, %v6122_v0, %v6123_v63  ;;  %v1095_v14 = vadd.f32 %v6126_v13, %v6125_v38 }
 0x1b7   :  { %v743_v37 = vadd.f32 %v6124_v50, %v6120_v22  ;;  %v1344_v62 = vsel %vm1342_vm9, %v1343_v7, %v1341_v26  ;;  %v1381_v4 = vmul.f32 %v1337_v33, %v6091_v2  ;;  %v1413_v32 = vmul.f32 %v6128_v39, %v6127_v43 }
 0x1b8   :  { %v1443_v60 = vmul.f32 %v1411_v17, %v1379_v61  ;;  %v1472_v29 = vadd.f32 %v1471_v49, %v1441_v6  ;;  %v1351_v34 = vsel %vm1349_vm15, %v1350_v11, %v1348_v54  ;;  %v1382_v25 = vmul.f32 %v1344_v62, %v6094_v36 }
 0x1b9   :  { %v1414_v35 = vmul.f32 %v6130_v19, %v6129_v21  ;;  %v1444_v3 = vmul.f32 %v1412_v23, %v1380_v15  ;;  %v1383_v18 = vmul.f32 %v1351_v34, %v6097_v30  ;;  %v1415_v28 = vmul.f32 %v1095_v14, %v743_v37 }
 0x1ba   :  { %v1473_v31 = vadd.f32 %v1472_v29, %v1442_v16  ;;  %v1445_v51 = vmul.f32 %v1413_v32, %v1381_v4 }
 0x1bb   :  { %v1446_v59 = vmul.f32 %v1414_v35, %v1382_v25  ;;  %v1447_v57 = vmul.f32 %v1415_v28, %v1383_v18 }
 0x1bc   :  { %v1474_v53 = vadd.f32 %v1473_v31, %v1443_v60 }
 0x1be   :  { %v1475_v2 = vadd.f32 %v1474_v53, %v1444_v3 }
 0x1c0   :  { %v1476_v20 = vadd.f32 %v1475_v2, %v1445_v51 }
 0x1c2   :  { %v1477_v44 = vadd.f32 %v1476_v20, %v1446_v59 }
 0x1c4   :  { %v1478_v48 = vadd.f32 %v1477_v44, %v1447_v57 }
 0x1c6   :  { %1480 = vst [vmem:[#allocation7] sm:$0xff] %v1478_v48 }
 0x1c7   :  { %1873 = shalt.err (!%p1870_p0)
}
 0x1c8   :  { %1490 = dma.vmem_to_hbm [thread:$0]  %s1488_s1, 128, %s4849_s2, [#allocation4]  }
 0x1c9   :  { %1886 = dma.done.wait [#allocation4], 128  }
 0x1ca   :  { %1887 = vsyncadd [#allocation4], 4294967168 }
 0x1cb   :  { %1494 = vsyncpa [#allocation3], 1 }
 0x1cc   :  { %1495 = vsyncpa [#allocation6], 1 }
 0x1cd   :  { %1496 = vsyncpa [#allocation4], 1 }

</bundles_post_ra>
